<compile_context>
chip_gen: v7x
topology: tpu7x:2x2x1
jax: 0.10.0
libtpu: 0.0.40
codegen_flags: <defaults>
</compile_context>

<pallas_src>
import jax
import jax.numpy as jnp
import numpy as np
from jax.experimental import pallas as pl
from jax.experimental.pallas import tpu as pltpu

BN_EPS = 1e-3


def _round_up(x, m):
    return (x + m - 1) // m * m


# ----------------------------------------------------------------------------
# Pallas kernel: one row-tile of points -> Linear (BN folded) -> ReLU
# ----------------------------------------------------------------------------
def dynamic_vfe_kernel(x_ref, w_ref, b_ref, o_ref):
    # x_ref: (TM, K)   w_ref: (K, F)   b_ref: (1, F)   o_ref: (TM, F)
    x = x_ref[...].astype(jnp.float32)            # cast after load (free, VPU)
    y = jnp.dot(x, w_ref[...],
                preferred_element_type=jnp.float32,
                precision=jax.lax.Precision.HIGHEST)   # MXU
    y = y + b_ref[...]                            # (1, F) broadcasts over rows
    o_ref[...] = jnp.maximum(y, 0.0).astype(o_ref.dtype)   # ReLU, single vmax


# ----------------------------------------------------------------------------
# Wrapper
# ----------------------------------------------------------------------------
def dynamic_vfe_layer(points, params, *, tile_m=1024,
                      vmem_limit_bytes=32 * 1024 * 1024,
                      out_dtype=jnp.float32):
    """DynamicVFELayer forward.

    points: (M, C_in) float — flat dynamic point-feature list.
    params: w (C_out, C_in) [torch Linear layout], gamma/beta/running_mean/
            running_var (C_out,) for BatchNorm1d(eps=1e-3), eval mode.
    returns: (M, C_out) out_dtype (default float32; pass jnp.bfloat16 to halve
             output write traffic if downstream tolerates it).
    """
    m, c_in = points.shape
    w_t = params["w"].T.astype(jnp.float32)                      # (C_in, C_out)
    c_out = w_t.shape[1]

    # ---- fold eval-mode BatchNorm1d into the bias-free Linear --------------
    scale = (params["gamma"].astype(jnp.float32)
             / jnp.sqrt(params["running_var"].astype(jnp.float32) + BN_EPS))
    bias = (params["beta"].astype(jnp.float32)
            - params["running_mean"].astype(jnp.float32) * scale)
    w_eff = w_t * scale[None, :]                                 # (C_in, C_out)
    bias2d = bias.reshape(1, c_out)

    # ---- row tiling ---------------------------------------------------------
    # Multiple of 8, and no larger than ceil(M/2) (rounded up to 8) so the
    # grid has >= 2 "parallel" steps -> both TensorCores busy on v7x.  No M
    # padding: Pallas masks the ragged last block; OOB stores are dropped.
    tile_m = max(8, min(tile_m, _round_up(-(-m // 2), 8)))
    grid = (pl.cdiv(m, tile_m),)

    out = pl.pallas_call(
        dynamic_vfe_kernel,
        out_shape=jax.ShapeDtypeStruct((m, c_out), out_dtype),
        grid=grid,
        in_specs=[
            pl.BlockSpec((tile_m, c_in), lambda i: (i, 0)),   # point tile
            pl.BlockSpec((c_in, c_out), lambda i: (0, 0)),    # folded W (resident)
            pl.BlockSpec((1, c_out), lambda i: (0, 0)),       # folded bias (resident)
        ],
        out_specs=pl.BlockSpec((tile_m, c_out), lambda i: (i, 0)),
        compiler_params=pltpu.CompilerParams(
            dimension_semantics=("parallel",),
            vmem_limit_bytes=vmem_limit_bytes),
    )(points, w_eff, bias2d)

    return out


# ----------------------------------------------------------------------------
# Pure-JAX reference (mirrors the PyTorch forward, eval-mode BN)
# ----------------------------------------------------------------------------
def reference(points, params):
    x = points.astype(jnp.float32) @ params["w"].T.astype(jnp.float32)  # Linear
    scale = params["gamma"] / jnp.sqrt(params["running_var"] + BN_EPS)
    bias = params["beta"] - params["running_mean"] * scale
    x = x * scale + bias                              # BatchNorm1d (eval)
    return jnp.maximum(x, 0.0)                        # ReLU


# ----------------------------------------------------------------------------
# Main
# ----------------------------------------------------------------------------
if __name__ == "__main__":
    key = jax.random.PRNGKey(0)
    k_x, k_w, k_g, k_b, k_rm, k_rv = jax.random.split(key, 6)

    M = 1000          # number of points (not a tile multiple -> ragged last block)
    C_IN = 10         # augmented point-feature channels (typical SST first layer)
    C_OUT = 64        # output channels (written unpadded, no 128-lane padding)

    points = jax.random.normal(k_x, (M, C_IN), jnp.float32)
    params = {
        "w": jax.random.normal(k_w, (C_OUT, C_IN), jnp.float32) * 0.1,
        "gamma": 1.0 + 0.1 * jax.random.normal(k_g, (C_OUT,), jnp.float32),
        "beta": 0.1 * jax.random.normal(k_b, (C_OUT,), jnp.float32),
        "running_mean": 0.1 * jax.random.normal(k_rm, (C_OUT,), jnp.float32),
        "running_var": 1.0 + 0.1 * jax.nn.softplus(
            jax.random.normal(k_rv, (C_OUT,), jnp.float32)),
    }

    out = dynamic_vfe_layer(points, params, tile_m=1024)
    out = jax.block_until_ready(out)

    ref = jax.block_until_ready(reference(points, params))
    np.testing.assert_allclose(np.asarray(out), np.asarray(ref),
                               rtol=1e-4, atol=1e-4)
    assert out.shape == (M, C_OUT)
    print("KERNEL_OK")
</pallas_src>

<mosaic_0001>
module attributes {stable_mosaic.version = 11 : i64} {
  func.func @dynamic_vfe_kernel(%arg0: i32, %arg1: memref<504x10xf32, #tpu.memory_space<vmem>>, %arg2: memref<10x64xf32, #tpu.memory_space<vmem>>, %arg3: memref<1x64xf32, #tpu.memory_space<vmem>>, %arg4: memref<504x64xf32, #tpu.memory_space<vmem>>) attributes {dimension_semantics = [#tpu.dimension_semantics<parallel>], iteration_bounds = array<i64: 2>, scalar_prefetch = 0 : i64, scratch_operands = 0 : i64, tpu.core_type = #tpu.core_type<tc>, window_params = [{transform_indices = @transform_0, window_bounds = array<i64: 504, 10>}, {pipeline_mode = #tpu.pipeline_mode<synchronous>, transform_indices = @transform_1, window_bounds = array<i64: 10, 64>}, {pipeline_mode = #tpu.pipeline_mode<synchronous>, transform_indices = @transform_2, window_bounds = array<i64: 1, 64>}, {transform_indices = @transform_3, window_bounds = array<i64: 504, 64>}]} {
    %c0 = arith.constant 0 : index
    %c0_0 = arith.constant 0 : index
    %0 = vector.load %arg1[%c0, %c0_0] : memref<504x10xf32, #tpu.memory_space<vmem>>, vector<504x10xf32>
    %c0_1 = arith.constant 0 : index
    %c0_2 = arith.constant 0 : index
    %1 = vector.load %arg2[%c0_1, %c0_2] : memref<10x64xf32, #tpu.memory_space<vmem>>, vector<10x64xf32>
    %cst = arith.constant dense<0.000000e+00> : vector<504x64xf32>
    %2 = tpu.matmul %0, %1, %cst {dimension_numbers = #tpu.dot_dimension_numbers<[1], [0], [0], [1], [0, 0, 1, 1], [], []>, precision = #tpu.contract_precision<fp32>} : vector<504x10xf32>, vector<10x64xf32>, vector<504x64xf32> -> vector<504x64xf32>
    %c0_3 = arith.constant 0 : index
    %c0_4 = arith.constant 0 : index
    %3 = vector.load %arg3[%c0_3, %c0_4] : memref<1x64xf32, #tpu.memory_space<vmem>>, vector<1x64xf32>
    %4 = vector.broadcast %3 : vector<1x64xf32> to vector<504x64xf32>
    %5 = arith.addf %2, %4 : vector<504x64xf32>
    %cst_5 = arith.constant 0.000000e+00 : f32
    %6 = vector.broadcast %cst_5 : f32 to vector<504x64xf32>
    %7 = arith.maximumf %5, %6 : vector<504x64xf32>
    %c0_6 = arith.constant 0 : index
    %c0_7 = arith.constant 0 : index
    %8 = vector.load %arg4[%c0_6, %c0_7] : memref<504x64xf32, #tpu.memory_space<vmem>>, vector<504x64xf32>
    tpu.vector_store %arg4[%c0_6, %c0_7], %7 {strides = array<i32>} : memref<504x64xf32, #tpu.memory_space<vmem>>, vector<504x64xf32>,
    return
  }
  func.func @transform_0(%arg0: i32) -> (i32, i32) {
    %c0_i32 = arith.constant 0 : i32
    %c0_i32_0 = arith.constant 0 : i32
    return %arg0, %c0_i32 : i32, i32
  }
  func.func @transform_1(%arg0: i32) -> (i32, i32) {
    %c0_i32 = arith.constant 0 : i32
    %c0_i32_0 = arith.constant 0 : i32
    %c0_i32_1 = arith.constant 0 : i32
    return %c0_i32, %c0_i32_0 : i32, i32
  }
  func.func @transform_2(%arg0: i32) -> (i32, i32) {
    %c0_i32 = arith.constant 0 : i32
    %c0_i32_0 = arith.constant 0 : i32
    %c0_i32_1 = arith.constant 0 : i32
    return %c0_i32, %c0_i32_0 : i32, i32
  }
  func.func @transform_3(%arg0: i32) -> (i32, i32) {
    %c0_i32 = arith.constant 0 : i32
    %c0_i32_0 = arith.constant 0 : i32
    return %arg0, %c0_i32 : i32, i32
  }
}

</mosaic_0001>

<bundles_post_ra>
// kernel: tpu_custom_call.1
= control target key start
LH: loop header
LB: loop body
LE: loop exit
PB: predicated region body
PF: predicated region fallthrough
CT: control target
= control target key end

     0   :  { %s6599_s12 = smov 0   ;;  %s6601_s13 = smov 0   ;;  %s8635_s0 = inlined_call_operand.vmem [shape: f32[1000,10], index: 0, kind: input, shape index: {}]   ;;  %s8636_s1 = inlined_call_operand.vmem [shape: f32[10,64], index: 1, kind: input, shape index: {}]   ;;  %s8637_s2 = inlined_call_operand.vmem [shape: f32[1,64], index: 2, kind: input, shape index: {}]   ;;  %s8638_s3 = inlined_call_operand.vmem [shape: f32[1000,64], index: 3, kind: output, shape index: {}]  }
   0x1   :  { %s6603_s14 = smov 0  }
   0x2 LB: > { %s6612_s15 = sadd.s32 4294967295, %s6542_s14   ;;  %s6614_s16 = sadd.s32 1, %s6542_s14   ;;  %s6542_s14 = sphi %s6603_s14, %s8910_s14   ;;  %s6538_s13 = sphi %s6601_s13, %s8909_s13   ;;  %s6534_s12 = sphi %s6599_s12, %s8908_s12  }
   0x3   : > { %s85_s17 = ssub.s32 %s6542_s14, %s6614_s16  ;;  %s88_s18 = sadd.s32 1, %s6538_s13 }
   0x4   : > { %p86_p0 = scmp.eq.s32.totalorder %s85_s17, 0  ;;  %p98_p1 = scmp.ne.s32.totalorder %s6538_s13, %s6534_s12 }
   0x5   : > { %p99_p2 = scmp.eq.s32.totalorder %s6612_s15, 1  ;;  %p4178_p3 = scmp.ge.s32.totalorder %s6542_s14, 1 }
   0x6   : > { %s6622_s19 = scalar_select %p86_p0, %s6538_s13, %s88_s18  }
   0x7   : > { %p6624_p4 = por %p99_p2, %p98_p1  ;;  %p146_p5 = scmp.lt.s32.totalorder %s6542_s14, 3 }
   0x9   : > { %p147_p6 = pnand %p4178_p3, %p146_p5 }
   0xb   : > { %150 = sbr.rel (%p147_p6) target bundleno = 1093 (0x445), region = 32 }
  0x12   : > { %v255_v0 = vld [vmem:[%s8636_s1] sm:$0xff]  ;;  %v256_v1 = vld [vmem:[%s8636_s1 + $0x8] sm:$0x3]  ;;  %vm454_vm0 = vcmask 1041408   ;;  %v6576_v2 = vmov 0.0|0.0   ;;  %s6637_s25 = smul.u32 63, %s6612_s15 }
  0x13   : > { %5751 = vmatprep.subr.bf16.mxu0 %v6576_v2  ;;  %v456_v3 = vsel %vm454_vm0, %v256_v1, 0  ;;  %v459_v4 = vand.u32 4294901760, %v255_v0  ;;  %5742 = vmatprep.subr.bf16.mxu1 %v6576_v2  ;;  %vm6577_vm1 = vmmov 0   ;;  %v6578_v6 = vmov 0.0   ;;  %s170_s4 = sand.u32 1, %s6534_s12   ;;  %s4193_s12 = smul.u32 (%p6624_p4), 504, %s6612_s15 }
  0x14   : > { %v462_v5 = vand.u32 4294901760, %v456_v3  ;;  %5167 = vmatprep.mubr.msk.f32.mxu0 %vm6577_vm1, %v6578_v6  ;;  %4588 = vmatprep.mubr.msk.f32.mxu1 %vm6577_vm1, %v6578_v6  ;;  %p178_p7 = scmp.lt.s32.totalorder %s6637_s25, 124  ;;  %vm264_vm2 = vcmask 80896   ;;  %s6390_s7 = smul.u32 504, %s170_s4  ;;  %vm3646_vm3 = vcmask 523264  }
  0x15   : > { %v6643_v7 = vsub.f32 %v255_v0, %v459_v4  ;;  %s3718_s11 = ssub.s32 (%p6624_p4), 125, %s6637_s25  ;;  %s8443_s18 = scalar_lea.vmem (%p6624_p4), %s8638_s3, %s4193_s12  }
  0x16   : > { %v6646_v8 = vpack.c.bf16 %v462_v5, %v459_v4  ;;  %v6648_v9 = vsub.f32 %v456_v3, %v462_v5  ;;  %s179_s26 = scalar_select %p178_p7, %s6637_s25, 124 }
  0x17   : > { %v1158_v10 = vand.u32 4294901760, %v6643_v7  ;;  %s8207_s8 = scalar_lea.vmem [#allocation2], %s6390_s7   ;;  %p3719_p8 = scmp.lt.s32.totalorder (%p6624_p4), %s3718_s11, 63 }
  0x18   : > { %5753 = vmatpush3.bf16.msra.mxu0 %v6646_v8  ;;  %5744 = vmatpush3.bf16.msra.mxu1 %v6646_v8  ;;  %v1165_v11 = vand.u32 4294901760, %v6648_v9  ;;  %s4179_s27 = sshll.u32 %s179_s26, 3 }
  0x19   : > { %5745 = vmatprep.subr.bf16.mxu1 %v6576_v2  ;;  %5754 = vmatprep.subr.bf16.mxu0 %v6576_v2  ;;  %s6660_s30 = scalar_lea.vmem %s8635_s0, %s4179_s27  ;;  %v1159_v13 = vsub.f32 %v6643_v7, %v1158_v10 }
  0x1a   : > { %v192_v12 = vld [vmem:[%s6660_s30] sm:$0xff]  ;;  %v193_v14 = vld [vmem:[%s6660_s30 + $0x8] sm:$0xff]  ;;  %v194_v15 = vld [vmem:[%s6660_s30 + $0x10] sm:$0xff]  ;;  %v1166_v17 = vsub.f32 %v6648_v9, %v1165_v11  ;;  %v5755_v34 = vpack.c.bf16 %v1165_v11, %v1158_v10 }
  0x1b   : > { %v266_v16 = vsel %vm264_vm2, %v192_v12, 0  ;;  %v269_v18 = vsel %vm264_vm2, %v193_v14, 0  ;;  %v272_v19 = vsel %vm264_vm2, %v194_v15, 0  ;;  %v195_v20 = vld [vmem:[%s6660_s30 + $0x18] sm:$0xff]  ;;  %v196_v21 = vld [vmem:[%s6660_s30 + $0x20] sm:$0xff]  ;;  %v197_v31 = vld [vmem:[%s6660_s30 + $0x28] sm:$0xff] }
  0x1c   : > { %v6672_v22 = vand.u32 4294901760, %v266_v16  ;;  %v6674_v23 = vand.u32 4294901760, %v269_v18  ;;  %v6676_v24 = vand.u32 4294901760, %v272_v19  ;;  %v275_v25 = vsel %vm264_vm2, %v195_v20, 0  ;;  %v198_v45 = vld [vmem:[%s6660_s30 + $0x30] sm:$0xff]  ;;  %v199_v51 = vld [vmem:[%s6660_s30 + $0x38] sm:$0xff] }
  0x1d   : > { %v6679_v26 = vand.u32 4294901760, %v275_v25  ;;  %v278_v30 = vsel %vm264_vm2, %v196_v21, 0  ;;  %v1160_v32 = vand.u32 4294901760, %v1159_v13  ;;  %v1167_v33 = vand.u32 4294901760, %v1166_v17  ;;  %v200_v59 = vld [vmem:[%s6660_s30 + $0x40] sm:$0xff]  ;;  %v202_v13 = vld [vmem:[%s6660_s30 + $0x50] sm:$0xff] }
  0x1e   : > { %v6682_v27 = vsub.f32 %v266_v16, %v6672_v22  ;;  %v6685_v28 = vsub.f32 %v269_v18, %v6674_v23  ;;  %v6688_v29 = vsub.f32 %v272_v19, %v6676_v24  ;;  %v6694_v37 = vand.u32 4294901760, %v278_v30  ;;  %v203_v20 = vld [vmem:[%s6660_s30 + $0x58] sm:$0xff] }
  0x1f   : > { %v281_v38 = vsel %vm264_vm2, %v197_v31, 0  ;;  %v6701_v42 = vsub.f32 %v275_v25, %v6679_v26  ;;  %v5746_v43 = vpack.c.bf16 %v1167_v33, %v1160_v32  ;;  %v284_v52 = vsel %vm264_vm2, %v198_v45, 0  ;;  %v204_v33 = vld [vmem:[%s6660_s30 + $0x60] sm:$0xff] }
  0x20   : > { %8739 = vst [vmem:[#allocation3_spill] sm:$0xff] %v6682_v27  ;;  %8740 = vst [vmem:[#allocation4_spill] sm:$0xff] %v6685_v28  ;;  %v527_v35 = vand.u32 4294901760, %v6682_v27  ;;  %v537_v36 = vand.u32 4294901760, %v6685_v28  ;;  %v547_v41 = vand.u32 4294901760, %v6688_v29  ;;  %v6707_v46 = vand.u32 4294901760, %v281_v38 }
  0x21   : > { %8741 = vst [vmem:[#allocation5_spill] sm:$0xff] %v6688_v29  ;;  %8742 = vst [vmem:[#allocation6_spill] sm:$0xff] %v6701_v42  ;;  %v557_v49 = vand.u32 4294901760, %v6701_v42  ;;  %v6712_v50 = vsub.f32 %v278_v30, %v6694_v37  ;;  %v287_v54 = vsel %vm264_vm2, %v199_v51, 0  ;;  %v6727_v58 = vand.u32 4294901760, %v284_v52 }
  0x22   : > { %5168 = vmatmul.mubr.f32.vlgmr.msra.gmra.mrb[0].mxu0 %v527_v35  ;;  %v528_v39 = vsub.f32 %v6682_v27, %v527_v35  ;;  %v538_v40 = vsub.f32 %v6685_v28, %v537_v36  ;;  %v548_v48 = vsub.f32 %v6688_v29, %v547_v41  ;;  %v6722_v53 = vsub.f32 %v281_v38, %v6707_v46  ;;  %v237_v27 = vld [vmem:[%s6660_s30 + $0x168] sm:$0xff] }
  0x23   : > { %5170 = vmatprep.mubr.msk.f32.mxu0 %vm6577_vm1, %v6578_v6  ;;  %5756 = vmatpush3.bf16.msra.mxu0 %v5755_v34  ;;  %8743 = vst [vmem:[#allocation7_spill] sm:$0xff] %v6712_v50  ;;  %v558_v56 = vsub.f32 %v6701_v42, %v557_v49  ;;  %v567_v57 = vand.u32 4294901760, %v6712_v50  ;;  %v6734_v60 = vand.u32 4294901760, %v287_v54  ;;  %v6739_v0 = vsub.f32 %v284_v52, %v6727_v58  ;;  %v206_v52 = vld [vmem:[%s6660_s30 + $0x70] sm:$0xff] }
  0x24   : > { %v529_v44 = vand.u32 4294901760, %v528_v39  ;;  %5757 = vmatprep.subr.bf16.mxu0 %v6576_v2  ;;  %v539_v47 = vand.u32 4294901760, %v538_v40  ;;  %8744 = vst [vmem:[#allocation8_spill] sm:$0xff] %v6722_v53  ;;  %v549_v55 = vand.u32 4294901760, %v548_v48  ;;  %v577_v63 = vand.u32 4294901760, %v6722_v53 }
  0x25   : > { %v559_v61 = vand.u32 4294901760, %v558_v56  ;;  %v568_v62 = vsub.f32 %v6712_v50, %v567_v57  ;;  %8745 = vst [vmem:[#allocation9_spill] sm:$0xff] %v6739_v0  ;;  %v290_v1 = vsel %vm264_vm2, %v200_v59, 0  ;;  %v6748_v3 = vsub.f32 %v287_v54, %v6734_v60  ;;  %v234_v50 = vld [vmem:[%s6660_s30 + $0x150] sm:$0xff] }
  0x26   : > { %4589 = vmatmul.mubr.f32.vlgmr.msra.gmra.mrb[0].mxu1 %v529_v44  ;;  %5171 = vmatmul.mubr.f32.gmra.mrb[2].mxu0 %v537_v36  ;;  %v578_v5 = vsub.f32 %v6722_v53, %v577_v63  ;;  %v587_v10 = vand.u32 4294901760, %v6739_v0  ;;  %v6752_v11 = vand.u32 4294901760, %v290_v1  ;;  %v296_v19 = vsel %vm264_vm2, %v202_v13, 0 }
  0x27   : > { %5747 = vmatpush3.bf16.msra.mxu1 %v5746_v43  ;;  %4591 = vmatprep.mubr.msk.f32.mxu1 %vm6577_vm1, %v6578_v6  ;;  %8746 = vst [vmem:[#allocation10_spill] sm:$0xff] %v6748_v3  ;;  %v569_v4 = vand.u32 4294901760, %v568_v62  ;;  %v597_v14 = vand.u32 4294901760, %v6748_v3  ;;  %v6778_v32 = vand.u32 4294901760, %v296_v19  ;;  %v299_v34 = vsel %vm264_vm2, %v203_v20, 0  ;;  %v205_v43 = vld [vmem:[%s6660_s30 + $0x68] sm:$0xff] }
  0x28   : > { %5173 = vmatprep.mubr.msk.f32.mxu0 %vm6577_vm1, %v6578_v6  ;;  %5748 = vmatprep.subr.bf16.mxu1 %v6576_v2  ;;  %v201_v2 = vld [vmem:[%s6660_s30 + $0x48] sm:$0xff]  ;;  %v579_v15 = vand.u32 4294901760, %v578_v5  ;;  %v588_v16 = vsub.f32 %v6739_v0, %v587_v10  ;;  %v6763_v17 = vsub.f32 %v290_v1, %v6752_v11  ;;  %v302_v36 = vsel %vm264_vm2, %v204_v33, 0  ;;  %v207_v62 = vld [vmem:[%s6660_s30 + $0x78] sm:$0xff]  ;;  %v232_v0 = vld [vmem:[%s6660_s30 + $0x140] sm:$0xff] }
  0x29   : > { %v293_v12 = vsel %vm264_vm2, %v201_v2, 0  ;;  %v598_v21 = vsub.f32 %v6748_v3, %v597_v14  ;;  %v6790_v40 = vsub.f32 %v296_v19, %v6778_v32  ;;  %v6799_v44 = vand.u32 4294901760, %v302_v36 }
  0x2a   : > { %4592 = vmatmul.mubr.f32.gmra.mrb[2].mxu1 %v539_v47  ;;  %5174 = vmatmul.mubr.f32.gmra.mrb[4].mxu0 %v547_v41  ;;  %8747 = vst [vmem:[#allocation11_spill] sm:$0xff] %v6763_v17  ;;  %v6765_v18 = vand.u32 4294901760, %v293_v12  ;;  %v589_v25 = vand.u32 4294901760, %v588_v16  ;;  %v607_v30 = vand.u32 4294901760, %v6763_v17  ;;  %v6792_v41 = vand.u32 4294901760, %v299_v34 }
  0x2b   : > { %4594 = vmatprep.mubr.msk.f32.mxu1 %vm6577_vm1, %v6578_v6  ;;  %5176 = vmatprep.mubr.msk.f32.mxu0 %vm6577_vm1, %v6578_v6  ;;  %v599_v35 = vand.u32 4294901760, %v598_v21  ;;  %8749 = vst [vmem:[#allocation13_spill] sm:$0xff] %v6790_v40  ;;  %v305_v45 = vsel %vm264_vm2, %v205_v43, 0  ;;  %v209_v21 = vld [vmem:[%s6660_s30 + $0x88] sm:$0xff] }
  0x2c   : > { %v6776_v31 = vsub.f32 %v293_v12, %v6765_v18  ;;  %v608_v38 = vsub.f32 %v6763_v17, %v607_v30  ;;  %v6805_v51 = vsub.f32 %v299_v34, %v6792_v41  ;;  %v6812_v54 = vand.u32 4294901760, %v305_v45  ;;  %v208_v12 = vld [vmem:[%s6660_s30 + $0x80] sm:$0xff] }
  0x2d   : > { %v314_v20 = vsel %vm264_vm2, %v208_v12, 0 }
  0x2e   : > { %4595 = vmatmul.mubr.f32.gmra.mrb[4].mxu1 %v549_v55  ;;  %5177 = vmatmul.mubr.f32.gmra.mrb[6].mxu0 %v557_v49  ;;  %8748 = vst [vmem:[#allocation12_spill] sm:$0xff] %v6776_v31  ;;  %v617_v39 = vand.u32 4294901760, %v6776_v31  ;;  %v609_v47 = vand.u32 4294901760, %v608_v38  ;;  %v627_v49 = vand.u32 4294901760, %v6790_v40  ;;  %8750 = vst [vmem:[#allocation14_spill] sm:$0xff] %v6805_v51  ;;  %v308_v55 = vsel %vm264_vm2, %v206_v52, 0 }
  0x2f   : > { %4597 = vmatprep.mubr.msk.f32.mxu1 %vm6577_vm1, %v6578_v6  ;;  %5179 = vmatprep.mubr.msk.f32.mxu0 %vm6577_vm1, %v6578_v6  ;;  %v637_v59 = vand.u32 4294901760, %v6805_v51  ;;  %v6828_v1 = vand.u32 4294901760, %v308_v55  ;;  %v210_v38 = vld [vmem:[%s6660_s30 + $0x90] sm:$0xff]  ;;  %v211_v52 = vld [vmem:[%s6660_s30 + $0x98] sm:$0xff] }
  0x30   : > { %v618_v48 = vsub.f32 %v6776_v31, %v617_v39 }
  0x32   : > { %4598 = vmatmul.mubr.f32.gmra.mrb[6].mxu1 %v559_v61  ;;  %5180 = vmatmul.mubr.f32.gmra.mrb[8].mxu0 %v567_v57  ;;  %v619_v56 = vand.u32 4294901760, %v618_v48  ;;  %v628_v57 = vsub.f32 %v6790_v40, %v627_v49  ;;  %v6818_v61 = vsub.f32 %v302_v36, %v6799_v44  ;;  %v317_v36 = vsel %vm264_vm2, %v209_v21, 0  ;;  %v227_v40 = vld [vmem:[%s6660_s30 + $0x118] sm:$0xff] }
  0x33   : > { %4600 = vmatprep.mubr.msk.f32.mxu1 %vm6577_vm1, %v6578_v6  ;;  %5182 = vmatprep.mubr.msk.f32.mxu0 %vm6577_vm1, %v6578_v6  ;;  %v6869_v48 = vand.u32 4294901760, %v317_v36 }
  0x34   : > { %8751 = vst [vmem:[#allocation15_spill] sm:$0xff] %v6818_v61  ;;  %v629_v2 = vand.u32 4294901760, %v628_v57  ;;  %v647_v5 = vand.u32 4294901760, %v6818_v61 }
  0x36   : > { %4601 = vmatmul.mubr.f32.gmra.mrb[8].mxu1 %v569_v4  ;;  %5183 = vmatmul.mubr.f32.gmra.mrb[10].mxu0 %v577_v63  ;;  %v6826_v63 = vsub.f32 %v305_v45, %v6812_v54  ;;  %v638_v4 = vsub.f32 %v6805_v51, %v637_v59  ;;  %v648_v16 = vsub.f32 %v6818_v61, %v647_v5  ;;  %v226_v61 = vld [vmem:[%s6660_s30 + $0x110] sm:$0xff] }
  0x37   : > { %4603 = vmatprep.mubr.msk.f32.mxu1 %vm6577_vm1, %v6578_v6  ;;  %5185 = vmatprep.mubr.msk.f32.mxu0 %vm6577_vm1, %v6578_v6 }
  0x38   : > { %8752 = vst [vmem:[#allocation16_spill] sm:$0xff] %v6826_v63  ;;  %v657_v13 = vand.u32 4294901760, %v6826_v63  ;;  %v649_v33 = vand.u32 4294901760, %v648_v16 }
  0x3a   : > { %4604 = vmatmul.mubr.f32.gmra.mrb[10].mxu1 %v579_v15  ;;  %5186 = vmatmul.mubr.f32.gmra.mrb[12].mxu0 %v587_v10  ;;  %v311_v10 = vsel %vm264_vm2, %v207_v62, 0  ;;  %v639_v15 = vand.u32 4294901760, %v638_v4  ;;  %v6882_v62 = vsub.f32 %v317_v36, %v6869_v48  ;;  %v212_v4 = vld [vmem:[%s6660_s30 + $0xa0] sm:$0xff] }
  0x3b   : > { %4606 = vmatprep.mubr.msk.f32.mxu1 %vm6577_vm1, %v6578_v6  ;;  %5188 = vmatprep.mubr.msk.f32.mxu0 %vm6577_vm1, %v6578_v6  ;;  %v6843_v19 = vand.u32 4294901760, %v311_v10 }
  0x3c   : > { %8756 = vst [vmem:[#allocation20_spill] sm:$0xff] %v6882_v62 }
  0x3d   : > { %v6854_v34 = vsub.f32 %v311_v10, %v6843_v19  ;;  %v326_v10 = vsel %vm264_vm2, %v212_v4, 0 }
  0x3e   : > { %4607 = vmatmul.mubr.f32.gmra.mrb[12].mxu1 %v589_v25  ;;  %5189 = vmatmul.mubr.f32.gmra.mrb[14].mxu0 %v597_v14  ;;  %v6840_v14 = vsub.f32 %v308_v55, %v6828_v1  ;;  %v658_v25 = vsub.f32 %v6826_v63, %v657_v13  ;;  %v6903_v21 = vand.u32 4294901760, %v326_v10  ;;  %v225_v63 = vld [vmem:[%s6660_s30 + $0x108] sm:$0xff] }
  0x3f   : > { %4609 = vmatprep.mubr.msk.f32.mxu1 %vm6577_vm1, %v6578_v6  ;;  %5191 = vmatprep.mubr.msk.f32.mxu0 %vm6577_vm1, %v6578_v6  ;;  %8754 = vst [vmem:[#allocation18_spill] sm:$0xff] %v6854_v34  ;;  %v677_v45 = vand.u32 4294901760, %v6854_v34 }
  0x40   : > { %8753 = vst [vmem:[#allocation17_spill] sm:$0xff] %v6840_v14 }
  0x41   : > { %v678_v57 = vsub.f32 %v6854_v34, %v677_v45 }
  0x42   : > { %4610 = vmatmul.mubr.f32.gmra.mrb[14].mxu1 %v599_v35  ;;  %5192 = vmatmul.mubr.f32.gmra.mrb[16].mxu0 %v607_v30  ;;  %v667_v30 = vand.u32 4294901760, %v6840_v14  ;;  %v6856_v35 = vand.u32 4294901760, %v314_v20 }
  0x43   : > { %4612 = vmatprep.mubr.msk.f32.mxu1 %vm6577_vm1, %v6578_v6  ;;  %5194 = vmatprep.mubr.msk.f32.mxu0 %vm6577_vm1, %v6578_v6  ;;  %v679_v12 = vand.u32 4294901760, %v678_v57 }
  0x44   : > { %v668_v43 = vsub.f32 %v6840_v14, %v667_v30 }
  0x46   : > { %4613 = vmatmul.mubr.f32.gmra.mrb[16].mxu1 %v609_v47  ;;  %5195 = vmatmul.mubr.f32.gmra.mrb[18].mxu0 %v617_v39  ;;  %v659_v39 = vand.u32 4294901760, %v658_v25  ;;  %v6867_v47 = vsub.f32 %v314_v20, %v6856_v35  ;;  %v669_v55 = vand.u32 4294901760, %v668_v43  ;;  %v213_v20 = vld [vmem:[%s6660_s30 + $0xa8] sm:$0xff] }
  0x47   : > { %4615 = vmatprep.mubr.msk.f32.mxu1 %vm6577_vm1, %v6578_v6  ;;  %5197 = vmatprep.mubr.msk.f32.mxu0 %vm6577_vm1, %v6578_v6  ;;  %v329_v25 = vsel %vm264_vm2, %v213_v20, 0  ;;  %v216_v20 = vld [vmem:[%s6660_s30 + $0xc0] sm:$0xff] }
  0x48   : > { %8755 = vst [vmem:[#allocation19_spill] sm:$0xff] %v6867_v47  ;;  %v6916_v43 = vand.u32 4294901760, %v329_v25 }
  0x4a   : > { %4616 = vmatmul.mubr.f32.gmra.mrb[18].mxu1 %v619_v56  ;;  %5198 = vmatmul.mubr.f32.gmra.mrb[20].mxu0 %v627_v49  ;;  %v320_v49 = vsel %vm264_vm2, %v210_v38, 0 }
  0x4b   : > { %4618 = vmatprep.mubr.msk.f32.mxu1 %vm6577_vm1, %v6578_v6  ;;  %5200 = vmatprep.mubr.msk.f32.mxu0 %vm6577_vm1, %v6578_v6  ;;  %v6877_v56 = vand.u32 4294901760, %v320_v49 }
  0x4d   : > { %v6896_v16 = vsub.f32 %v320_v49, %v6877_v56 }
  0x4e   : > { %4619 = vmatmul.mubr.f32.gmra.mrb[20].mxu1 %v629_v2  ;;  %5201 = vmatmul.mubr.f32.gmra.mrb[22].mxu0 %v637_v59  ;;  %v687_v59 = vand.u32 4294901760, %v6867_v47  ;;  %v323_v2 = vsel %vm264_vm2, %v211_v52, 0 }
  0x4f   : > { %4621 = vmatprep.mubr.msk.f32.mxu1 %vm6577_vm1, %v6578_v6  ;;  %5203 = vmatprep.mubr.msk.f32.mxu0 %vm6577_vm1, %v6578_v6  ;;  %8757 = vst [vmem:[#allocation21_spill] sm:$0xff] %v6896_v16  ;;  %v707_v36 = vand.u32 4294901760, %v6896_v16 }
  0x51   : > { %v708_v49 = vsub.f32 %v6896_v16, %v707_v36  ;;  %v219_v16 = vld [vmem:[%s6660_s30 + $0xd8] sm:$0xff] }
  0x52   : > { %4622 = vmatmul.mubr.f32.gmra.mrb[22].mxu1 %v639_v15  ;;  %5204 = vmatmul.mubr.f32.gmra.mrb[24].mxu0 %v647_v5  ;;  %v6890_v5 = vand.u32 4294901760, %v323_v2  ;;  %v697_v15 = vand.u32 4294901760, %v6882_v62 }
  0x53   : > { %4624 = vmatprep.mubr.msk.f32.mxu1 %vm6577_vm1, %v6578_v6  ;;  %5206 = vmatprep.mubr.msk.f32.mxu0 %vm6577_vm1, %v6578_v6  ;;  %v709_v4 = vand.u32 4294901760, %v708_v49  ;;  %v217_v49 = vld [vmem:[%s6660_s30 + $0xc8] sm:$0xff] }
  0x54   : > { %v6909_v38 = vsub.f32 %v323_v2, %v6890_v5  ;;  %v6930_v2 = vsub.f32 %v329_v25, %v6916_v43 }
  0x56   : > { %4625 = vmatmul.mubr.f32.gmra.mrb[24].mxu1 %v649_v33  ;;  %5207 = vmatmul.mubr.f32.gmra.mrb[26].mxu0 %v657_v13  ;;  %v688_v13 = vsub.f32 %v6867_v47, %v687_v59  ;;  %v698_v33 = vsub.f32 %v6882_v62, %v697_v15  ;;  %8758 = vst [vmem:[#allocation22_spill] sm:$0xff] %v6909_v38  ;;  %v717_v52 = vand.u32 4294901760, %v6909_v38  ;;  %8760 = vst [vmem:[#allocation24_spill] sm:$0xff] %v6930_v2 }
  0x57   : > { %4627 = vmatprep.mubr.msk.f32.mxu1 %vm6577_vm1, %v6578_v6  ;;  %5209 = vmatprep.mubr.msk.f32.mxu0 %vm6577_vm1, %v6578_v6  ;;  %v737_v25 = vand.u32 4294901760, %v6930_v2 }
  0x5a   : > { %4628 = vmatmul.mubr.f32.gmra.mrb[26].mxu1 %v659_v39  ;;  %5210 = vmatmul.mubr.f32.gmra.mrb[28].mxu0 %v667_v30  ;;  %v689_v30 = vand.u32 4294901760, %v688_v13  ;;  %v214_v39 = vld [vmem:[%s6660_s30 + $0xb0] sm:$0xff] }
  0x5b   : > { %4630 = vmatprep.mubr.msk.f32.mxu1 %vm6577_vm1, %v6578_v6  ;;  %5212 = vmatprep.mubr.msk.f32.mxu0 %vm6577_vm1, %v6578_v6  ;;  %v332_v57 = vsel %vm264_vm2, %v214_v39, 0 }
  0x5c   : > { %v6934_v13 = vand.u32 4294901760, %v332_v57 }
  0x5e   : > { %4631 = vmatmul.mubr.f32.gmra.mrb[28].mxu1 %v669_v55  ;;  %5213 = vmatmul.mubr.f32.gmra.mrb[30].mxu0 %v677_v45  ;;  %v699_v45 = vand.u32 4294901760, %v698_v33  ;;  %v6921_v55 = vsub.f32 %v326_v10, %v6903_v21 }
  0x5f   : > { %4633 = vmatprep.mubr.msk.f32.mxu1 %vm6577_vm1, %v6578_v6  ;;  %5215 = vmatprep.mubr.msk.f32.mxu0 %vm6577_vm1, %v6578_v6 }
  0x60   : > { %8759 = vst [vmem:[#allocation23_spill] sm:$0xff] %v6921_v55  ;;  %v727_v10 = vand.u32 4294901760, %v6921_v55 }
  0x62   : > { %4634 = vmatmul.mubr.f32.gmra.mrb[30].mxu1 %v679_v12  ;;  %5216 = vmatmul.mubr.f32.gmra.mrb[32].mxu0 %v687_v59  ;;  %v215_v59 = vld [vmem:[%s6660_s30 + $0xb8] sm:$0xff]  ;;  %v718_v12 = vsub.f32 %v6909_v38, %v717_v52  ;;  %v728_v33 = vsub.f32 %v6921_v55, %v727_v10  ;;  %v218_v55 = vld [vmem:[%s6660_s30 + $0xd0] sm:$0xff] }
  0x63   : > { %4636 = vmatprep.mubr.msk.f32.mxu1 %vm6577_vm1, %v6578_v6  ;;  %5218 = vmatprep.mubr.msk.f32.mxu0 %vm6577_vm1, %v6578_v6 }
  0x66   : > { %4637 = vmatmul.mubr.f32.gmra.mrb[32].mxu1 %v689_v30  ;;  %5219 = vmatmul.mubr.f32.gmra.mrb[34].mxu0 %v697_v15  ;;  %v335_v15 = vsel %vm264_vm2, %v215_v59, 0  ;;  %v719_v30 = vand.u32 4294901760, %v718_v12  ;;  %v729_v59 = vand.u32 4294901760, %v728_v33 }
  0x67   : > { %4639 = vmatprep.mubr.msk.f32.mxu1 %vm6577_vm1, %v6578_v6  ;;  %5221 = vmatprep.mubr.msk.f32.mxu0 %vm6577_vm1, %v6578_v6  ;;  %v6947_v39 = vand.u32 4294901760, %v335_v15 }
  0x6a   : > { %4640 = vmatmul.mubr.f32.gmra.mrb[34].mxu1 %v699_v45  ;;  %5222 = vmatmul.mubr.f32.gmra.mrb[36].mxu0 %v707_v36  ;;  %v6945_v36 = vsub.f32 %v332_v57, %v6934_v13  ;;  %v338_v45 = vsel %vm264_vm2, %v216_v20, 0  ;;  %v341_v20 = vsel %vm264_vm2, %v217_v49, 0 }
  0x6b   : > { %4642 = vmatprep.mubr.msk.f32.mxu1 %vm6577_vm1, %v6578_v6  ;;  %5224 = vmatprep.mubr.msk.f32.mxu0 %vm6577_vm1, %v6578_v6  ;;  %v6960_v12 = vand.u32 4294901760, %v338_v45  ;;  %v6974_v38 = vand.u32 4294901760, %v341_v20 }
  0x6c   : > { %8761 = vst [vmem:[#allocation25_spill] sm:$0xff] %v6945_v36  ;;  %v747_v57 = vand.u32 4294901760, %v6945_v36 }
  0x6e   : > { %4643 = vmatmul.mubr.f32.gmra.mrb[36].mxu1 %v709_v4  ;;  %5225 = vmatmul.mubr.f32.gmra.mrb[38].mxu0 %v717_v52  ;;  %v738_v52 = vsub.f32 %v6930_v2, %v737_v25  ;;  %v6958_v4 = vsub.f32 %v335_v15, %v6947_v39  ;;  %v748_v15 = vsub.f32 %v6945_v36, %v747_v57  ;;  %v220_v36 = vld [vmem:[%s6660_s30 + $0xe0] sm:$0xff] }
  0x6f   : > { %4645 = vmatprep.mubr.msk.f32.mxu1 %vm6577_vm1, %v6578_v6  ;;  %5227 = vmatprep.mubr.msk.f32.mxu0 %vm6577_vm1, %v6578_v6  ;;  %v6972_v2 = vsub.f32 %v338_v45, %v6960_v12 }
  0x70   : > { %8762 = vst [vmem:[#allocation26_spill] sm:$0xff] %v6958_v4  ;;  %v757_v33 = vand.u32 4294901760, %v6958_v4  ;;  %v749_v49 = vand.u32 4294901760, %v748_v15 }
  0x71   : > { %8763 = vst [vmem:[#allocation27_spill] sm:$0xff] %v6972_v2 }
  0x72   : > { %4646 = vmatmul.mubr.f32.gmra.mrb[38].mxu1 %v719_v30  ;;  %5228 = vmatmul.mubr.f32.gmra.mrb[40].mxu0 %v727_v10  ;;  %v739_v30 = vand.u32 4294901760, %v738_v52  ;;  %v344_v10 = vsel %vm264_vm2, %v218_v55, 0  ;;  %v758_v45 = vsub.f32 %v6958_v4, %v757_v33  ;;  %v767_v52 = vand.u32 4294901760, %v6972_v2  ;;  %v221_v4 = vld [vmem:[%s6660_s30 + $0xe8] sm:$0xff] }
  0x73   : > { %4648 = vmatprep.mubr.msk.f32.mxu1 %vm6577_vm1, %v6578_v6  ;;  %5230 = vmatprep.mubr.msk.f32.mxu0 %vm6577_vm1, %v6578_v6  ;;  %v6981_v55 = vand.u32 4294901760, %v344_v10 }
  0x75   : > { %v7000_v15 = vsub.f32 %v344_v10, %v6981_v55 }
  0x76   : > { %4649 = vmatmul.mubr.f32.gmra.mrb[40].mxu1 %v729_v59  ;;  %5231 = vmatmul.mubr.f32.gmra.mrb[42].mxu0 %v737_v25  ;;  %v347_v25 = vsel %vm264_vm2, %v219_v16, 0  ;;  %v6987_v59 = vsub.f32 %v341_v20, %v6974_v38  ;;  %v350_v16 = vsel %vm264_vm2, %v220_v36, 0  ;;  %v353_v36 = vsel %vm264_vm2, %v221_v4, 0 }
  0x77   : > { %4651 = vmatprep.mubr.msk.f32.mxu1 %vm6577_vm1, %v6578_v6  ;;  %5233 = vmatprep.mubr.msk.f32.mxu0 %vm6577_vm1, %v6578_v6  ;;  %v6994_v62 = vand.u32 4294901760, %v347_v25  ;;  %8765 = vst [vmem:[#allocation29_spill] sm:$0xff] %v7000_v15  ;;  %v7007_v47 = vand.u32 4294901760, %v350_v16  ;;  %v787_v10 = vand.u32 4294901760, %v7000_v15  ;;  %v7020_v34 = vand.u32 4294901760, %v353_v36 }
  0x78   : > { %8764 = vst [vmem:[#allocation28_spill] sm:$0xff] %v6987_v59  ;;  %v777_v20 = vand.u32 4294901760, %v6987_v59 }
  0x7a   : > { %4652 = vmatmul.mubr.f32.gmra.mrb[42].mxu1 %v739_v30  ;;  %5234 = vmatmul.mubr.f32.gmra.mrb[44].mxu0 %v747_v57  ;;  %v759_v57 = vand.u32 4294901760, %v758_v45  ;;  %v768_v30 = vsub.f32 %v6972_v2, %v767_v52  ;;  %v7013_v45 = vsub.f32 %v347_v25, %v6994_v62  ;;  %v222_v2 = vld [vmem:[%s6660_s30 + $0xf0] sm:$0xff]  ;;  %v7025_v25 = vsub.f32 %v350_v16, %v7007_v47 }
  0x7b   : > { %4654 = vmatprep.mubr.msk.f32.mxu1 %vm6577_vm1, %v6578_v6  ;;  %5236 = vmatprep.mubr.msk.f32.mxu0 %vm6577_vm1, %v6578_v6 }
  0x7c   : > { %8766 = vst [vmem:[#allocation30_spill] sm:$0xff] %v7013_v45  ;;  %8767 = vst [vmem:[#allocation31_spill] sm:$0xff] %v7025_v25  ;;  %v807_v16 = vand.u32 4294901760, %v7025_v25 }
  0x7e   : > { %4655 = vmatmul.mubr.f32.gmra.mrb[44].mxu1 %v749_v49  ;;  %5237 = vmatmul.mubr.f32.gmra.mrb[46].mxu0 %v757_v33  ;;  %v769_v33 = vand.u32 4294901760, %v768_v30  ;;  %v778_v49 = vsub.f32 %v6987_v59, %v777_v20  ;;  %v356_v30 = vsel %vm264_vm2, %v222_v2, 0  ;;  %v223_v59 = vld [vmem:[%s6660_s30 + $0xf8] sm:$0xff] }
  0x7f   : > { %4657 = vmatprep.mubr.msk.f32.mxu1 %vm6577_vm1, %v6578_v6  ;;  %5239 = vmatprep.mubr.msk.f32.mxu0 %vm6577_vm1, %v6578_v6  ;;  %v359_v2 = vsel %vm264_vm2, %v223_v59, 0 }
  0x80   : > { %v779_v4 = vand.u32 4294901760, %v778_v49  ;;  %v7051_v14 = vand.u32 4294901760, %v359_v2 }
  0x82   : > { %4658 = vmatmul.mubr.f32.gmra.mrb[46].mxu1 %v759_v57  ;;  %5240 = vmatmul.mubr.f32.gmra.mrb[48].mxu0 %v767_v52  ;;  %v788_v52 = vsub.f32 %v7000_v15, %v787_v10  ;;  %v797_v57 = vand.u32 4294901760, %v7013_v45  ;;  %v7038_v15 = vand.u32 4294901760, %v356_v30 }
  0x83   : > { %4660 = vmatprep.mubr.msk.f32.mxu1 %vm6577_vm1, %v6578_v6  ;;  %5242 = vmatprep.mubr.msk.f32.mxu0 %vm6577_vm1, %v6578_v6 }
  0x84   : > { %v798_v49 = vsub.f32 %v7013_v45, %v797_v57  ;;  %v7049_v45 = vsub.f32 %v356_v30, %v7038_v15 }
  0x86   : > { %4661 = vmatmul.mubr.f32.gmra.mrb[48].mxu1 %v769_v33  ;;  %5243 = vmatmul.mubr.f32.gmra.mrb[50].mxu0 %v777_v20  ;;  %v7034_v20 = vsub.f32 %v353_v36, %v7020_v34  ;;  %v789_v33 = vand.u32 4294901760, %v788_v52  ;;  %v224_v36 = vld [vmem:[%s6660_s30 + $0x100] sm:$0xff]  ;;  %v808_v52 = vsub.f32 %v7025_v25, %v807_v16  ;;  %8769 = vst [vmem:[#allocation33_spill] sm:$0xff] %v7049_v45  ;;  %v827_v30 = vand.u32 4294901760, %v7049_v45 }
  0x87   : > { %4663 = vmatprep.mubr.msk.f32.mxu1 %vm6577_vm1, %v6578_v6  ;;  %5245 = vmatprep.mubr.msk.f32.mxu0 %vm6577_vm1, %v6578_v6  ;;  %v362_v59 = vsel %vm264_vm2, %v224_v36, 0  ;;  %v365_v36 = vsel %vm264_vm2, %v225_v63, 0  ;;  %v371_v63 = vsel %vm264_vm2, %v227_v40, 0 }
  0x88   : > { %8768 = vst [vmem:[#allocation32_spill] sm:$0xff] %v7034_v20  ;;  %v7064_v25 = vand.u32 4294901760, %v362_v59  ;;  %v7078_v51 = vand.u32 4294901760, %v365_v36  ;;  %v7098_v31 = vand.u32 4294901760, %v371_v63 }
  0x8a   : > { %4664 = vmatmul.mubr.f32.gmra.mrb[50].mxu1 %v779_v4  ;;  %5246 = vmatmul.mubr.f32.gmra.mrb[52].mxu0 %v787_v10  ;;  %v817_v4 = vand.u32 4294901760, %v7034_v20  ;;  %v799_v10 = vand.u32 4294901760, %v798_v49  ;;  %v7062_v49 = vsub.f32 %v359_v2, %v7051_v14  ;;  %v828_v2 = vsub.f32 %v7049_v45, %v827_v30  ;;  %v228_v45 = vld [vmem:[%s6660_s30 + $0x120] sm:$0xff] }
  0x8b   : > { %4666 = vmatprep.mubr.msk.f32.mxu1 %vm6577_vm1, %v6578_v6  ;;  %5248 = vmatprep.mubr.msk.f32.mxu0 %vm6577_vm1, %v6578_v6  ;;  %v374_v40 = vsel %vm264_vm2, %v228_v45, 0 }
  0x8c   : > { %8770 = vst [vmem:[#allocation34_spill] sm:$0xff] %v7062_v49  ;;  %v7111_v17 = vand.u32 4294901760, %v374_v40 }
  0x8e   : > { %4667 = vmatmul.mubr.f32.gmra.mrb[52].mxu1 %v789_v33  ;;  %5249 = vmatmul.mubr.f32.gmra.mrb[54].mxu0 %v797_v57  ;;  %v818_v57 = vsub.f32 %v7034_v20, %v817_v4  ;;  %v809_v33 = vand.u32 4294901760, %v808_v52  ;;  %v837_v52 = vand.u32 4294901760, %v7062_v49  ;;  %v7076_v20 = vsub.f32 %v362_v59, %v7064_v25 }
  0x8f   : > { %4669 = vmatprep.mubr.msk.f32.mxu1 %vm6577_vm1, %v6578_v6  ;;  %5251 = vmatprep.mubr.msk.f32.mxu0 %vm6577_vm1, %v6578_v6 }
  0x90   : > { %8771 = vst [vmem:[#allocation35_spill] sm:$0xff] %v7076_v20  ;;  %v838_v59 = vsub.f32 %v7062_v49, %v837_v52  ;;  %v229_v49 = vld [vmem:[%s6660_s30 + $0x128] sm:$0xff] }
  0x91   : > { %v377_v45 = vsel %vm264_vm2, %v229_v49, 0  ;;  %v7125_v49 = vsub.f32 %v374_v40, %v7111_v17  ;;  %v231_v40 = vld [vmem:[%s6660_s30 + $0x138] sm:$0xff] }
  0x92   : > { %4670 = vmatmul.mubr.f32.gmra.mrb[54].mxu1 %v799_v10  ;;  %5252 = vmatmul.mubr.f32.gmra.mrb[56].mxu0 %v807_v16  ;;  %v819_v10 = vand.u32 4294901760, %v818_v57  ;;  %v368_v16 = vsel %vm264_vm2, %v226_v61, 0  ;;  %v847_v57 = vand.u32 4294901760, %v7076_v20 }
  0x93   : > { %4672 = vmatprep.mubr.msk.f32.mxu1 %vm6577_vm1, %v6578_v6  ;;  %5254 = vmatprep.mubr.msk.f32.mxu0 %vm6577_vm1, %v6578_v6  ;;  %v7085_v61 = vand.u32 4294901760, %v368_v16  ;;  %8775 = vst [vmem:[#allocation39_spill] sm:$0xff] %v7125_v49 }
  0x96   : > { %4673 = vmatmul.mubr.f32.gmra.mrb[56].mxu1 %v809_v33  ;;  %5255 = vmatmul.mubr.f32.gmra.mrb[58].mxu0 %v817_v4  ;;  %v829_v4 = vand.u32 4294901760, %v828_v2  ;;  %v7091_v33 = vsub.f32 %v365_v36, %v7078_v51  ;;  %v7104_v2 = vsub.f32 %v368_v16, %v7085_v61 }
  0x97   : > { %4675 = vmatprep.mubr.msk.f32.mxu1 %vm6577_vm1, %v6578_v6  ;;  %5257 = vmatprep.mubr.msk.f32.mxu0 %vm6577_vm1, %v6578_v6 }
  0x98   : > { %8772 = vst [vmem:[#allocation36_spill] sm:$0xff] %v7091_v33  ;;  %v857_v36 = vand.u32 4294901760, %v7091_v33  ;;  %8773 = vst [vmem:[#allocation37_spill] sm:$0xff] %v7104_v2  ;;  %v867_v16 = vand.u32 4294901760, %v7104_v2 }
  0x9a   : > { %4676 = vmatmul.mubr.f32.gmra.mrb[58].mxu1 %v819_v10  ;;  %5258 = vmatmul.mubr.f32.gmra.mrb[60].mxu0 %v827_v30  ;;  %v839_v30 = vand.u32 4294901760, %v838_v59  ;;  %v848_v10 = vsub.f32 %v7076_v20, %v847_v57  ;;  %v7117_v59 = vsub.f32 %v371_v63, %v7098_v31  ;;  %v230_v20 = vld [vmem:[%s6660_s30 + $0x130] sm:$0xff] }
  0x9b   : > { %4678 = vmatprep.mubr.msk.f32.mxu1 %vm6577_vm1, %v6578_v6  ;;  %5260 = vmatprep.mubr.msk.f32.mxu0 %vm6577_vm1, %v6578_v6 }
  0x9c   : > { %8774 = vst [vmem:[#allocation38_spill] sm:$0xff] %v7117_v59  ;;  %v877_v63 = vand.u32 4294901760, %v7117_v59 }
  0x9e   : > { %4679 = vmatmul.mubr.f32.gmra.mrb[60].mxu1 %v829_v4  ;;  %5261 = vmatmul.mubr.f32.gmra.mrb[62].mxu0 %v837_v52  ;;  %v849_v52 = vand.u32 4294901760, %v848_v10  ;;  %v858_v4 = vsub.f32 %v7091_v33, %v857_v36  ;;  %v868_v10 = vsub.f32 %v7104_v2, %v867_v16  ;;  %v380_v33 = vsel %vm264_vm2, %v230_v20, 0 }
  0x9f   : > { %4681 = vmatprep.mubr.msk.f32.mxu1 %vm6577_vm1, %v6578_v6  ;;  %5263 = vmatprep.mubr.msk.f32.mxu0 %vm6577_vm1, %v6578_v6  ;;  %v7137_v3 = vand.u32 4294901760, %v380_v33  ;;  %v383_v20 = vsel %vm264_vm2, %v231_v40, 0  ;;  %v386_v40 = vsel %vm264_vm2, %v232_v0, 0 }
  0xa0   : > { %v7168_v53 = vand.u32 4294901760, %v386_v40 }
  0xa2   : > { %4682 = vmatmul.mubr.f32.gmra.mrb[62].mxu1 %v839_v30  ;;  %5264 = vmatmul.mubr.f32.gmra.mrb[64].mxu0 %v847_v57  ;;  %v7127_v57 = vand.u32 4294901760, %v377_v45  ;;  %v859_v30 = vand.u32 4294901760, %v858_v4  ;;  %v887_v4 = vand.u32 4294901760, %v7125_v49 }
  0xa3   : > { %4684 = vmatprep.mubr.msk.f32.mxu1 %vm6577_vm1, %v6578_v6  ;;  %5266 = vmatprep.mubr.msk.f32.mxu0 %vm6577_vm1, %v6578_v6 }
  0xa4   : > { %v7142_v2 = vsub.f32 %v377_v45, %v7127_v57 }
  0xa6   : > { %4685 = vmatmul.mubr.f32.gmra.mrb[64].mxu1 %v849_v52  ;;  %5267 = vmatmul.mubr.f32.gmra.mrb[66].mxu0 %v857_v36  ;;  %v869_v36 = vand.u32 4294901760, %v868_v10  ;;  %v878_v52 = vsub.f32 %v7117_v59, %v877_v63  ;;  %8776 = vst [vmem:[#allocation40_spill] sm:$0xff] %v7142_v2  ;;  %v888_v10 = vsub.f32 %v7125_v49, %v887_v4  ;;  %v897_v45 = vand.u32 4294901760, %v7142_v2 }
  0xa7   : > { %4687 = vmatprep.mubr.msk.f32.mxu1 %vm6577_vm1, %v6578_v6  ;;  %5269 = vmatprep.mubr.msk.f32.mxu0 %vm6577_vm1, %v6578_v6  ;;  %v7155_v59 = vand.u32 4294901760, %v383_v20 }
  0xa9   : > { %v7166_v49 = vsub.f32 %v383_v20, %v7155_v59 }
  0xaa   : > { %4688 = vmatmul.mubr.f32.gmra.mrb[66].mxu1 %v859_v30  ;;  %5270 = vmatmul.mubr.f32.gmra.mrb[68].mxu0 %v867_v16  ;;  %v7151_v16 = vsub.f32 %v380_v33, %v7137_v3  ;;  %v879_v30 = vand.u32 4294901760, %v878_v52  ;;  %v233_v33 = vld [vmem:[%s6660_s30 + $0x148] sm:$0xff]  ;;  %v898_v52 = vsub.f32 %v7142_v2, %v897_v45  ;;  %v7180_v2 = vsub.f32 %v386_v40, %v7168_v53 }
  0xab   : > { %4690 = vmatprep.mubr.msk.f32.mxu1 %vm6577_vm1, %v6578_v6  ;;  %5272 = vmatprep.mubr.msk.f32.mxu0 %vm6577_vm1, %v6578_v6  ;;  %8778 = vst [vmem:[#allocation42_spill] sm:$0xff] %v7166_v49  ;;  %v389_v0 = vsel %vm264_vm2, %v233_v33, 0  ;;  %v235_v33 = vld [vmem:[%s6660_s30 + $0x158] sm:$0xff] }
  0xac   : > { %8777 = vst [vmem:[#allocation41_spill] sm:$0xff] %v7151_v16  ;;  %v899_v20 = vand.u32 4294901760, %v898_v52  ;;  %8779 = vst [vmem:[#allocation43_spill] sm:$0xff] %v7180_v2  ;;  %v7182_v42 = vand.u32 4294901760, %v389_v0  ;;  %v927_v40 = vand.u32 4294901760, %v7180_v2  ;;  %v236_v52 = vld [vmem:[%s6660_s30 + $0x160] sm:$0xff] }
  0xad   : > { %v395_v29 = vsel %vm264_vm2, %v235_v33, 0  ;;  %v401_v33 = vsel %vm264_vm2, %v237_v27, 0 }
  0xae   : > { %4691 = vmatmul.mubr.f32.gmra.mrb[68].mxu1 %v869_v36  ;;  %5273 = vmatmul.mubr.f32.gmra.mrb[70].mxu0 %v877_v63  ;;  %v907_v36 = vand.u32 4294901760, %v7151_v16  ;;  %v889_v63 = vand.u32 4294901760, %v888_v10  ;;  %v917_v10 = vand.u32 4294901760, %v7166_v49  ;;  %v7208_v28 = vand.u32 4294901760, %v395_v29 }
  0xaf   : > { %4693 = vmatprep.mubr.msk.f32.mxu1 %vm6577_vm1, %v6578_v6  ;;  %5275 = vmatprep.mubr.msk.f32.mxu0 %vm6577_vm1, %v6578_v6 }
  0xb0   : > { %8783 = vst [vmem:[#allocation47_spill] sm:$0xff] %v7208_v28 }
  0xb2   : > { %4694 = vmatmul.mubr.f32.gmra.mrb[70].mxu1 %v879_v30  ;;  %5276 = vmatmul.mubr.f32.gmra.mrb[72].mxu0 %v887_v4  ;;  %v908_v4 = vsub.f32 %v7151_v16, %v907_v36  ;;  %v392_v30 = vsel %vm264_vm2, %v234_v50, 0 }
  0xb3   : > { %4696 = vmatprep.mubr.msk.f32.mxu1 %vm6577_vm1, %v6578_v6  ;;  %5278 = vmatprep.mubr.msk.f32.mxu0 %vm6577_vm1, %v6578_v6  ;;  %v7189_v16 = vand.u32 4294901760, %v392_v30 }
  0xb4   : > { %v909_v50 = vand.u32 4294901760, %v908_v4  ;;  %v398_v4 = vsel %vm264_vm2, %v236_v52, 0  ;;  %v7221_v52 = vsub.f32 %v395_v29, %v7208_v28 }
  0xb5   : > { %8780 = vst [vmem:[#allocation44_spill] sm:$0xff] %v7189_v16 }
  0xb6   : > { %4697 = vmatmul.mubr.f32.gmra.mrb[72].mxu1 %v889_v63  ;;  %5279 = vmatmul.mubr.f32.gmra.mrb[74].mxu0 %v897_v45  ;;  %v918_v45 = vsub.f32 %v7166_v49, %v917_v10  ;;  %v7194_v63 = vsub.f32 %v389_v0, %v7182_v42  ;;  %v928_v0 = vsub.f32 %v7180_v2, %v927_v40  ;;  %v238_v2 = vld [vmem:[%s6660_s30 + $0x170] sm:$0xff]  ;;  %v957_v29 = vand.u32 4294901760, %v7221_v52 }
  0xb7   : > { %4699 = vmatprep.mubr.msk.f32.mxu1 %vm6577_vm1, %v6578_v6  ;;  %5281 = vmatprep.mubr.msk.f32.mxu0 %vm6577_vm1, %v6578_v6  ;;  %8785 = vst [vmem:[#allocation49_spill] sm:$0xff] %v7221_v52 }
  0xb8   : > { %8781 = vst [vmem:[#allocation45_spill] sm:$0xff] %v7194_v63  ;;  %v937_v49 = vand.u32 4294901760, %v7194_v63 }
  0xba   : > { %4700 = vmatmul.mubr.f32.gmra.mrb[74].mxu1 %v899_v20  ;;  %5282 = vmatmul.mubr.f32.gmra.mrb[76].mxu0 %v907_v36  ;;  %v7203_v36 = vsub.f32 %v392_v30, %v7189_v16  ;;  %v919_v20 = vand.u32 4294901760, %v918_v45  ;;  %v7215_v30 = vand.u32 4294901760, %v398_v4 }
  0xbb   : > { %4702 = vmatprep.mubr.msk.f32.mxu1 %vm6577_vm1, %v6578_v6  ;;  %5284 = vmatprep.mubr.msk.f32.mxu0 %vm6577_vm1, %v6578_v6 }
  0xbc   : > { %8782 = vst [vmem:[#allocation46_spill] sm:$0xff] %v7203_v36  ;;  %8784 = vst [vmem:[#allocation48_spill] sm:$0xff] %v7215_v30  ;;  %v947_v45 = vand.u32 4294901760, %v7203_v36  ;;  %v7229_v27 = vsub.f32 %v398_v4, %v7215_v30  ;;  %v239_v4 = vld [vmem:[%s6660_s30 + $0x178] sm:$0xff] }
  0xbe   : > { %4703 = vmatmul.mubr.f32.gmra.mrb[76].mxu1 %v909_v50  ;;  %5285 = vmatmul.mubr.f32.gmra.mrb[78].mxu0 %v917_v10  ;;  %v929_v10 = vand.u32 4294901760, %v928_v0  ;;  %v938_v50 = vsub.f32 %v7194_v63, %v937_v49  ;;  %8786 = vst [vmem:[#allocation50_spill] sm:$0xff] %v7229_v27  ;;  %v948_v0 = vsub.f32 %v7203_v36, %v947_v45  ;;  %v404_v63 = vsel %vm264_vm2, %v238_v2, 0 }
  0xbf   : > { %4705 = vmatprep.mubr.msk.f32.mxu1 %vm6577_vm1, %v6578_v6  ;;  %5287 = vmatprep.mubr.msk.f32.mxu0 %vm6577_vm1, %v6578_v6  ;;  %v967_v2 = vand.u32 4294901760, %v7229_v27  ;;  %v407_v36 = vsel %vm264_vm2, %v239_v4, 0  ;;  %v241_v4 = vld [vmem:[%s6660_s30 + $0x188] sm:$0xff] }
  0xc2   : > { %4706 = vmatmul.mubr.f32.gmra.mrb[78].mxu1 %v919_v20  ;;  %5288 = vmatmul.mubr.f32.gmra.mrb[80].mxu0 %v927_v40  ;;  %v7231_v40 = vand.u32 4294901760, %v401_v33  ;;  %v939_v20 = vand.u32 4294901760, %v938_v50  ;;  %v958_v50 = vsub.f32 %v7221_v52, %v957_v29  ;;  %v7259_v52 = vand.u32 4294901760, %v407_v36 }
  0xc3   : > { %4708 = vmatprep.mubr.msk.f32.mxu1 %vm6577_vm1, %v6578_v6  ;;  %5290 = vmatprep.mubr.msk.f32.mxu0 %vm6577_vm1, %v6578_v6 }
  0xc4   : > { %8787 = vst [vmem:[#allocation51_spill] sm:$0xff] %v7231_v40  ;;  %v7242_v30 = vsub.f32 %v401_v33, %v7231_v40  ;;  %v240_v33 = vld [vmem:[%s6660_s30 + $0x180] sm:$0xff]  ;;  %8791 = vst [vmem:[#allocation55_spill] sm:$0xff] %v7259_v52 }
  0xc5   : > { %v410_v28 = vsel %vm264_vm2, %v240_v33, 0  ;;  %v413_v33 = vsel %vm264_vm2, %v241_v4, 0  ;;  %v243_v4 = vld [vmem:[%s6660_s30 + $0x198] sm:$0xff] }
  0xc6   : > { %4709 = vmatmul.mubr.f32.gmra.mrb[80].mxu1 %v929_v10  ;;  %5291 = vmatmul.mubr.f32.gmra.mrb[82].mxu0 %v937_v49  ;;  %8788 = vst [vmem:[#allocation52_spill] sm:$0xff] %v7242_v30  ;;  %v7244_v10 = vand.u32 4294901760, %v404_v63  ;;  %v949_v49 = vand.u32 4294901760, %v948_v0  ;;  %v977_v40 = vand.u32 4294901760, %v7242_v30  ;;  %v968_v0 = vsub.f32 %v7229_v27, %v967_v2 }
  0xc7   : > { %4711 = vmatprep.mubr.msk.f32.mxu1 %vm6577_vm1, %v6578_v6  ;;  %5293 = vmatprep.mubr.msk.f32.mxu0 %vm6577_vm1, %v6578_v6 }
  0xc8   : > { %8789 = vst [vmem:[#allocation53_spill] sm:$0xff] %v7244_v10 }
  0xca   : > { %4712 = vmatmul.mubr.f32.gmra.mrb[82].mxu1 %v939_v20  ;;  %5294 = vmatmul.mubr.f32.gmra.mrb[84].mxu0 %v947_v45  ;;  %v7256_v20 = vsub.f32 %v404_v63, %v7244_v10  ;;  %v959_v45 = vand.u32 4294901760, %v958_v50  ;;  %v978_v63 = vsub.f32 %v7242_v30, %v977_v40  ;;  %v7268_v10 = vand.u32 4294901760, %v410_v28  ;;  %v242_v30 = vld [vmem:[%s6660_s30 + $0x190] sm:$0xff] }
  0xcb   : > { %4714 = vmatprep.mubr.msk.f32.mxu1 %vm6577_vm1, %v6578_v6  ;;  %5296 = vmatprep.mubr.msk.f32.mxu0 %vm6577_vm1, %v6578_v6  ;;  %v7272_v50 = vsub.f32 %v407_v36, %v7259_v52  ;;  %v416_v52 = vsel %vm264_vm2, %v242_v30, 0  ;;  %v419_v30 = vsel %vm264_vm2, %v243_v4, 0 }
  0xcc   : > { %8790 = vst [vmem:[#allocation54_spill] sm:$0xff] %v7256_v20  ;;  %8792 = vst [vmem:[#allocation56_spill] sm:$0xff] %v7268_v10  ;;  %v979_v27 = vand.u32 4294901760, %v978_v63  ;;  %v7294_v63 = vand.u32 4294901760, %v416_v52 }
  0xcd   : > { %8793 = vst [vmem:[#allocation57_spill] sm:$0xff] %v7272_v50  ;;  %v997_v36 = vand.u32 4294901760, %v7272_v50 }
  0xce   : > { %4715 = vmatmul.mubr.f32.gmra.mrb[84].mxu1 %v949_v49  ;;  %5297 = vmatmul.mubr.f32.gmra.mrb[86].mxu0 %v957_v29  ;;  %v969_v29 = vand.u32 4294901760, %v968_v0  ;;  %v987_v49 = vand.u32 4294901760, %v7256_v20  ;;  %v7285_v0 = vand.u32 4294901760, %v413_v33  ;;  %8795 = vst [vmem:[#allocation59_spill] sm:$0xff] %v7294_v63 }
  0xcf   : > { %4717 = vmatprep.mubr.msk.f32.mxu1 %vm6577_vm1, %v6578_v6  ;;  %5299 = vmatprep.mubr.msk.f32.mxu0 %vm6577_vm1, %v6578_v6 }
  0xd2   : > { %4718 = vmatmul.mubr.f32.gmra.mrb[86].mxu1 %v959_v45  ;;  %5300 = vmatmul.mubr.f32.gmra.mrb[88].mxu0 %v967_v2  ;;  %v7281_v45 = vsub.f32 %v410_v28, %v7268_v10  ;;  %v988_v2 = vsub.f32 %v7256_v20, %v987_v49  ;;  %v7298_v20 = vsub.f32 %v413_v33, %v7285_v0  ;;  %v244_v10 = vld [vmem:[%s6660_s30 + $0x1a0] sm:$0xff] }
  0xd3   : > { %4720 = vmatprep.mubr.msk.f32.mxu1 %vm6577_vm1, %v6578_v6  ;;  %5302 = vmatprep.mubr.msk.f32.mxu0 %vm6577_vm1, %v6578_v6  ;;  %v422_v4 = vsel %vm264_vm2, %v244_v10, 0 }
  0xd4   : > { %8794 = vst [vmem:[#allocation58_spill] sm:$0xff] %v7281_v45  ;;  %v1007_v28 = vand.u32 4294901760, %v7281_v45  ;;  %8796 = vst [vmem:[#allocation60_spill] sm:$0xff] %v7298_v20  ;;  %v1017_v33 = vand.u32 4294901760, %v7298_v20 }
  0xd6   : > { %4721 = vmatmul.mubr.f32.gmra.mrb[88].mxu1 %v969_v29  ;;  %5303 = vmatmul.mubr.f32.gmra.mrb[90].mxu0 %v977_v40  ;;  %v989_v40 = vand.u32 4294901760, %v988_v2  ;;  %v998_v29 = vsub.f32 %v7272_v50, %v997_v36  ;;  %v1008_v16 = vsub.f32 %v7281_v45, %v1007_v28  ;;  %v7311_v2 = vand.u32 4294901760, %v419_v30  ;;  %v245_v45 = vld [vmem:[%s6660_s30 + $0x1a8] sm:$0xff] }
  0xd7   : > { %4723 = vmatprep.mubr.msk.f32.mxu1 %vm6577_vm1, %v6578_v6  ;;  %5305 = vmatprep.mubr.msk.f32.mxu0 %vm6577_vm1, %v6578_v6 }
  0xd8   : > { %8798 = vst [vmem:[#allocation62_spill] sm:$0xff] %v7311_v2  ;;  %v1009_v50 = vand.u32 4294901760, %v1008_v16  ;;  %v246_v16 = vld [vmem:[%s6660_s30 + $0x1b0] sm:$0xff] }
  0xda   : > { %4724 = vmatmul.mubr.f32.gmra.mrb[90].mxu1 %v979_v27  ;;  %5306 = vmatmul.mubr.f32.gmra.mrb[92].mxu0 %v987_v49  ;;  %v7308_v27 = vsub.f32 %v416_v52, %v7294_v63  ;;  %v999_v49 = vand.u32 4294901760, %v998_v29  ;;  %v7324_v29 = vand.u32 4294901760, %v422_v4  ;;  %v425_v63 = vsel %vm264_vm2, %v245_v45, 0 }
  0xdb   : > { %4726 = vmatprep.mubr.msk.f32.mxu1 %vm6577_vm1, %v6578_v6  ;;  %5308 = vmatprep.mubr.msk.f32.mxu0 %vm6577_vm1, %v6578_v6  ;;  %v428_v45 = vsel %vm264_vm2, %v246_v16, 0 }
  0xdc   : > { %8797 = vst [vmem:[#allocation61_spill] sm:$0xff] %v7308_v27  ;;  %v1027_v52 = vand.u32 4294901760, %v7308_v27  ;;  %8800 = vst [vmem:[#allocation64_spill] sm:$0xff] %v7324_v29 }
  0xde   : > { %4727 = vmatmul.mubr.f32.gmra.mrb[92].mxu1 %v989_v40  ;;  %5309 = vmatmul.mubr.f32.gmra.mrb[94].mxu0 %v997_v36  ;;  %v1018_v36 = vsub.f32 %v7298_v20, %v1017_v33  ;;  %v7322_v40 = vsub.f32 %v419_v30, %v7311_v2  ;;  %v1028_v10 = vsub.f32 %v7308_v27, %v1027_v52  ;;  %v247_v27 = vld [vmem:[%s6660_s30 + $0x1b8] sm:$0xff] }
  0xdf   : > { %4729 = vmatprep.mubr.msk.f32.mxu1 %vm6577_vm1, %v6578_v6  ;;  %5311 = vmatprep.mubr.msk.f32.mxu0 %vm6577_vm1, %v6578_v6  ;;  %v7337_v20 = vsub.f32 %v422_v4, %v7324_v29  ;;  %v431_v16 = vsel %vm264_vm2, %v247_v27, 0  ;;  %v249_v29 = vld [vmem:[%s6660_s30 + $0x1c8] sm:$0xff] }
  0xe0   : > { %8799 = vst [vmem:[#allocation63_spill] sm:$0xff] %v7322_v40  ;;  %v1019_v30 = vand.u32 4294901760, %v1018_v36 }
  0xe1   : > { %8802 = vst [vmem:[#allocation66_spill] sm:$0xff] %v7337_v20  ;;  %v1047_v36 = vand.u32 4294901760, %v7337_v20 }
  0xe2   : > { %4730 = vmatmul.mubr.f32.gmra.mrb[94].mxu1 %v999_v49  ;;  %5312 = vmatmul.mubr.f32.gmra.mrb[96].mxu0 %v1007_v28  ;;  %v7333_v28 = vand.u32 4294901760, %v425_v63  ;;  %v1037_v49 = vand.u32 4294901760, %v7322_v40 }
  0xe3   : > { %4732 = vmatprep.mubr.msk.f32.mxu1 %vm6577_vm1, %v6578_v6  ;;  %5314 = vmatprep.mubr.msk.f32.mxu0 %vm6577_vm1, %v6578_v6 }
  0xe4   : > { %8801 = vst [vmem:[#allocation65_spill] sm:$0xff] %v7333_v28  ;;  %v7346_v2 = vsub.f32 %v425_v63, %v7333_v28  ;;  %v1038_v4 = vsub.f32 %v7322_v40, %v1037_v49  ;;  %v248_v63 = vld [vmem:[%s6660_s30 + $0x1c0] sm:$0xff]  ;;  %v7363_v40 = vand.u32 4294901760, %v431_v16 }
  0xe5   : > { %v434_v27 = vsel %vm264_vm2, %v248_v63, 0  ;;  %v437_v63 = vsel %vm264_vm2, %v249_v29, 0  ;;  %v251_v29 = vld [vmem:[%s6660_s30 + $0x1d8] sm:$0xff] }
  0xe6   : > { %4733 = vmatmul.mubr.f32.gmra.mrb[96].mxu1 %v1009_v50  ;;  %5315 = vmatmul.mubr.f32.gmra.mrb[98].mxu0 %v1017_v33  ;;  %8803 = vst [vmem:[#allocation67_spill] sm:$0xff] %v7346_v2  ;;  %v7348_v50 = vand.u32 4294901760, %v428_v45  ;;  %v1029_v33 = vand.u32 4294901760, %v1028_v10  ;;  %v1057_v28 = vand.u32 4294901760, %v7346_v2  ;;  %v1048_v10 = vsub.f32 %v7337_v20, %v1047_v36  ;;  %8806 = vst [vmem:[#allocation70_spill] sm:$0xff] %v7363_v40 }
  0xe7   : > { %4735 = vmatprep.mubr.msk.f32.mxu1 %vm6577_vm1, %v6578_v6  ;;  %5317 = vmatprep.mubr.msk.f32.mxu0 %vm6577_vm1, %v6578_v6  ;;  %v7376_v20 = vand.u32 4294901760, %v434_v27 }
  0xe8   : > { %8804 = vst [vmem:[#allocation68_spill] sm:$0xff] %v7348_v50 }
  0xe9   : > { %8808 = vst [vmem:[#allocation72_spill] sm:$0xff] %v7376_v20 }
  0xea   : > { %4736 = vmatmul.mubr.f32.gmra.mrb[98].mxu1 %v1019_v30  ;;  %5318 = vmatmul.mubr.f32.gmra.mrb[100].mxu0 %v1027_v52  ;;  %v7360_v30 = vsub.f32 %v428_v45, %v7348_v50  ;;  %v1039_v52 = vand.u32 4294901760, %v1038_v4  ;;  %v1058_v45 = vsub.f32 %v7346_v2, %v1057_v28  ;;  %v7374_v4 = vsub.f32 %v431_v16, %v7363_v40  ;;  %v250_v2 = vld [vmem:[%s6660_s30 + $0x1d0] sm:$0xff] }
  0xeb   : > { %4738 = vmatprep.mubr.msk.f32.mxu1 %vm6577_vm1, %v6578_v6  ;;  %5320 = vmatprep.mubr.msk.f32.mxu0 %vm6577_vm1, %v6578_v6  ;;  %v7387_v16 = vsub.f32 %v434_v27, %v7376_v20  ;;  %v440_v40 = vsel %vm264_vm2, %v250_v2, 0  ;;  %v443_v2 = vsel %vm264_vm2, %v251_v29, 0  ;;  %v252_v20 = vld [vmem:[%s6660_s30 + $0x1e0] sm:$0xff] }
  0xec   : > { %8805 = vst [vmem:[#allocation69_spill] sm:$0xff] %v7360_v30  ;;  %8807 = vst [vmem:[#allocation71_spill] sm:$0xff] %v7374_v4  ;;  %v1059_v50 = vand.u32 4294901760, %v1058_v45  ;;  %v7397_v45 = vand.u32 4294901760, %v440_v40  ;;  %v446_v29 = vsel %vm264_vm2, %v252_v20, 0 }
  0xed   : > { %8809 = vst [vmem:[#allocation73_spill] sm:$0xff] %v7387_v16 }
  0xee   : > { %4739 = vmatmul.mubr.f32.gmra.mrb[100].mxu1 %v1029_v33  ;;  %5321 = vmatmul.mubr.f32.gmra.mrb[102].mxu0 %v1037_v49  ;;  %v1067_v33 = vand.u32 4294901760, %v7360_v30  ;;  %v1049_v49 = vand.u32 4294901760, %v1048_v10  ;;  %v7389_v10 = vand.u32 4294901760, %v437_v63  ;;  %8811 = vst [vmem:[#allocation75_spill] sm:$0xff] %v7397_v45 }
  0xef   : > { %4741 = vmatprep.mubr.msk.f32.mxu1 %vm6577_vm1, %v6578_v6  ;;  %5323 = vmatprep.mubr.msk.f32.mxu0 %vm6577_vm1, %v6578_v6 }
  0xf0   : > { %8810 = vst [vmem:[#allocation74_spill] sm:$0xff] %v7389_v10 }
  0xf2   : > { %4742 = vmatmul.mubr.f32.gmra.mrb[102].mxu1 %v1039_v52  ;;  %5324 = vmatmul.mubr.f32.gmra.mrb[104].mxu0 %v1047_v36  ;;  %v1068_v52 = vsub.f32 %v7360_v30, %v1067_v33  ;;  %v1077_v36 = vand.u32 4294901760, %v7374_v4  ;;  %v7402_v30 = vsub.f32 %v437_v63, %v7389_v10  ;;  %v254_v10 = vld [vmem:[%s6660_s30 + $0x1f0] sm:$0xff] }
  0xf3   : > { %4744 = vmatprep.mubr.msk.f32.mxu1 %vm6577_vm1, %v6578_v6  ;;  %5326 = vmatprep.mubr.msk.f32.mxu0 %vm6577_vm1, %v6578_v6 }
  0xf4   : > { %v1078_v27 = vsub.f32 %v7374_v4, %v1077_v36  ;;  %8812 = vst [vmem:[#allocation76_spill] sm:$0xff] %v7402_v30  ;;  %v1097_v63 = vand.u32 4294901760, %v7402_v30  ;;  %v7415_v4 = vand.u32 4294901760, %v443_v2 }
  0xf6   : > { %4745 = vmatmul.mubr.f32.gmra.mrb[104].mxu1 %v1049_v49  ;;  %5327 = vmatmul.mubr.f32.gmra.mrb[106].mxu0 %v1057_v28  ;;  %v1069_v28 = vand.u32 4294901760, %v1068_v52  ;;  %v1087_v49 = vand.u32 4294901760, %v7387_v16  ;;  %8814 = vst [vmem:[#allocation78_spill] sm:$0xff] %v7415_v4 }
  0xf7   : > { %4747 = vmatprep.mubr.msk.f32.mxu1 %vm6577_vm1, %v6578_v6  ;;  %5329 = vmatprep.mubr.msk.f32.mxu0 %vm6577_vm1, %v6578_v6 }
  0xf8   : > { %v1088_v52 = vsub.f32 %v7387_v16, %v1087_v49  ;;  %v7426_v16 = vsub.f32 %v443_v2, %v7415_v4 }
  0xfa   : > { %4748 = vmatmul.mubr.f32.gmra.mrb[106].mxu1 %v1059_v50  ;;  %5330 = vmatmul.mubr.f32.gmra.mrb[108].mxu0 %v1067_v33  ;;  %v7411_v50 = vsub.f32 %v440_v40, %v7397_v45  ;;  %v1079_v33 = vand.u32 4294901760, %v1078_v27  ;;  %v253_v40 = vld [vmem:[%s6660_s30 + $0x1e8] sm:$0xff]  ;;  %v1098_v27 = vsub.f32 %v7402_v30, %v1097_v63  ;;  %8815 = vst [vmem:[#allocation79_spill] sm:$0xff] %v7426_v16  ;;  %v7428_v45 = vand.u32 4294901760, %v446_v29 }
  0xfb   : > { %4750 = vmatprep.mubr.msk.f32.mxu1 %vm6577_vm1, %v6578_v6  ;;  %5332 = vmatprep.mubr.msk.f32.mxu0 %vm6577_vm1, %v6578_v6  ;;  %v449_v20 = vsel %vm264_vm2, %v253_v40, 0  ;;  %v452_v40 = vsel %vm264_vm2, %v254_v10, 0 }
  0xfc   : > { %8813 = vst [vmem:[#allocation77_spill] sm:$0xff] %v7411_v50  ;;  %8816 = vst [vmem:[#allocation80_spill] sm:$0xff] %v7428_v45  ;;  %v7439_v2 = vsub.f32 %v446_v29, %v7428_v45  ;;  %v7441_v30 = vand.u32 4294901760, %v449_v20 }
  0xfe   : > { %4751 = vmatmul.mubr.f32.gmra.mrb[108].mxu1 %v1069_v28  ;;  %5333 = vmatmul.mubr.f32.gmra.mrb[110].mxu0 %v1077_v36  ;;  %v1107_v28 = vand.u32 4294901760, %v7411_v50  ;;  %v1089_v36 = vand.u32 4294901760, %v1088_v52  ;;  %v1117_v52 = vand.u32 4294901760, %v7426_v16  ;;  %8817 = vst [vmem:[#allocation81_spill] sm:$0xff] %v7439_v2  ;;  %8818 = vst [vmem:[#allocation82_spill] sm:$0xff] %v7441_v30  ;;  %v7451_v29 = vsub.f32 %v449_v20, %v7441_v30 }
  0xff   : > { %4753 = vmatprep.mubr.msk.f32.mxu1 %vm6577_vm1, %v6578_v6  ;;  %5335 = vmatprep.mubr.msk.f32.mxu0 %vm6577_vm1, %v6578_v6 }
 0x100   : > { %8819 = vst [vmem:[#allocation83_spill] sm:$0xff] %v7451_v29 }
 0x102   : > { %4754 = vmatmul.mubr.f32.gmra.mrb[110].mxu1 %v1079_v33  ;;  %5336 = vmatmul.mubr.f32.gmra.mrb[112].mxu0 %v1087_v49  ;;  %v1108_v33 = vsub.f32 %v7411_v50, %v1107_v28  ;;  %v1099_v49 = vand.u32 4294901760, %v1098_v27  ;;  %v7453_v27 = vand.u32 4294901760, %v452_v40  ;;  %v8837_v50 = vld [vmem:[#allocation78_spill] sm:$0xff] }
 0x103   : > { %4756 = vmatprep.mubr.msk.f32.mxu1 %vm6577_vm1, %v6578_v6  ;;  %5338 = vmatprep.mubr.msk.f32.mxu0 %vm6577_vm1, %v6578_v6 }
 0x104   : > { %v1109_v4 = vand.u32 4294901760, %v1108_v33  ;;  %v1137_v33 = vand.u32 4294901760, %v7451_v29 }
 0x106   : > { %4757 = vmatmul.mubr.f32.gmra.mrb[112].mxu1 %v1089_v36  ;;  %5339 = vmatmul.mubr.f32.gmra.mrb[114].mxu0 %v1097_v63  ;;  %v1118_v63 = vsub.f32 %v7426_v16, %v1117_v52  ;;  %v1127_v36 = vand.u32 4294901760, %v7439_v2  ;;  %v8836_v16 = vld [vmem:[#allocation75_spill] sm:$0xff] }
 0x107   : > { %4759 = vmatprep.mubr.msk.f32.mxu1 %vm6577_vm1, %v6578_v6  ;;  %5341 = vmatprep.mubr.msk.f32.mxu0 %vm6577_vm1, %v6578_v6 }
 0x108   : > { %v1119_v10 = vand.u32 4294901760, %v1118_v63 }
 0x10a   : > { %4760 = vmatmul.mubr.f32.gmra.mrb[114].mxu1 %v1099_v49  ;;  %5342 = vmatmul.mubr.f32.gmra.mrb[116].mxu0 %v1107_v28  ;;  %v1128_v28 = vsub.f32 %v7439_v2, %v1127_v36  ;;  %v7462_v49 = vsub.f32 %v452_v40, %v7453_v27  ;;  %v8835_v2 = vld [vmem:[#allocation74_spill] sm:$0xff] }
 0x10b   : > { %4762 = vmatprep.mubr.msk.f32.mxu1 %vm6577_vm1, %v6578_v6  ;;  %5344 = vmatprep.mubr.msk.f32.mxu0 %vm6577_vm1, %v6578_v6 }
 0x10c   : > { %8820 = vst [vmem:[#allocation84_spill] sm:$0xff] %v7462_v49  ;;  %v1129_v20 = vand.u32 4294901760, %v1128_v28  ;;  %v8824_v28 = vld [vmem:[#allocation51_spill] sm:$0xff] }
 0x10e   : > { %4763 = vmatmul.mubr.f32.gmra.mrb[116].mxu1 %v1109_v4  ;;  %5345 = vmatmul.mubr.f32.gmra.mrb[118].mxu0 %v1117_v52  ;;  %v1138_v4 = vsub.f32 %v7451_v29, %v1137_v33  ;;  %v1147_v52 = vand.u32 4294901760, %v7462_v49  ;;  %v8834_v29 = vld [vmem:[#allocation72_spill] sm:$0xff] }
 0x10f   : > { %4765 = vmatprep.mubr.msk.f32.mxu1 %vm6577_vm1, %v6578_v6  ;;  %5347 = vmatprep.mubr.msk.f32.mxu0 %vm6577_vm1, %v6578_v6 }
 0x110   : > { %v1139_v40 = vand.u32 4294901760, %v1138_v4  ;;  %v1148_v63 = vsub.f32 %v7462_v49, %v1147_v52  ;;  %v8827_v4 = vld [vmem:[#allocation56_spill] sm:$0xff]  ;;  %v8833_v49 = vld [vmem:[#allocation70_spill] sm:$0xff] }
 0x112   : > { %4766 = vmatmul.mubr.f32.gmra.mrb[118].mxu1 %v1119_v10  ;;  %5348 = vmatmul.mubr.f32.gmra.mrb[120].mxu0 %v1127_v36  ;;  %v1149_v36 = vand.u32 4294901760, %v1148_v63  ;;  %v5749_v10 = vpack.c.bf16 %v6648_v9, %v6643_v7  ;;  %v8821_v7 = vld [vmem:[#allocation44_spill] sm:$0xff] }
 0x113   : > { %4768 = vmatprep.mubr.msk.f32.mxu1 %vm6577_vm1, %v6578_v6  ;;  %5350 = vmatprep.mubr.msk.f32.mxu0 %vm6577_vm1, %v6578_v6  ;;  %v8823_v9 = vld [vmem:[#allocation48_spill] sm:$0xff] }
 0x114   : > { %v8830_v63 = vld [vmem:[#allocation64_spill] sm:$0xff] }
 0x116   : > { %4769 = vmatmul.mubr.f32.gmra.mrb[120].mxu1 %v1129_v20  ;;  %5351 = vmatmul.mubr.f32.gmra.mrb[122].mxu0 %v1137_v33  ;;  %v8825_v33 = vld [vmem:[#allocation53_spill] sm:$0xff]  ;;  %v8826_v20 = vld [vmem:[#allocation55_spill] sm:$0xff] }
 0x117   : > { %4771 = vmatprep.mubr.msk.f32.mxu1 %vm6577_vm1, %v6578_v6  ;;  %5353 = vmatprep.mubr.msk.f32.mxu0 %vm6577_vm1, %v6578_v6 }
 0x11a   : > { %4772 = vmatmul.mubr.f32.gmra.mrb[122].mxu1 %v1139_v40  ;;  %5354 = vmatmul.mubr.f32.gmra.mrb[124].mxu0 %v1147_v52  ;;  %v8828_v52 = vld [vmem:[#allocation59_spill] sm:$0xff]  ;;  %v8829_v40 = vld [vmem:[#allocation62_spill] sm:$0xff] }
 0x11b   : > { %4774 = vmatprep.mubr.msk.f32.mxu1 %vm6577_vm1, %v6578_v6  ;;  %5360 = vmatprep.mubr.msk.f32.mxu0 %vm6577_vm1, %v6578_v6 }
 0x11e   : > { %4775 = vmatmul.mubr.f32.gmra.mrb[124].mxu1 %v1149_v36  ;;  %5361 = vmatmul.mubr.f32.vlgmr.msra.gmra.mrb[0].mxu0 %v6672_v22  ;;  %v8831_v36 = vld [vmem:[#allocation65_spill] sm:$0xff] }
 0x11f   : > { %4781 = vmatprep.mubr.msk.f32.mxu1 %vm6577_vm1, %v6578_v6  ;;  %5363 = vmatprep.mubr.msk.f32.mxu0 %vm6577_vm1, %v6578_v6 }
 0x120   : > { %5759 = vmatpush3.bf16.msra.mxu0 %v6646_v8  ;;  %v8822_v8 = vld [vmem:[#allocation47_spill] sm:$0xff] }
 0x122   : > { %4782 = vmatmul.mubr.f32.vlgmr.msra.gmra.mrb[0].mxu1 %v6672_v22  ;;  %5364 = vmatmul.mubr.f32.gmra.mrb[2].mxu0 %v6674_v23 }
 0x123   : > { %5750 = vmatpush3.bf16.msra.mxu1 %v5749_v10  ;;  %4784 = vmatprep.mubr.msk.f32.mxu1 %vm6577_vm1, %v6578_v6  ;;  %v8832_v10 = vld [vmem:[#allocation68_spill] sm:$0xff] }
 0x124   : > { %5366 = vmatprep.mubr.msk.f32.mxu0 %vm6577_vm1, %v6578_v6 }
 0x126   : > { %4785 = vmatmul.mubr.f32.gmra.mrb[2].mxu1 %v6674_v23  ;;  %5367 = vmatmul.mubr.f32.gmra.mrb[4].mxu0 %v6676_v24 }
 0x127   : > { %4787 = vmatprep.mubr.msk.f32.mxu1 %vm6577_vm1, %v6578_v6  ;;  %5369 = vmatprep.mubr.msk.f32.mxu0 %vm6577_vm1, %v6578_v6 }
 0x12a   : > { %4788 = vmatmul.mubr.f32.gmra.mrb[4].mxu1 %v6676_v24  ;;  %5370 = vmatmul.mubr.f32.gmra.mrb[6].mxu0 %v6679_v26 }
 0x12b   : > { %4790 = vmatprep.mubr.msk.f32.mxu1 %vm6577_vm1, %v6578_v6  ;;  %5372 = vmatprep.mubr.msk.f32.mxu0 %vm6577_vm1, %v6578_v6 }
 0x12e   : > { %4791 = vmatmul.mubr.f32.gmra.mrb[6].mxu1 %v6679_v26  ;;  %5373 = vmatmul.mubr.f32.gmra.mrb[8].mxu0 %v6694_v37 }
 0x12f   : > { %4793 = vmatprep.mubr.msk.f32.mxu1 %vm6577_vm1, %v6578_v6  ;;  %5375 = vmatprep.mubr.msk.f32.mxu0 %vm6577_vm1, %v6578_v6 }
 0x132   : > { %4794 = vmatmul.mubr.f32.gmra.mrb[8].mxu1 %v6694_v37  ;;  %5376 = vmatmul.mubr.f32.gmra.mrb[10].mxu0 %v6707_v46 }
 0x133   : > { %4796 = vmatprep.mubr.msk.f32.mxu1 %vm6577_vm1, %v6578_v6  ;;  %5378 = vmatprep.mubr.msk.f32.mxu0 %vm6577_vm1, %v6578_v6 }
 0x136   : > { %4797 = vmatmul.mubr.f32.gmra.mrb[10].mxu1 %v6707_v46  ;;  %5379 = vmatmul.mubr.f32.gmra.mrb[12].mxu0 %v6727_v58 }
 0x137   : > { %4799 = vmatprep.mubr.msk.f32.mxu1 %vm6577_vm1, %v6578_v6  ;;  %5381 = vmatprep.mubr.msk.f32.mxu0 %vm6577_vm1, %v6578_v6 }
 0x13a   : > { %4800 = vmatmul.mubr.f32.gmra.mrb[12].mxu1 %v6727_v58  ;;  %5382 = vmatmul.mubr.f32.gmra.mrb[14].mxu0 %v6734_v60 }
 0x13b   : > { %4802 = vmatprep.mubr.msk.f32.mxu1 %vm6577_vm1, %v6578_v6  ;;  %5384 = vmatprep.mubr.msk.f32.mxu0 %vm6577_vm1, %v6578_v6 }
 0x13e   : > { %4803 = vmatmul.mubr.f32.gmra.mrb[14].mxu1 %v6734_v60  ;;  %5385 = vmatmul.mubr.f32.gmra.mrb[16].mxu0 %v6752_v11 }
 0x13f   : > { %4805 = vmatprep.mubr.msk.f32.mxu1 %vm6577_vm1, %v6578_v6  ;;  %5387 = vmatprep.mubr.msk.f32.mxu0 %vm6577_vm1, %v6578_v6 }
 0x142   : > { %4806 = vmatmul.mubr.f32.gmra.mrb[16].mxu1 %v6752_v11  ;;  %5388 = vmatmul.mubr.f32.gmra.mrb[18].mxu0 %v6765_v18 }
 0x143   : > { %4808 = vmatprep.mubr.msk.f32.mxu1 %vm6577_vm1, %v6578_v6  ;;  %5390 = vmatprep.mubr.msk.f32.mxu0 %vm6577_vm1, %v6578_v6 }
 0x146   : > { %4809 = vmatmul.mubr.f32.gmra.mrb[18].mxu1 %v6765_v18  ;;  %5391 = vmatmul.mubr.f32.gmra.mrb[20].mxu0 %v6778_v32 }
 0x147   : > { %4811 = vmatprep.mubr.msk.f32.mxu1 %vm6577_vm1, %v6578_v6  ;;  %5393 = vmatprep.mubr.msk.f32.mxu0 %vm6577_vm1, %v6578_v6 }
 0x14a   : > { %4812 = vmatmul.mubr.f32.gmra.mrb[20].mxu1 %v6778_v32  ;;  %5394 = vmatmul.mubr.f32.gmra.mrb[22].mxu0 %v6792_v41 }
 0x14b   : > { %4814 = vmatprep.mubr.msk.f32.mxu1 %vm6577_vm1, %v6578_v6  ;;  %5396 = vmatprep.mubr.msk.f32.mxu0 %vm6577_vm1, %v6578_v6 }
 0x14e   : > { %4815 = vmatmul.mubr.f32.gmra.mrb[22].mxu1 %v6792_v41  ;;  %5397 = vmatmul.mubr.f32.gmra.mrb[24].mxu0 %v6799_v44 }
 0x14f   : > { %4817 = vmatprep.mubr.msk.f32.mxu1 %vm6577_vm1, %v6578_v6  ;;  %5399 = vmatprep.mubr.msk.f32.mxu0 %vm6577_vm1, %v6578_v6 }
 0x152   : > { %4818 = vmatmul.mubr.f32.gmra.mrb[24].mxu1 %v6799_v44  ;;  %5400 = vmatmul.mubr.f32.gmra.mrb[26].mxu0 %v6812_v54 }
 0x153   : > { %4820 = vmatprep.mubr.msk.f32.mxu1 %vm6577_vm1, %v6578_v6  ;;  %5402 = vmatprep.mubr.msk.f32.mxu0 %vm6577_vm1, %v6578_v6 }
 0x156   : > { %4821 = vmatmul.mubr.f32.gmra.mrb[26].mxu1 %v6812_v54  ;;  %5403 = vmatmul.mubr.f32.gmra.mrb[28].mxu0 %v6828_v1 }
 0x157   : > { %4823 = vmatprep.mubr.msk.f32.mxu1 %vm6577_vm1, %v6578_v6  ;;  %5405 = vmatprep.mubr.msk.f32.mxu0 %vm6577_vm1, %v6578_v6 }
 0x15a   : > { %4824 = vmatmul.mubr.f32.gmra.mrb[28].mxu1 %v6828_v1  ;;  %5406 = vmatmul.mubr.f32.gmra.mrb[30].mxu0 %v6843_v19 }
 0x15b   : > { %4826 = vmatprep.mubr.msk.f32.mxu1 %vm6577_vm1, %v6578_v6  ;;  %5408 = vmatprep.mubr.msk.f32.mxu0 %vm6577_vm1, %v6578_v6 }
 0x15e   : > { %4827 = vmatmul.mubr.f32.gmra.mrb[30].mxu1 %v6843_v19  ;;  %5409 = vmatmul.mubr.f32.gmra.mrb[32].mxu0 %v6856_v35 }
 0x15f   : > { %4829 = vmatprep.mubr.msk.f32.mxu1 %vm6577_vm1, %v6578_v6  ;;  %5411 = vmatprep.mubr.msk.f32.mxu0 %vm6577_vm1, %v6578_v6 }
 0x162   : > { %4830 = vmatmul.mubr.f32.gmra.mrb[32].mxu1 %v6856_v35  ;;  %5412 = vmatmul.mubr.f32.gmra.mrb[34].mxu0 %v6869_v48 }
 0x163   : > { %4832 = vmatprep.mubr.msk.f32.mxu1 %vm6577_vm1, %v6578_v6  ;;  %5414 = vmatprep.mubr.msk.f32.mxu0 %vm6577_vm1, %v6578_v6 }
 0x166   : > { %4833 = vmatmul.mubr.f32.gmra.mrb[34].mxu1 %v6869_v48  ;;  %5415 = vmatmul.mubr.f32.gmra.mrb[36].mxu0 %v6877_v56 }
 0x167   : > { %4835 = vmatprep.mubr.msk.f32.mxu1 %vm6577_vm1, %v6578_v6  ;;  %5417 = vmatprep.mubr.msk.f32.mxu0 %vm6577_vm1, %v6578_v6 }
 0x16a   : > { %4836 = vmatmul.mubr.f32.gmra.mrb[36].mxu1 %v6877_v56  ;;  %5418 = vmatmul.mubr.f32.gmra.mrb[38].mxu0 %v6890_v5 }
 0x16b   : > { %4838 = vmatprep.mubr.msk.f32.mxu1 %vm6577_vm1, %v6578_v6  ;;  %5420 = vmatprep.mubr.msk.f32.mxu0 %vm6577_vm1, %v6578_v6 }
 0x16e   : > { %4839 = vmatmul.mubr.f32.gmra.mrb[38].mxu1 %v6890_v5  ;;  %5421 = vmatmul.mubr.f32.gmra.mrb[40].mxu0 %v6903_v21 }
 0x16f   : > { %4841 = vmatprep.mubr.msk.f32.mxu1 %vm6577_vm1, %v6578_v6  ;;  %5423 = vmatprep.mubr.msk.f32.mxu0 %vm6577_vm1, %v6578_v6 }
 0x172   : > { %4842 = vmatmul.mubr.f32.gmra.mrb[40].mxu1 %v6903_v21  ;;  %5424 = vmatmul.mubr.f32.gmra.mrb[42].mxu0 %v6916_v43 }
 0x173   : > { %4844 = vmatprep.mubr.msk.f32.mxu1 %vm6577_vm1, %v6578_v6  ;;  %5426 = vmatprep.mubr.msk.f32.mxu0 %vm6577_vm1, %v6578_v6 }
 0x176   : > { %4845 = vmatmul.mubr.f32.gmra.mrb[42].mxu1 %v6916_v43  ;;  %5427 = vmatmul.mubr.f32.gmra.mrb[44].mxu0 %v6934_v13 }
 0x177   : > { %4847 = vmatprep.mubr.msk.f32.mxu1 %vm6577_vm1, %v6578_v6  ;;  %5429 = vmatprep.mubr.msk.f32.mxu0 %vm6577_vm1, %v6578_v6 }
 0x17a   : > { %4848 = vmatmul.mubr.f32.gmra.mrb[44].mxu1 %v6934_v13  ;;  %5430 = vmatmul.mubr.f32.gmra.mrb[46].mxu0 %v6947_v39 }
 0x17b   : > { %4850 = vmatprep.mubr.msk.f32.mxu1 %vm6577_vm1, %v6578_v6  ;;  %5432 = vmatprep.mubr.msk.f32.mxu0 %vm6577_vm1, %v6578_v6 }
 0x17e   : > { %4851 = vmatmul.mubr.f32.gmra.mrb[46].mxu1 %v6947_v39  ;;  %5433 = vmatmul.mubr.f32.gmra.mrb[48].mxu0 %v6960_v12 }
 0x17f   : > { %4853 = vmatprep.mubr.msk.f32.mxu1 %vm6577_vm1, %v6578_v6  ;;  %5435 = vmatprep.mubr.msk.f32.mxu0 %vm6577_vm1, %v6578_v6 }
 0x182   : > { %4854 = vmatmul.mubr.f32.gmra.mrb[48].mxu1 %v6960_v12  ;;  %5436 = vmatmul.mubr.f32.gmra.mrb[50].mxu0 %v6974_v38 }
 0x183   : > { %4856 = vmatprep.mubr.msk.f32.mxu1 %vm6577_vm1, %v6578_v6  ;;  %5438 = vmatprep.mubr.msk.f32.mxu0 %vm6577_vm1, %v6578_v6 }
 0x186   : > { %4857 = vmatmul.mubr.f32.gmra.mrb[50].mxu1 %v6974_v38  ;;  %5439 = vmatmul.mubr.f32.gmra.mrb[52].mxu0 %v6981_v55 }
 0x187   : > { %4859 = vmatprep.mubr.msk.f32.mxu1 %vm6577_vm1, %v6578_v6  ;;  %5441 = vmatprep.mubr.msk.f32.mxu0 %vm6577_vm1, %v6578_v6 }
 0x18a   : > { %4860 = vmatmul.mubr.f32.gmra.mrb[52].mxu1 %v6981_v55  ;;  %5442 = vmatmul.mubr.f32.gmra.mrb[54].mxu0 %v6994_v62 }
 0x18b   : > { %4862 = vmatprep.mubr.msk.f32.mxu1 %vm6577_vm1, %v6578_v6  ;;  %5444 = vmatprep.mubr.msk.f32.mxu0 %vm6577_vm1, %v6578_v6 }
 0x18e   : > { %4863 = vmatmul.mubr.f32.gmra.mrb[54].mxu1 %v6994_v62  ;;  %5445 = vmatmul.mubr.f32.gmra.mrb[56].mxu0 %v7007_v47 }
 0x18f   : > { %4865 = vmatprep.mubr.msk.f32.mxu1 %vm6577_vm1, %v6578_v6  ;;  %5447 = vmatprep.mubr.msk.f32.mxu0 %vm6577_vm1, %v6578_v6 }
 0x192   : > { %4866 = vmatmul.mubr.f32.gmra.mrb[56].mxu1 %v7007_v47  ;;  %5448 = vmatmul.mubr.f32.gmra.mrb[58].mxu0 %v7020_v34 }
 0x193   : > { %4868 = vmatprep.mubr.msk.f32.mxu1 %vm6577_vm1, %v6578_v6  ;;  %5450 = vmatprep.mubr.msk.f32.mxu0 %vm6577_vm1, %v6578_v6 }
 0x196   : > { %4869 = vmatmul.mubr.f32.gmra.mrb[58].mxu1 %v7020_v34  ;;  %5451 = vmatmul.mubr.f32.gmra.mrb[60].mxu0 %v7038_v15 }
 0x197   : > { %4871 = vmatprep.mubr.msk.f32.mxu1 %vm6577_vm1, %v6578_v6  ;;  %5453 = vmatprep.mubr.msk.f32.mxu0 %vm6577_vm1, %v6578_v6 }
 0x19a   : > { %4872 = vmatmul.mubr.f32.gmra.mrb[60].mxu1 %v7038_v15  ;;  %5454 = vmatmul.mubr.f32.gmra.mrb[62].mxu0 %v7051_v14 }
 0x19b   : > { %4874 = vmatprep.mubr.msk.f32.mxu1 %vm6577_vm1, %v6578_v6  ;;  %5456 = vmatprep.mubr.msk.f32.mxu0 %vm6577_vm1, %v6578_v6 }
 0x19e   : > { %4875 = vmatmul.mubr.f32.gmra.mrb[62].mxu1 %v7051_v14  ;;  %5457 = vmatmul.mubr.f32.gmra.mrb[64].mxu0 %v7064_v25 }
 0x19f   : > { %4877 = vmatprep.mubr.msk.f32.mxu1 %vm6577_vm1, %v6578_v6  ;;  %5459 = vmatprep.mubr.msk.f32.mxu0 %vm6577_vm1, %v6578_v6 }
 0x1a2   : > { %4878 = vmatmul.mubr.f32.gmra.mrb[64].mxu1 %v7064_v25  ;;  %5460 = vmatmul.mubr.f32.gmra.mrb[66].mxu0 %v7078_v51 }
 0x1a3   : > { %4880 = vmatprep.mubr.msk.f32.mxu1 %vm6577_vm1, %v6578_v6  ;;  %5462 = vmatprep.mubr.msk.f32.mxu0 %vm6577_vm1, %v6578_v6 }
 0x1a6   : > { %4881 = vmatmul.mubr.f32.gmra.mrb[66].mxu1 %v7078_v51  ;;  %5463 = vmatmul.mubr.f32.gmra.mrb[68].mxu0 %v7085_v61 }
 0x1a7   : > { %4883 = vmatprep.mubr.msk.f32.mxu1 %vm6577_vm1, %v6578_v6  ;;  %5465 = vmatprep.mubr.msk.f32.mxu0 %vm6577_vm1, %v6578_v6 }
 0x1aa   : > { %4884 = vmatmul.mubr.f32.gmra.mrb[68].mxu1 %v7085_v61  ;;  %5466 = vmatmul.mubr.f32.gmra.mrb[70].mxu0 %v7098_v31 }
 0x1ab   : > { %4886 = vmatprep.mubr.msk.f32.mxu1 %vm6577_vm1, %v6578_v6  ;;  %5468 = vmatprep.mubr.msk.f32.mxu0 %vm6577_vm1, %v6578_v6 }
 0x1ae   : > { %4887 = vmatmul.mubr.f32.gmra.mrb[70].mxu1 %v7098_v31  ;;  %5469 = vmatmul.mubr.f32.gmra.mrb[72].mxu0 %v7111_v17 }
 0x1af   : > { %4889 = vmatprep.mubr.msk.f32.mxu1 %vm6577_vm1, %v6578_v6  ;;  %5471 = vmatprep.mubr.msk.f32.mxu0 %vm6577_vm1, %v6578_v6 }
 0x1b2   : > { %4890 = vmatmul.mubr.f32.gmra.mrb[72].mxu1 %v7111_v17  ;;  %5472 = vmatmul.mubr.f32.gmra.mrb[74].mxu0 %v7127_v57 }
 0x1b3   : > { %4892 = vmatprep.mubr.msk.f32.mxu1 %vm6577_vm1, %v6578_v6  ;;  %5474 = vmatprep.mubr.msk.f32.mxu0 %vm6577_vm1, %v6578_v6 }
 0x1b6   : > { %4893 = vmatmul.mubr.f32.gmra.mrb[74].mxu1 %v7127_v57  ;;  %5475 = vmatmul.mubr.f32.gmra.mrb[76].mxu0 %v7137_v3 }
 0x1b7   : > { %4895 = vmatprep.mubr.msk.f32.mxu1 %vm6577_vm1, %v6578_v6  ;;  %5477 = vmatprep.mubr.msk.f32.mxu0 %vm6577_vm1, %v6578_v6 }
 0x1ba   : > { %4896 = vmatmul.mubr.f32.gmra.mrb[76].mxu1 %v7137_v3  ;;  %5478 = vmatmul.mubr.f32.gmra.mrb[78].mxu0 %v7155_v59 }
 0x1bb   : > { %4898 = vmatprep.mubr.msk.f32.mxu1 %vm6577_vm1, %v6578_v6  ;;  %5480 = vmatprep.mubr.msk.f32.mxu0 %vm6577_vm1, %v6578_v6 }
 0x1be   : > { %4899 = vmatmul.mubr.f32.gmra.mrb[78].mxu1 %v7155_v59  ;;  %5481 = vmatmul.mubr.f32.gmra.mrb[80].mxu0 %v7168_v53 }
 0x1bf   : > { %4901 = vmatprep.mubr.msk.f32.mxu1 %vm6577_vm1, %v6578_v6  ;;  %5483 = vmatprep.mubr.msk.f32.mxu0 %vm6577_vm1, %v6578_v6 }
 0x1c2   : > { %4902 = vmatmul.mubr.f32.gmra.mrb[80].mxu1 %v7168_v53  ;;  %5484 = vmatmul.mubr.f32.gmra.mrb[82].mxu0 %v7182_v42 }
 0x1c3   : > { %4904 = vmatprep.mubr.msk.f32.mxu1 %vm6577_vm1, %v6578_v6  ;;  %5486 = vmatprep.mubr.msk.f32.mxu0 %vm6577_vm1, %v6578_v6 }
 0x1c6   : > { %4905 = vmatmul.mubr.f32.gmra.mrb[82].mxu1 %v7182_v42  ;;  %5487 = vmatmul.mubr.f32.gmra.mrb[84].mxu0 %v8821_v7 }
 0x1c7   : > { %4907 = vmatprep.mubr.msk.f32.mxu1 %vm6577_vm1, %v6578_v6  ;;  %5489 = vmatprep.mubr.msk.f32.mxu0 %vm6577_vm1, %v6578_v6 }
 0x1ca   : > { %4908 = vmatmul.mubr.f32.gmra.mrb[84].mxu1 %v8821_v7  ;;  %5490 = vmatmul.mubr.f32.gmra.mrb[86].mxu0 %v8822_v8 }
 0x1cb   : > { %4910 = vmatprep.mubr.msk.f32.mxu1 %vm6577_vm1, %v6578_v6  ;;  %5492 = vmatprep.mubr.msk.f32.mxu0 %vm6577_vm1, %v6578_v6 }
 0x1ce   : > { %4911 = vmatmul.mubr.f32.gmra.mrb[86].mxu1 %v8822_v8  ;;  %5493 = vmatmul.mubr.f32.gmra.mrb[88].mxu0 %v8823_v9 }
 0x1cf   : > { %4913 = vmatprep.mubr.msk.f32.mxu1 %vm6577_vm1, %v6578_v6  ;;  %5495 = vmatprep.mubr.msk.f32.mxu0 %vm6577_vm1, %v6578_v6 }
 0x1d2   : > { %4914 = vmatmul.mubr.f32.gmra.mrb[88].mxu1 %v8823_v9  ;;  %5496 = vmatmul.mubr.f32.gmra.mrb[90].mxu0 %v8824_v28 }
 0x1d3   : > { %4916 = vmatprep.mubr.msk.f32.mxu1 %vm6577_vm1, %v6578_v6  ;;  %5498 = vmatprep.mubr.msk.f32.mxu0 %vm6577_vm1, %v6578_v6 }
 0x1d6   : > { %4917 = vmatmul.mubr.f32.gmra.mrb[90].mxu1 %v8824_v28  ;;  %5499 = vmatmul.mubr.f32.gmra.mrb[92].mxu0 %v8825_v33 }
 0x1d7   : > { %4919 = vmatprep.mubr.msk.f32.mxu1 %vm6577_vm1, %v6578_v6  ;;  %5501 = vmatprep.mubr.msk.f32.mxu0 %vm6577_vm1, %v6578_v6 }
 0x1da   : > { %4920 = vmatmul.mubr.f32.gmra.mrb[92].mxu1 %v8825_v33  ;;  %5502 = vmatmul.mubr.f32.gmra.mrb[94].mxu0 %v8826_v20 }
 0x1db   : > { %4922 = vmatprep.mubr.msk.f32.mxu1 %vm6577_vm1, %v6578_v6  ;;  %5504 = vmatprep.mubr.msk.f32.mxu0 %vm6577_vm1, %v6578_v6 }
 0x1de   : > { %4923 = vmatmul.mubr.f32.gmra.mrb[94].mxu1 %v8826_v20  ;;  %5505 = vmatmul.mubr.f32.gmra.mrb[96].mxu0 %v8827_v4 }
 0x1df   : > { %4925 = vmatprep.mubr.msk.f32.mxu1 %vm6577_vm1, %v6578_v6  ;;  %5507 = vmatprep.mubr.msk.f32.mxu0 %vm6577_vm1, %v6578_v6 }
 0x1e2   : > { %4926 = vmatmul.mubr.f32.gmra.mrb[96].mxu1 %v8827_v4  ;;  %5508 = vmatmul.mubr.f32.gmra.mrb[98].mxu0 %v7285_v0 }
 0x1e3   : > { %4928 = vmatprep.mubr.msk.f32.mxu1 %vm6577_vm1, %v6578_v6  ;;  %5510 = vmatprep.mubr.msk.f32.mxu0 %vm6577_vm1, %v6578_v6 }
 0x1e6   : > { %4929 = vmatmul.mubr.f32.gmra.mrb[98].mxu1 %v7285_v0  ;;  %5511 = vmatmul.mubr.f32.gmra.mrb[100].mxu0 %v8828_v52 }
 0x1e7   : > { %4931 = vmatprep.mubr.msk.f32.mxu1 %vm6577_vm1, %v6578_v6  ;;  %5513 = vmatprep.mubr.msk.f32.mxu0 %vm6577_vm1, %v6578_v6 }
 0x1ea   : > { %4932 = vmatmul.mubr.f32.gmra.mrb[100].mxu1 %v8828_v52  ;;  %5514 = vmatmul.mubr.f32.gmra.mrb[102].mxu0 %v8829_v40 }
 0x1eb   : > { %4934 = vmatprep.mubr.msk.f32.mxu1 %vm6577_vm1, %v6578_v6  ;;  %5516 = vmatprep.mubr.msk.f32.mxu0 %vm6577_vm1, %v6578_v6 }
 0x1ee   : > { %4935 = vmatmul.mubr.f32.gmra.mrb[102].mxu1 %v8829_v40  ;;  %5517 = vmatmul.mubr.f32.gmra.mrb[104].mxu0 %v8830_v63 }
 0x1ef   : > { %4937 = vmatprep.mubr.msk.f32.mxu1 %vm6577_vm1, %v6578_v6  ;;  %5519 = vmatprep.mubr.msk.f32.mxu0 %vm6577_vm1, %v6578_v6 }
 0x1f2   : > { %4938 = vmatmul.mubr.f32.gmra.mrb[104].mxu1 %v8830_v63  ;;  %5520 = vmatmul.mubr.f32.gmra.mrb[106].mxu0 %v8831_v36 }
 0x1f3   : > { %4940 = vmatprep.mubr.msk.f32.mxu1 %vm6577_vm1, %v6578_v6  ;;  %5522 = vmatprep.mubr.msk.f32.mxu0 %vm6577_vm1, %v6578_v6 }
 0x1f6   : > { %4941 = vmatmul.mubr.f32.gmra.mrb[106].mxu1 %v8831_v36  ;;  %5523 = vmatmul.mubr.f32.gmra.mrb[108].mxu0 %v8832_v10 }
 0x1f7   : > { %4943 = vmatprep.mubr.msk.f32.mxu1 %vm6577_vm1, %v6578_v6  ;;  %5525 = vmatprep.mubr.msk.f32.mxu0 %vm6577_vm1, %v6578_v6 }
 0x1fa   : > { %4944 = vmatmul.mubr.f32.gmra.mrb[108].mxu1 %v8832_v10  ;;  %5526 = vmatmul.mubr.f32.gmra.mrb[110].mxu0 %v8833_v49 }
 0x1fb   : > { %4946 = vmatprep.mubr.msk.f32.mxu1 %vm6577_vm1, %v6578_v6  ;;  %5528 = vmatprep.mubr.msk.f32.mxu0 %vm6577_vm1, %v6578_v6 }
 0x1fe   : > { %4947 = vmatmul.mubr.f32.gmra.mrb[110].mxu1 %v8833_v49  ;;  %5529 = vmatmul.mubr.f32.gmra.mrb[112].mxu0 %v8834_v29 }
 0x1ff   : > { %4949 = vmatprep.mubr.msk.f32.mxu1 %vm6577_vm1, %v6578_v6  ;;  %5531 = vmatprep.mubr.msk.f32.mxu0 %vm6577_vm1, %v6578_v6 }
 0x202   : > { %4950 = vmatmul.mubr.f32.gmra.mrb[112].mxu1 %v8834_v29  ;;  %5532 = vmatmul.mubr.f32.gmra.mrb[114].mxu0 %v8835_v2 }
 0x203   : > { %4952 = vmatprep.mubr.msk.f32.mxu1 %vm6577_vm1, %v6578_v6  ;;  %5534 = vmatprep.mubr.msk.f32.mxu0 %vm6577_vm1, %v6578_v6 }
 0x206   : > { %4953 = vmatmul.mubr.f32.gmra.mrb[114].mxu1 %v8835_v2  ;;  %5535 = vmatmul.mubr.f32.gmra.mrb[116].mxu0 %v8836_v16 }
 0x207   : > { %4955 = vmatprep.mubr.msk.f32.mxu1 %vm6577_vm1, %v6578_v6  ;;  %5537 = vmatprep.mubr.msk.f32.mxu0 %vm6577_vm1, %v6578_v6 }
 0x20a   : > { %4956 = vmatmul.mubr.f32.gmra.mrb[116].mxu1 %v8836_v16  ;;  %5538 = vmatmul.mubr.f32.gmra.mrb[118].mxu0 %v8837_v50 }
 0x20b   : > { %4958 = vmatprep.mubr.msk.f32.mxu1 %vm6577_vm1, %v6578_v6  ;;  %5540 = vmatprep.mubr.msk.f32.mxu0 %vm6577_vm1, %v6578_v6 }
 0x20e   : > { %4959 = vmatmul.mubr.f32.gmra.mrb[118].mxu1 %v8837_v50  ;;  %5541 = vmatmul.mubr.f32.gmra.mrb[120].mxu0 %v7428_v45 }
 0x20f   : > { %4961 = vmatprep.mubr.msk.f32.mxu1 %vm6577_vm1, %v6578_v6  ;;  %5543 = vmatprep.mubr.msk.f32.mxu0 %vm6577_vm1, %v6578_v6 }
 0x212   : > { %4962 = vmatmul.mubr.f32.gmra.mrb[120].mxu1 %v7428_v45  ;;  %5544 = vmatmul.mubr.f32.gmra.mrb[122].mxu0 %v7441_v30  ;;  %v8838_v45 = vld [vmem:[#allocation3_spill] sm:$0xff] }
 0x213   : > { %4964 = vmatprep.mubr.msk.f32.mxu1 %vm6577_vm1, %v6578_v6  ;;  %5546 = vmatprep.mubr.msk.f32.mxu0 %vm6577_vm1, %v6578_v6 }
 0x216   : > { %4965 = vmatmul.mubr.f32.gmra.mrb[122].mxu1 %v7441_v30  ;;  %5547 = vmatmul.mubr.f32.gmra.mrb[124].mxu0 %v7453_v27  ;;  %v8839_v30 = vld [vmem:[#allocation4_spill] sm:$0xff] }
 0x217   : > { %4967 = vmatprep.mubr.msk.f32.mxu1 %vm6577_vm1, %v6578_v6  ;;  %5553 = vmatprep.mubr.msk.f32.mxu0 %vm6577_vm1, %v6578_v6 }
 0x21a   : > { %4968 = vmatmul.mubr.f32.gmra.mrb[124].mxu1 %v7453_v27  ;;  %5554 = vmatmul.mubr.f32.vlgmr.msra.gmra.mrb[0].mxu0 %v6672_v22  ;;  %v8840_v22 = vld [vmem:[#allocation5_spill] sm:$0xff] }
 0x21b   : > { %4974 = vmatprep.mubr.msk.f32.mxu1 %vm6577_vm1, %v6578_v6  ;;  %5556 = vmatprep.mubr.msk.f32.mxu0 %vm6577_vm1, %v6578_v6 }
 0x21e   : > { %4975 = vmatmul.mubr.f32.vlgmr.msra.gmra.mrb[0].mxu1 %v8838_v45  ;;  %5557 = vmatmul.mubr.f32.gmra.mrb[2].mxu0 %v6674_v23  ;;  %v8841_v23 = vld [vmem:[#allocation6_spill] sm:$0xff]  ;;  %v8883_v45 = vld [vmem:[#allocation52_spill] sm:$0xff] }
 0x21f   : > { %4977 = vmatprep.mubr.msk.f32.mxu1 %vm6577_vm1, %v6578_v6  ;;  %5559 = vmatprep.mubr.msk.f32.mxu0 %vm6577_vm1, %v6578_v6 }
 0x222   : > { %4978 = vmatmul.mubr.f32.gmra.mrb[2].mxu1 %v8839_v30  ;;  %5560 = vmatmul.mubr.f32.gmra.mrb[4].mxu0 %v6676_v24  ;;  %v8842_v24 = vld [vmem:[#allocation7_spill] sm:$0xff]  ;;  %v8882_v30 = vld [vmem:[#allocation50_spill] sm:$0xff] }
 0x223   : > { %4980 = vmatprep.mubr.msk.f32.mxu1 %vm6577_vm1, %v6578_v6  ;;  %5562 = vmatprep.mubr.msk.f32.mxu0 %vm6577_vm1, %v6578_v6 }
 0x226   : > { %4981 = vmatmul.mubr.f32.gmra.mrb[4].mxu1 %v8840_v22  ;;  %5563 = vmatmul.mubr.f32.gmra.mrb[6].mxu0 %v6679_v26  ;;  %v8843_v26 = vld [vmem:[#allocation8_spill] sm:$0xff] }
 0x227   : > { %4983 = vmatprep.mubr.msk.f32.mxu1 %vm6577_vm1, %v6578_v6  ;;  %5565 = vmatprep.mubr.msk.f32.mxu0 %vm6577_vm1, %v6578_v6 }
 0x22a   : > { %4984 = vmatmul.mubr.f32.gmra.mrb[6].mxu1 %v8841_v23  ;;  %5566 = vmatmul.mubr.f32.gmra.mrb[8].mxu0 %v6694_v37  ;;  %v8844_v37 = vld [vmem:[#allocation9_spill] sm:$0xff] }
 0x22b   : > { %4986 = vmatprep.mubr.msk.f32.mxu1 %vm6577_vm1, %v6578_v6  ;;  %5568 = vmatprep.mubr.msk.f32.mxu0 %vm6577_vm1, %v6578_v6 }
 0x22e   : > { %4987 = vmatmul.mubr.f32.gmra.mrb[8].mxu1 %v8842_v24  ;;  %5569 = vmatmul.mubr.f32.gmra.mrb[10].mxu0 %v6707_v46  ;;  %v8845_v46 = vld [vmem:[#allocation10_spill] sm:$0xff] }
 0x22f   : > { %4989 = vmatprep.mubr.msk.f32.mxu1 %vm6577_vm1, %v6578_v6  ;;  %5571 = vmatprep.mubr.msk.f32.mxu0 %vm6577_vm1, %v6578_v6 }
 0x232   : > { %4990 = vmatmul.mubr.f32.gmra.mrb[10].mxu1 %v8843_v26  ;;  %5572 = vmatmul.mubr.f32.gmra.mrb[12].mxu0 %v6727_v58  ;;  %v8846_v58 = vld [vmem:[#allocation11_spill] sm:$0xff] }
 0x233   : > { %4992 = vmatprep.mubr.msk.f32.mxu1 %vm6577_vm1, %v6578_v6  ;;  %5574 = vmatprep.mubr.msk.f32.mxu0 %vm6577_vm1, %v6578_v6  ;;  %v8891_v26 = vld [vmem:[#allocation67_spill] sm:$0xff] }
 0x236   : > { %4993 = vmatmul.mubr.f32.gmra.mrb[12].mxu1 %v8844_v37  ;;  %5575 = vmatmul.mubr.f32.gmra.mrb[14].mxu0 %v6734_v60  ;;  %v8847_v60 = vld [vmem:[#allocation12_spill] sm:$0xff] }
 0x237   : > { %4995 = vmatprep.mubr.msk.f32.mxu1 %vm6577_vm1, %v6578_v6  ;;  %5577 = vmatprep.mubr.msk.f32.mxu0 %vm6577_vm1, %v6578_v6 }
 0x23a   : > { %4996 = vmatmul.mubr.f32.gmra.mrb[14].mxu1 %v8845_v46  ;;  %5578 = vmatmul.mubr.f32.gmra.mrb[16].mxu0 %v6752_v11  ;;  %v8848_v11 = vld [vmem:[#allocation13_spill] sm:$0xff] }
 0x23b   : > { %4998 = vmatprep.mubr.msk.f32.mxu1 %vm6577_vm1, %v6578_v6  ;;  %5580 = vmatprep.mubr.msk.f32.mxu0 %vm6577_vm1, %v6578_v6 }
 0x23e   : > { %4999 = vmatmul.mubr.f32.gmra.mrb[16].mxu1 %v8846_v58  ;;  %5581 = vmatmul.mubr.f32.gmra.mrb[18].mxu0 %v6765_v18  ;;  %v8849_v18 = vld [vmem:[#allocation14_spill] sm:$0xff] }
 0x23f   : > { %5001 = vmatprep.mubr.msk.f32.mxu1 %vm6577_vm1, %v6578_v6  ;;  %5583 = vmatprep.mubr.msk.f32.mxu0 %vm6577_vm1, %v6578_v6 }
 0x242   : > { %5002 = vmatmul.mubr.f32.gmra.mrb[18].mxu1 %v8847_v60  ;;  %5584 = vmatmul.mubr.f32.gmra.mrb[20].mxu0 %v6778_v32  ;;  %v8850_v32 = vld [vmem:[#allocation15_spill] sm:$0xff] }
 0x243   : > { %5004 = vmatprep.mubr.msk.f32.mxu1 %vm6577_vm1, %v6578_v6  ;;  %5586 = vmatprep.mubr.msk.f32.mxu0 %vm6577_vm1, %v6578_v6 }
 0x246   : > { %5005 = vmatmul.mubr.f32.gmra.mrb[20].mxu1 %v8848_v11  ;;  %5587 = vmatmul.mubr.f32.gmra.mrb[22].mxu0 %v6792_v41  ;;  %v8851_v41 = vld [vmem:[#allocation16_spill] sm:$0xff] }
 0x247   : > { %5007 = vmatprep.mubr.msk.f32.mxu1 %vm6577_vm1, %v6578_v6  ;;  %5589 = vmatprep.mubr.msk.f32.mxu0 %vm6577_vm1, %v6578_v6 }
 0x24a   : > { %5008 = vmatmul.mubr.f32.gmra.mrb[22].mxu1 %v8849_v18  ;;  %5590 = vmatmul.mubr.f32.gmra.mrb[24].mxu0 %v6799_v44  ;;  %v8852_v44 = vld [vmem:[#allocation17_spill] sm:$0xff] }
 0x24b   : > { %5010 = vmatprep.mubr.msk.f32.mxu1 %vm6577_vm1, %v6578_v6  ;;  %5592 = vmatprep.mubr.msk.f32.mxu0 %vm6577_vm1, %v6578_v6 }
 0x24e   : > { %5011 = vmatmul.mubr.f32.gmra.mrb[24].mxu1 %v8850_v32  ;;  %5593 = vmatmul.mubr.f32.gmra.mrb[26].mxu0 %v6812_v54  ;;  %v8853_v54 = vld [vmem:[#allocation18_spill] sm:$0xff]  ;;  %v8892_v32 = vld [vmem:[#allocation69_spill] sm:$0xff] }
 0x24f   : > { %5013 = vmatprep.mubr.msk.f32.mxu1 %vm6577_vm1, %v6578_v6  ;;  %5595 = vmatprep.mubr.msk.f32.mxu0 %vm6577_vm1, %v6578_v6 }
 0x252   : > { %5014 = vmatmul.mubr.f32.gmra.mrb[26].mxu1 %v8851_v41  ;;  %5596 = vmatmul.mubr.f32.gmra.mrb[28].mxu0 %v6828_v1  ;;  %v8854_v1 = vld [vmem:[#allocation19_spill] sm:$0xff] }
 0x253   : > { %5016 = vmatprep.mubr.msk.f32.mxu1 %vm6577_vm1, %v6578_v6  ;;  %5598 = vmatprep.mubr.msk.f32.mxu0 %vm6577_vm1, %v6578_v6 }
 0x256   : > { %5017 = vmatmul.mubr.f32.gmra.mrb[28].mxu1 %v8852_v44  ;;  %5599 = vmatmul.mubr.f32.gmra.mrb[30].mxu0 %v6843_v19  ;;  %v8855_v19 = vld [vmem:[#allocation20_spill] sm:$0xff] }
 0x257   : > { %5019 = vmatprep.mubr.msk.f32.mxu1 %vm6577_vm1, %v6578_v6  ;;  %5601 = vmatprep.mubr.msk.f32.mxu0 %vm6577_vm1, %v6578_v6 }
 0x25a   : > { %5020 = vmatmul.mubr.f32.gmra.mrb[30].mxu1 %v8853_v54  ;;  %5602 = vmatmul.mubr.f32.gmra.mrb[32].mxu0 %v6856_v35  ;;  %v8856_v35 = vld [vmem:[#allocation21_spill] sm:$0xff] }
 0x25b   : > { %5022 = vmatprep.mubr.msk.f32.mxu1 %vm6577_vm1, %v6578_v6  ;;  %5604 = vmatprep.mubr.msk.f32.mxu0 %vm6577_vm1, %v6578_v6 }
 0x25e   : > { %5023 = vmatmul.mubr.f32.gmra.mrb[32].mxu1 %v8854_v1  ;;  %5605 = vmatmul.mubr.f32.gmra.mrb[34].mxu0 %v6869_v48  ;;  %v8857_v48 = vld [vmem:[#allocation22_spill] sm:$0xff] }
 0x25f   : > { %5025 = vmatprep.mubr.msk.f32.mxu1 %vm6577_vm1, %v6578_v6  ;;  %5607 = vmatprep.mubr.msk.f32.mxu0 %vm6577_vm1, %v6578_v6 }
 0x262   : > { %5026 = vmatmul.mubr.f32.gmra.mrb[34].mxu1 %v8855_v19  ;;  %5608 = vmatmul.mubr.f32.gmra.mrb[36].mxu0 %v6877_v56  ;;  %v8858_v56 = vld [vmem:[#allocation23_spill] sm:$0xff] }
 0x263   : > { %5028 = vmatprep.mubr.msk.f32.mxu1 %vm6577_vm1, %v6578_v6  ;;  %5610 = vmatprep.mubr.msk.f32.mxu0 %vm6577_vm1, %v6578_v6 }
 0x266   : > { %5029 = vmatmul.mubr.f32.gmra.mrb[36].mxu1 %v8856_v35  ;;  %5611 = vmatmul.mubr.f32.gmra.mrb[38].mxu0 %v6890_v5  ;;  %v8859_v5 = vld [vmem:[#allocation24_spill] sm:$0xff] }
 0x267   : > { %5031 = vmatprep.mubr.msk.f32.mxu1 %vm6577_vm1, %v6578_v6  ;;  %5613 = vmatprep.mubr.msk.f32.mxu0 %vm6577_vm1, %v6578_v6 }
 0x26a   : > { %5032 = vmatmul.mubr.f32.gmra.mrb[38].mxu1 %v8857_v48  ;;  %5614 = vmatmul.mubr.f32.gmra.mrb[40].mxu0 %v6903_v21  ;;  %v8860_v21 = vld [vmem:[#allocation25_spill] sm:$0xff] }
 0x26b   : > { %5034 = vmatprep.mubr.msk.f32.mxu1 %vm6577_vm1, %v6578_v6  ;;  %5616 = vmatprep.mubr.msk.f32.mxu0 %vm6577_vm1, %v6578_v6 }
 0x26e   : > { %5035 = vmatmul.mubr.f32.gmra.mrb[40].mxu1 %v8858_v56  ;;  %5617 = vmatmul.mubr.f32.gmra.mrb[42].mxu0 %v6916_v43  ;;  %v8861_v43 = vld [vmem:[#allocation26_spill] sm:$0xff] }
 0x26f   : > { %5037 = vmatprep.mubr.msk.f32.mxu1 %vm6577_vm1, %v6578_v6  ;;  %5619 = vmatprep.mubr.msk.f32.mxu0 %vm6577_vm1, %v6578_v6 }
 0x272   : > { %5038 = vmatmul.mubr.f32.gmra.mrb[42].mxu1 %v8859_v5  ;;  %5620 = vmatmul.mubr.f32.gmra.mrb[44].mxu0 %v6934_v13  ;;  %v8862_v13 = vld [vmem:[#allocation27_spill] sm:$0xff] }
 0x273   : > { %5040 = vmatprep.mubr.msk.f32.mxu1 %vm6577_vm1, %v6578_v6  ;;  %5622 = vmatprep.mubr.msk.f32.mxu0 %vm6577_vm1, %v6578_v6 }
 0x276   : > { %5041 = vmatmul.mubr.f32.gmra.mrb[44].mxu1 %v8860_v21  ;;  %5623 = vmatmul.mubr.f32.gmra.mrb[46].mxu0 %v6947_v39  ;;  %v8863_v39 = vld [vmem:[#allocation28_spill] sm:$0xff] }
 0x277   : > { %5043 = vmatprep.mubr.msk.f32.mxu1 %vm6577_vm1, %v6578_v6  ;;  %5625 = vmatprep.mubr.msk.f32.mxu0 %vm6577_vm1, %v6578_v6 }
 0x27a   : > { %5044 = vmatmul.mubr.f32.gmra.mrb[46].mxu1 %v8861_v43  ;;  %5626 = vmatmul.mubr.f32.gmra.mrb[48].mxu0 %v6960_v12  ;;  %v8864_v12 = vld [vmem:[#allocation29_spill] sm:$0xff] }
 0x27b   : > { %5046 = vmatprep.mubr.msk.f32.mxu1 %vm6577_vm1, %v6578_v6  ;;  %5628 = vmatprep.mubr.msk.f32.mxu0 %vm6577_vm1, %v6578_v6 }
 0x27e   : > { %5047 = vmatmul.mubr.f32.gmra.mrb[48].mxu1 %v8862_v13  ;;  %5629 = vmatmul.mubr.f32.gmra.mrb[50].mxu0 %v6974_v38  ;;  %v8865_v38 = vld [vmem:[#allocation30_spill] sm:$0xff] }
 0x27f   : > { %5049 = vmatprep.mubr.msk.f32.mxu1 %vm6577_vm1, %v6578_v6  ;;  %5631 = vmatprep.mubr.msk.f32.mxu0 %vm6577_vm1, %v6578_v6 }
 0x282   : > { %5050 = vmatmul.mubr.f32.gmra.mrb[50].mxu1 %v8863_v39  ;;  %5632 = vmatmul.mubr.f32.gmra.mrb[52].mxu0 %v6981_v55  ;;  %v8866_v55 = vld [vmem:[#allocation31_spill] sm:$0xff] }
 0x283   : > { %5052 = vmatprep.mubr.msk.f32.mxu1 %vm6577_vm1, %v6578_v6  ;;  %5634 = vmatprep.mubr.msk.f32.mxu0 %vm6577_vm1, %v6578_v6 }
 0x286   : > { %5053 = vmatmul.mubr.f32.gmra.mrb[52].mxu1 %v8864_v12  ;;  %5635 = vmatmul.mubr.f32.gmra.mrb[54].mxu0 %v6994_v62  ;;  %v8867_v62 = vld [vmem:[#allocation32_spill] sm:$0xff]  ;;  %v8894_v12 = vld [vmem:[#allocation73_spill] sm:$0xff] }
 0x287   : > { %5055 = vmatprep.mubr.msk.f32.mxu1 %vm6577_vm1, %v6578_v6  ;;  %5637 = vmatprep.mubr.msk.f32.mxu0 %vm6577_vm1, %v6578_v6 }
 0x28a   : > { %5056 = vmatmul.mubr.f32.gmra.mrb[54].mxu1 %v8865_v38  ;;  %5638 = vmatmul.mubr.f32.gmra.mrb[56].mxu0 %v7007_v47  ;;  %v8868_v47 = vld [vmem:[#allocation33_spill] sm:$0xff] }
 0x28b   : > { %5058 = vmatprep.mubr.msk.f32.mxu1 %vm6577_vm1, %v6578_v6  ;;  %5640 = vmatprep.mubr.msk.f32.mxu0 %vm6577_vm1, %v6578_v6 }
 0x28e   : > { %5059 = vmatmul.mubr.f32.gmra.mrb[56].mxu1 %v8866_v55  ;;  %5641 = vmatmul.mubr.f32.gmra.mrb[58].mxu0 %v7020_v34  ;;  %v8869_v34 = vld [vmem:[#allocation34_spill] sm:$0xff] }
 0x28f   : > { %5061 = vmatprep.mubr.msk.f32.mxu1 %vm6577_vm1, %v6578_v6  ;;  %5643 = vmatprep.mubr.msk.f32.mxu0 %vm6577_vm1, %v6578_v6 }
 0x292   : > { %5062 = vmatmul.mubr.f32.gmra.mrb[58].mxu1 %v8867_v62  ;;  %5644 = vmatmul.mubr.f32.gmra.mrb[60].mxu0 %v7038_v15  ;;  %v8870_v15 = vld [vmem:[#allocation35_spill] sm:$0xff] }
 0x293   : > { %5064 = vmatprep.mubr.msk.f32.mxu1 %vm6577_vm1, %v6578_v6  ;;  %5646 = vmatprep.mubr.msk.f32.mxu0 %vm6577_vm1, %v6578_v6 }
 0x296   : > { %5065 = vmatmul.mubr.f32.gmra.mrb[60].mxu1 %v8868_v47  ;;  %5647 = vmatmul.mubr.f32.gmra.mrb[62].mxu0 %v7051_v14  ;;  %v8871_v14 = vld [vmem:[#allocation36_spill] sm:$0xff] }
 0x297   : > { %5067 = vmatprep.mubr.msk.f32.mxu1 %vm6577_vm1, %v6578_v6  ;;  %5649 = vmatprep.mubr.msk.f32.mxu0 %vm6577_vm1, %v6578_v6 }
 0x29a   : > { %5068 = vmatmul.mubr.f32.gmra.mrb[62].mxu1 %v8869_v34  ;;  %5650 = vmatmul.mubr.f32.gmra.mrb[64].mxu0 %v7064_v25  ;;  %v8872_v25 = vld [vmem:[#allocation37_spill] sm:$0xff] }
 0x29b   : > { %5070 = vmatprep.mubr.msk.f32.mxu1 %vm6577_vm1, %v6578_v6  ;;  %5652 = vmatprep.mubr.msk.f32.mxu0 %vm6577_vm1, %v6578_v6 }
 0x29e   : > { %5071 = vmatmul.mubr.f32.gmra.mrb[64].mxu1 %v8870_v15  ;;  %5653 = vmatmul.mubr.f32.gmra.mrb[66].mxu0 %v7078_v51  ;;  %v8873_v51 = vld [vmem:[#allocation38_spill] sm:$0xff] }
 0x29f   : > { %5073 = vmatprep.mubr.msk.f32.mxu1 %vm6577_vm1, %v6578_v6  ;;  %5655 = vmatprep.mubr.msk.f32.mxu0 %vm6577_vm1, %v6578_v6 }
 0x2a2   : > { %5074 = vmatmul.mubr.f32.gmra.mrb[66].mxu1 %v8871_v14  ;;  %5656 = vmatmul.mubr.f32.gmra.mrb[68].mxu0 %v7085_v61  ;;  %v8874_v61 = vld [vmem:[#allocation39_spill] sm:$0xff]  ;;  %v8895_v14 = vld [vmem:[#allocation76_spill] sm:$0xff] }
 0x2a3   : > { %5076 = vmatprep.mubr.msk.f32.mxu1 %vm6577_vm1, %v6578_v6  ;;  %5658 = vmatprep.mubr.msk.f32.mxu0 %vm6577_vm1, %v6578_v6 }
 0x2a6   : > { %5077 = vmatmul.mubr.f32.gmra.mrb[68].mxu1 %v8872_v25  ;;  %5659 = vmatmul.mubr.f32.gmra.mrb[70].mxu0 %v7098_v31  ;;  %v8875_v31 = vld [vmem:[#allocation40_spill] sm:$0xff] }
 0x2a7   : > { %5079 = vmatprep.mubr.msk.f32.mxu1 %vm6577_vm1, %v6578_v6  ;;  %5661 = vmatprep.mubr.msk.f32.mxu0 %vm6577_vm1, %v6578_v6 }
 0x2aa   : > { %5080 = vmatmul.mubr.f32.gmra.mrb[70].mxu1 %v8873_v51  ;;  %5662 = vmatmul.mubr.f32.gmra.mrb[72].mxu0 %v7111_v17  ;;  %v8876_v17 = vld [vmem:[#allocation41_spill] sm:$0xff] }
 0x2ab   : > { %5082 = vmatprep.mubr.msk.f32.mxu1 %vm6577_vm1, %v6578_v6  ;;  %5664 = vmatprep.mubr.msk.f32.mxu0 %vm6577_vm1, %v6578_v6 }
 0x2ae   : > { %5083 = vmatmul.mubr.f32.gmra.mrb[72].mxu1 %v8874_v61  ;;  %5665 = vmatmul.mubr.f32.gmra.mrb[74].mxu0 %v7127_v57  ;;  %v8877_v57 = vld [vmem:[#allocation42_spill] sm:$0xff] }
 0x2af   : > { %5085 = vmatprep.mubr.msk.f32.mxu1 %vm6577_vm1, %v6578_v6  ;;  %5667 = vmatprep.mubr.msk.f32.mxu0 %vm6577_vm1, %v6578_v6 }
 0x2b2   : > { %5086 = vmatmul.mubr.f32.gmra.mrb[74].mxu1 %v8875_v31  ;;  %5668 = vmatmul.mubr.f32.gmra.mrb[76].mxu0 %v7137_v3  ;;  %v8878_v3 = vld [vmem:[#allocation43_spill] sm:$0xff] }
 0x2b3   : > { %5088 = vmatprep.mubr.msk.f32.mxu1 %vm6577_vm1, %v6578_v6  ;;  %5670 = vmatprep.mubr.msk.f32.mxu0 %vm6577_vm1, %v6578_v6 }
 0x2b6   : > { %5089 = vmatmul.mubr.f32.gmra.mrb[76].mxu1 %v8876_v17  ;;  %5671 = vmatmul.mubr.f32.gmra.mrb[78].mxu0 %v7155_v59  ;;  %v8879_v59 = vld [vmem:[#allocation45_spill] sm:$0xff] }
 0x2b7   : > { %5091 = vmatprep.mubr.msk.f32.mxu1 %vm6577_vm1, %v6578_v6  ;;  %5673 = vmatprep.mubr.msk.f32.mxu0 %vm6577_vm1, %v6578_v6 }
 0x2ba   : > { %5092 = vmatmul.mubr.f32.gmra.mrb[78].mxu1 %v8877_v57  ;;  %5674 = vmatmul.mubr.f32.gmra.mrb[80].mxu0 %v7168_v53  ;;  %v8880_v53 = vld [vmem:[#allocation46_spill] sm:$0xff] }
 0x2bb   : > { %5094 = vmatprep.mubr.msk.f32.mxu1 %vm6577_vm1, %v6578_v6  ;;  %5676 = vmatprep.mubr.msk.f32.mxu0 %vm6577_vm1, %v6578_v6 }
 0x2be   : > { %5095 = vmatmul.mubr.f32.gmra.mrb[80].mxu1 %v8878_v3  ;;  %5677 = vmatmul.mubr.f32.gmra.mrb[82].mxu0 %v7182_v42  ;;  %v8881_v42 = vld [vmem:[#allocation49_spill] sm:$0xff] }
 0x2bf   : > { %5097 = vmatprep.mubr.msk.f32.mxu1 %vm6577_vm1, %v6578_v6  ;;  %5679 = vmatprep.mubr.msk.f32.mxu0 %vm6577_vm1, %v6578_v6  ;;  %v8896_v3 = vld [vmem:[#allocation77_spill] sm:$0xff] }
 0x2c2   : > { %5098 = vmatmul.mubr.f32.gmra.mrb[82].mxu1 %v8879_v59  ;;  %5680 = vmatmul.mubr.f32.gmra.mrb[84].mxu0 %v8821_v7  ;;  %v8884_v7 = vld [vmem:[#allocation54_spill] sm:$0xff] }
 0x2c3   : > { %5100 = vmatprep.mubr.msk.f32.mxu1 %vm6577_vm1, %v6578_v6  ;;  %5682 = vmatprep.mubr.msk.f32.mxu0 %vm6577_vm1, %v6578_v6 }
 0x2c6   : > { %5101 = vmatmul.mubr.f32.gmra.mrb[84].mxu1 %v8880_v53  ;;  %5683 = vmatmul.mubr.f32.gmra.mrb[86].mxu0 %v8822_v8  ;;  %v8885_v8 = vld [vmem:[#allocation57_spill] sm:$0xff] }
 0x2c7   : > { %5103 = vmatprep.mubr.msk.f32.mxu1 %vm6577_vm1, %v6578_v6  ;;  %5685 = vmatprep.mubr.msk.f32.mxu0 %vm6577_vm1, %v6578_v6 }
 0x2ca   : > { %5104 = vmatmul.mubr.f32.gmra.mrb[86].mxu1 %v8881_v42  ;;  %5686 = vmatmul.mubr.f32.gmra.mrb[88].mxu0 %v8823_v9  ;;  %v8886_v9 = vld [vmem:[#allocation58_spill] sm:$0xff] }
 0x2cb   : > { %5106 = vmatprep.mubr.msk.f32.mxu1 %vm6577_vm1, %v6578_v6  ;;  %5688 = vmatprep.mubr.msk.f32.mxu0 %vm6577_vm1, %v6578_v6 }
 0x2ce   : > { %5107 = vmatmul.mubr.f32.gmra.mrb[88].mxu1 %v8882_v30  ;;  %5689 = vmatmul.mubr.f32.gmra.mrb[90].mxu0 %v8824_v28  ;;  %v8887_v28 = vld [vmem:[#allocation60_spill] sm:$0xff] }
 0x2cf   : > { %5109 = vmatprep.mubr.msk.f32.mxu1 %vm6577_vm1, %v6578_v6  ;;  %5691 = vmatprep.mubr.msk.f32.mxu0 %vm6577_vm1, %v6578_v6 }
 0x2d2   : > { %5110 = vmatmul.mubr.f32.gmra.mrb[90].mxu1 %v8883_v45  ;;  %5692 = vmatmul.mubr.f32.gmra.mrb[92].mxu0 %v8825_v33  ;;  %v8888_v33 = vld [vmem:[#allocation61_spill] sm:$0xff] }
 0x2d3   : > { %5112 = vmatprep.mubr.msk.f32.mxu1 %vm6577_vm1, %v6578_v6  ;;  %5694 = vmatprep.mubr.msk.f32.mxu0 %vm6577_vm1, %v6578_v6 }
 0x2d6   : > { %5113 = vmatmul.mubr.f32.gmra.mrb[92].mxu1 %v8884_v7  ;;  %5695 = vmatmul.mubr.f32.gmra.mrb[94].mxu0 %v8826_v20 }
 0x2d7   : > { %5115 = vmatprep.mubr.msk.f32.mxu1 %vm6577_vm1, %v6578_v6  ;;  %5697 = vmatprep.mubr.msk.f32.mxu0 %vm6577_vm1, %v6578_v6 }
 0x2da   : > { %5116 = vmatmul.mubr.f32.gmra.mrb[94].mxu1 %v8885_v8  ;;  %5698 = vmatmul.mubr.f32.gmra.mrb[96].mxu0 %v8827_v4  ;;  %v8890_v4 = vld [vmem:[#allocation66_spill] sm:$0xff]  ;;  %v8897_v8 = vld [vmem:[#allocation79_spill] sm:$0xff] }
 0x2db   : > { %5118 = vmatprep.mubr.msk.f32.mxu1 %vm6577_vm1, %v6578_v6  ;;  %5700 = vmatprep.mubr.msk.f32.mxu0 %vm6577_vm1, %v6578_v6 }
 0x2de   : > { %5119 = vmatmul.mubr.f32.gmra.mrb[96].mxu1 %v8886_v9  ;;  %5701 = vmatmul.mubr.f32.gmra.mrb[98].mxu0 %v7285_v0  ;;  %v8889_v0 = vld [vmem:[#allocation63_spill] sm:$0xff] }
 0x2df   : > { %5121 = vmatprep.mubr.msk.f32.mxu1 %vm6577_vm1, %v6578_v6  ;;  %5703 = vmatprep.mubr.msk.f32.mxu0 %vm6577_vm1, %v6578_v6 }
 0x2e2   : > { %5122 = vmatmul.mubr.f32.gmra.mrb[98].mxu1 %v8887_v28  ;;  %5704 = vmatmul.mubr.f32.gmra.mrb[100].mxu0 %v8828_v52  ;;  %v8898_v28 = vld [vmem:[#allocation80_spill] sm:$0xff] }
 0x2e3   : > { %5124 = vmatprep.mubr.msk.f32.mxu1 %vm6577_vm1, %v6578_v6  ;;  %5706 = vmatprep.mubr.msk.f32.mxu0 %vm6577_vm1, %v6578_v6 }
 0x2e6   : > { %5125 = vmatmul.mubr.f32.gmra.mrb[100].mxu1 %v8888_v33  ;;  %5707 = vmatmul.mubr.f32.gmra.mrb[102].mxu0 %v8829_v40  ;;  %v8187_v40 = vld [vmem:[%s8637_s2] ss:$0 sm:$0xff] }
 0x2e7   : > { %5127 = vmatprep.mubr.msk.f32.mxu1 %vm6577_vm1, %v6578_v6  ;;  %5709 = vmatprep.mubr.msk.f32.mxu0 %vm6577_vm1, %v6578_v6 }
 0x2ea   : > { %5128 = vmatmul.mubr.f32.gmra.mrb[102].mxu1 %v8889_v0  ;;  %5710 = vmatmul.mubr.f32.gmra.mrb[104].mxu0 %v8830_v63 }
 0x2eb   : > { %5130 = vmatprep.mubr.msk.f32.mxu1 %vm6577_vm1, %v6578_v6  ;;  %5712 = vmatprep.mubr.msk.f32.mxu0 %vm6577_vm1, %v6578_v6 }
 0x2ed   : > { %v3207_v20 = vpop.f32.mrb[0].mxu0 }
 0x2ee   : > { %5131 = vmatmul.mubr.f32.gmra.mrb[104].mxu1 %v8890_v4  ;;  %v5555_v52 = vpop.f32.mrb[1].mxu0  ;;  %5713 = vmatmul.mubr.f32.gmra.mrb[106].mxu0 %v8831_v36 }
 0x2ef   : > { %5133 = vmatprep.mubr.msk.f32.mxu1 %vm6577_vm1, %v6578_v6  ;;  %5715 = vmatprep.mubr.msk.f32.mxu0 %vm6577_vm1, %v6578_v6 }
 0x2f1   : > { %v1680_v63 = vpop.f32.mrb[0].mxu1  ;;  %v3213_v22 = vpop.f32.mrb[2].mxu0 }
 0x2f2   : > { %v5760_v23 = vadd.f32 %v8187_v40, %v1680_v63  ;;  %v4976_v24 = vpop.f32.mrb[1].mxu1  ;;  %5134 = vmatmul.mubr.f32.gmra.mrb[106].mxu1 %v8891_v26  ;;  %v5558_v36 = vpop.f32.mrb[3].mxu0  ;;  %5716 = vmatmul.mubr.f32.gmra.mrb[108].mxu0 %v8832_v10  ;;  %v8899_v63 = vld [vmem:[#allocation81_spill] sm:$0xff] }
 0x2f3   : > { %5136 = vmatprep.mubr.msk.f32.mxu1 %vm6577_vm1, %v6578_v6  ;;  %5718 = vmatprep.mubr.msk.f32.mxu0 %vm6577_vm1, %v6578_v6 }
 0x2f4   : > { %v5761_v37 = vadd.f32 %v5760_v23, %v3207_v20  ;;  %v8900_v23 = vld [vmem:[#allocation82_spill] sm:$0xff] }
 0x2f5   : > { %v1687_v46 = vpop.f32.mrb[2].mxu1  ;;  %v3219_v58 = vpop.f32.mrb[4].mxu0 }
 0x2f6   : > { %v3583_v60 = vmax.f32 %v5761_v37, 0.0  ;;  %v5762_v11 = vadd.f32 %v8187_v40, %v1687_v46  ;;  %v4979_v18 = vpop.f32.mrb[3].mxu1  ;;  %5137 = vmatmul.mubr.f32.gmra.mrb[108].mxu1 %v8892_v32  ;;  %v5561_v41 = vpop.f32.mrb[5].mxu0  ;;  %5719 = vmatmul.mubr.f32.gmra.mrb[110].mxu0 %v8833_v49  ;;  %v8893_v49 = vld [vmem:[#allocation71_spill] sm:$0xff] }
 0x2f7   : > { %5139 = vmatprep.mubr.msk.f32.mxu1 %vm6577_vm1, %v6578_v6  ;;  %5721 = vmatprep.mubr.msk.f32.mxu0 %vm6577_vm1, %v6578_v6 }
 0x2f8   : > { %3647 = vst.msk [vmem:[%s8207_s8] sm:$0xff] %vm3646_vm3, %v3583_v60  ;;  %v5763_v10 = vadd.f32 %v5762_v11, %v3213_v22  ;;  %v8901_v60 = vld [vmem:[#allocation83_spill] sm:$0xff] }
 0x2f9   : > { %v1694_v44 = vpop.f32.mrb[4].mxu1  ;;  %v3225_v54 = vpop.f32.mrb[6].mxu0 }
 0x2fa   : > { %v3584_v1 = vmax.f32 %v5763_v10, 0.0  ;;  %v5764_v19 = vadd.f32 %v8187_v40, %v1694_v44  ;;  %v4982_v35 = vpop.f32.mrb[5].mxu1  ;;  %5140 = vmatmul.mubr.f32.gmra.mrb[110].mxu1 %v8893_v49  ;;  %v5564_v48 = vpop.f32.mrb[7].mxu0  ;;  %5722 = vmatmul.mubr.f32.gmra.mrb[112].mxu0 %v8834_v29 }
 0x2fb   : > { %5142 = vmatprep.mubr.msk.f32.mxu1 %vm6577_vm1, %v6578_v6  ;;  %5724 = vmatprep.mubr.msk.f32.mxu0 %vm6577_vm1, %v6578_v6 }
 0x2fc   : > { %3648 = vst.msk [vmem:[%s8207_s8 + $0x8] sm:$0xff] %vm3646_vm3, %v3584_v1  ;;  %v5765_v56 = vadd.f32 %v5764_v19, %v3219_v58  ;;  %v8902_v1 = vld [vmem:[#allocation84_spill] sm:$0xff] }
 0x2fd   : > { %v1701_v5 = vpop.f32.mrb[6].mxu1  ;;  %v3231_v21 = vpop.f32.mrb[8].mxu0 }
 0x2fe   : > { %v3585_v43 = vmax.f32 %v5765_v56, 0.0  ;;  %v5766_v13 = vadd.f32 %v8187_v40, %v1701_v5  ;;  %v4985_v39 = vpop.f32.mrb[7].mxu1  ;;  %5143 = vmatmul.mubr.f32.gmra.mrb[112].mxu1 %v8894_v12  ;;  %v5567_v38 = vpop.f32.mrb[9].mxu0  ;;  %5725 = vmatmul.mubr.f32.gmra.mrb[114].mxu0 %v8835_v2 }
 0x2ff   : > { %5145 = vmatprep.mubr.msk.f32.mxu1 %vm6577_vm1, %v6578_v6  ;;  %5727 = vmatprep.mubr.msk.f32.mxu0 %vm6577_vm1, %v6578_v6 }
 0x300   : > { %3649 = vst.msk [vmem:[%s8207_s8 + $0x10] sm:$0xff] %vm3646_vm3, %v3585_v43  ;;  %v5767_v29 = vadd.f32 %v5766_v13, %v3225_v54 }
 0x301   : > { %v1708_v55 = vpop.f32.mrb[8].mxu1  ;;  %v3237_v62 = vpop.f32.mrb[10].mxu0 }
 0x302   : > { %v3586_v47 = vmax.f32 %v5767_v29, 0.0  ;;  %v5768_v34 = vadd.f32 %v8187_v40, %v1708_v55  ;;  %v4988_v15 = vpop.f32.mrb[9].mxu1  ;;  %5146 = vmatmul.mubr.f32.gmra.mrb[114].mxu1 %v8895_v14  ;;  %v5570_v25 = vpop.f32.mrb[11].mxu0  ;;  %5728 = vmatmul.mubr.f32.gmra.mrb[116].mxu0 %v8836_v16 }
 0x303   : > { %5148 = vmatprep.mubr.msk.f32.mxu1 %vm6577_vm1, %v6578_v6  ;;  %5730 = vmatprep.mubr.msk.f32.mxu0 %vm6577_vm1, %v6578_v6 }
 0x304   : > { %3650 = vst.msk [vmem:[%s8207_s8 + $0x18] sm:$0xff] %vm3646_vm3, %v3586_v47  ;;  %v5769_v2 = vadd.f32 %v5768_v34, %v3231_v21 }
 0x305   : > { %v1715_v51 = vpop.f32.mrb[10].mxu1  ;;  %v3243_v61 = vpop.f32.mrb[12].mxu0 }
 0x306   : > { %v3587_v31 = vmax.f32 %v5769_v2, 0.0  ;;  %v5770_v17 = vadd.f32 %v8187_v40, %v1715_v51  ;;  %v4991_v57 = vpop.f32.mrb[11].mxu1  ;;  %5149 = vmatmul.mubr.f32.gmra.mrb[116].mxu1 %v8896_v3  ;;  %v5573_v59 = vpop.f32.mrb[13].mxu0  ;;  %5731 = vmatmul.mubr.f32.gmra.mrb[118].mxu0 %v8837_v50 }
 0x307   : > { %5151 = vmatprep.mubr.msk.f32.mxu1 %vm6577_vm1, %v6578_v6  ;;  %5733 = vmatprep.mubr.msk.f32.mxu0 %vm6577_vm1, %v6578_v6 }
 0x308   : > { %3651 = vst.msk [vmem:[%s8207_s8 + $0x20] sm:$0xff] %vm3646_vm3, %v3587_v31  ;;  %v5771_v16 = vadd.f32 %v5770_v17, %v3237_v62 }
 0x309   : > { %v1722_v53 = vpop.f32.mrb[12].mxu1  ;;  %v3249_v42 = vpop.f32.mrb[14].mxu0 }
 0x30a   : > { %v3588_v30 = vmax.f32 %v5771_v16, 0.0  ;;  %v5772_v45 = vadd.f32 %v8187_v40, %v1722_v53  ;;  %v4994_v7 = vpop.f32.mrb[13].mxu1  ;;  %5152 = vmatmul.mubr.f32.gmra.mrb[118].mxu1 %v8897_v8  ;;  %v5576_v9 = vpop.f32.mrb[15].mxu0  ;;  %5734 = vmatmul.mubr.f32.gmra.mrb[120].mxu0 %v8898_v28 }
 0x30b   : > { %5154 = vmatprep.mubr.msk.f32.mxu1 %vm6577_vm1, %v6578_v6  ;;  %5736 = vmatprep.mubr.msk.f32.mxu0 %vm6577_vm1, %v6578_v6 }
 0x30c   : > { %3652 = vst.msk [vmem:[%s8207_s8 + $0x28] sm:$0xff] %vm3646_vm3, %v3588_v30  ;;  %v5773_v50 = vadd.f32 %v5772_v45, %v3243_v61 }
 0x30d   : > { %v1729_v33 = vpop.f32.mrb[14].mxu1  ;;  %v3255_v0 = vpop.f32.mrb[16].mxu0 }
 0x30e   : > { %v3589_v20 = vmax.f32 %v5773_v50, 0.0  ;;  %v5774_v4 = vadd.f32 %v8187_v40, %v1729_v33  ;;  %v4997_v52 = vpop.f32.mrb[15].mxu1  ;;  %5155 = vmatmul.mubr.f32.gmra.mrb[120].mxu1 %v8899_v63  ;;  %v5579_v22 = vpop.f32.mrb[17].mxu0  ;;  %5737 = vmatmul.mubr.f32.gmra.mrb[122].mxu0 %v8900_v23 }
 0x30f   : > { %5157 = vmatprep.mubr.msk.f32.mxu1 %vm6577_vm1, %v6578_v6  ;;  %5739 = vmatprep.mubr.msk.f32.mxu0 %vm6577_vm1, %v6578_v6 }
 0x310   : > { %3653 = vst.msk [vmem:[%s8207_s8 + $0x30] sm:$0xff] %vm3646_vm3, %v3589_v20  ;;  %v5775_v24 = vadd.f32 %v5774_v4, %v3249_v42 }
 0x311   : > { %v1736_v26 = vpop.f32.mrb[16].mxu1  ;;  %v3261_v36 = vpop.f32.mrb[18].mxu0 }
 0x312   : > { %v3590_v37 = vmax.f32 %v5775_v24, 0.0  ;;  %v5776_v46 = vadd.f32 %v8187_v40, %v1736_v26  ;;  %v5000_v58 = vpop.f32.mrb[17].mxu1  ;;  %5158 = vmatmul.mubr.f32.gmra.mrb[122].mxu1 %v8901_v60  ;;  %v5582_v11 = vpop.f32.mrb[19].mxu0  ;;  %5740 = vmatmul.mubr.f32.gmra.mrb[124].mxu0 %v7453_v27 }
 0x313   : > { %5160 = vmatprep.mubr.msk.f32.mxu1 %vm6577_vm1, %v6578_v6 }
 0x314   : > { %3654 = vst.msk [vmem:[%s8207_s8 + $0x38] sm:$0xff] %vm3646_vm3, %v3590_v37  ;;  %v5777_v18 = vadd.f32 %v5776_v46, %v3255_v0 }
 0x315   : > { %v1743_v32 = vpop.f32.mrb[18].mxu1  ;;  %v3267_v41 = vpop.f32.mrb[20].mxu0 }
 0x316   : > { %v3591_v10 = vmax.f32 %v5777_v18, 0.0  ;;  %v5778_v44 = vadd.f32 %v8187_v40, %v1743_v32  ;;  %v5003_v54 = vpop.f32.mrb[19].mxu1  ;;  %5161 = vmatmul.mubr.f32.gmra.mrb[124].mxu1 %v8902_v1  ;;  %v5585_v19 = vpop.f32.mrb[21].mxu0 }
 0x318   : > { %3655 = vst.msk [vmem:[%s8207_s8 + $0x40] sm:$0xff] %vm3646_vm3, %v3591_v10  ;;  %v5779_v27 = vadd.f32 %v5778_v44, %v3261_v36 }
 0x319   : > { %v1750_v35 = vpop.f32.mrb[20].mxu1  ;;  %v3273_v49 = vpop.f32.mrb[22].mxu0 }
 0x31a   : > { %v3592_v6 = vmax.f32 %v5779_v27, 0.0  ;;  %v5780_v48 = vadd.f32 %v8187_v40, %v1750_v35  ;;  %v5006_v56 = vpop.f32.mrb[21].mxu1  ;;  %v5588_v5 = vpop.f32.mrb[23].mxu0 }
 0x31c   : > { %3656 = vst.msk [vmem:[%s8207_s8 + $0x48] sm:$0xff] %vm3646_vm3, %v3592_v6  ;;  %v5781_v21 = vadd.f32 %v5780_v48, %v3267_v41 }
 0x31d   : > { %v1757_v43 = vpop.f32.mrb[22].mxu1  ;;  %v3279_v13 = vpop.f32.mrb[24].mxu0 }
 0x31e   : > { %v3593_v39 = vmax.f32 %v5781_v21, 0.0  ;;  %v5782_v12 = vadd.f32 %v8187_v40, %v1757_v43  ;;  %v5009_v38 = vpop.f32.mrb[23].mxu1  ;;  %v5591_v29 = vpop.f32.mrb[25].mxu0 }
 0x320   : > { %3657 = vst.msk [vmem:[%s8207_s8 + $0x50] sm:$0xff] %vm3646_vm3, %v3593_v39  ;;  %v5783_v55 = vadd.f32 %v5782_v12, %v3273_v49 }
 0x321   : > { %v1764_v62 = vpop.f32.mrb[24].mxu1  ;;  %v3285_v47 = vpop.f32.mrb[26].mxu0 }
 0x322   : > { %v3594_v34 = vmax.f32 %v5783_v55, 0.0  ;;  %v5784_v15 = vadd.f32 %v8187_v40, %v1764_v62  ;;  %v5012_v14 = vpop.f32.mrb[25].mxu1  ;;  %v5594_v25 = vpop.f32.mrb[27].mxu0 }
 0x324   : > { %3658 = vst.msk [vmem:[%s8207_s8 + $0x58] sm:$0xff] %vm3646_vm3, %v3594_v34  ;;  %v5785_v2 = vadd.f32 %v5784_v15, %v3279_v13 }
 0x325   : > { %v1771_v51 = vpop.f32.mrb[26].mxu1  ;;  %v3291_v61 = vpop.f32.mrb[28].mxu0 }
 0x326   : > { %v3595_v31 = vmax.f32 %v5785_v2, 0.0  ;;  %v5786_v17 = vadd.f32 %v8187_v40, %v1771_v51  ;;  %v5015_v57 = vpop.f32.mrb[27].mxu1  ;;  %v5597_v3 = vpop.f32.mrb[29].mxu0 }
 0x328   : > { %3659 = vst.msk [vmem:[%s8207_s8 + $0x60] sm:$0xff] %vm3646_vm3, %v3595_v31  ;;  %v5787_v59 = vadd.f32 %v5786_v17, %v3285_v47 }
 0x329   : > { %v1778_v16 = vpop.f32.mrb[28].mxu1  ;;  %v3297_v53 = vpop.f32.mrb[30].mxu0 }
 0x32a   : > { %v3596_v42 = vmax.f32 %v5787_v59, 0.0  ;;  %v5788_v30 = vadd.f32 %v8187_v40, %v1778_v16  ;;  %v5018_v45 = vpop.f32.mrb[29].mxu1  ;;  %v5600_v7 = vpop.f32.mrb[31].mxu0 }
 0x32c   : > { %3660 = vst.msk [vmem:[%s8207_s8 + $0x68] sm:$0xff] %vm3646_vm3, %v3596_v42  ;;  %v5789_v8 = vadd.f32 %v5788_v30, %v3291_v61 }
 0x32d   : > { %v1785_v9 = vpop.f32.mrb[30].mxu1  ;;  %v3303_v28 = vpop.f32.mrb[32].mxu0 }
 0x32e   : > { %v3597_v50 = vmax.f32 %v5789_v8, 0.0  ;;  %v5790_v33 = vadd.f32 %v8187_v40, %v1785_v9  ;;  %v5021_v0 = vpop.f32.mrb[31].mxu1  ;;  %v5603_v20 = vpop.f32.mrb[33].mxu0 }
 0x330   : > { %3661 = vst.msk [vmem:[%s8207_s8 + $0x70] sm:$0xff] %vm3646_vm3, %v3597_v50  ;;  %v5791_v4 = vadd.f32 %v5790_v33, %v3297_v53 }
 0x331   : > { %v1792_v52 = vpop.f32.mrb[32].mxu1  ;;  %v3309_v63 = vpop.f32.mrb[34].mxu0 }
 0x332   : > { %v3598_v22 = vmax.f32 %v5791_v4, 0.0  ;;  %v5792_v23 = vadd.f32 %v8187_v40, %v1792_v52  ;;  %v5024_v24 = vpop.f32.mrb[33].mxu1  ;;  %v5606_v26 = vpop.f32.mrb[35].mxu0 }
 0x334   : > { %3662 = vst.msk [vmem:[%s8207_s8 + $0x78] sm:$0xff] %vm3646_vm3, %v3598_v22  ;;  %v5793_v36 = vadd.f32 %v5792_v23, %v3303_v28 }
 0x335   : > { %v1799_v37 = vpop.f32.mrb[34].mxu1  ;;  %v3315_v46 = vpop.f32.mrb[36].mxu0 }
 0x336   : > { %v3599_v58 = vmax.f32 %v5793_v36, 0.0  ;;  %v5794_v60 = vadd.f32 %v8187_v40, %v1799_v37  ;;  %v5027_v11 = vpop.f32.mrb[35].mxu1  ;;  %v5609_v18 = vpop.f32.mrb[37].mxu0 }
 0x338   : > { %3663 = vst.msk [vmem:[%s8207_s8 + $0x80] sm:$0xff] %vm3646_vm3, %v3599_v58  ;;  %v5795_v32 = vadd.f32 %v5794_v60, %v3309_v63 }
 0x339   : > { %v1806_v41 = vpop.f32.mrb[36].mxu1  ;;  %v3321_v10 = vpop.f32.mrb[38].mxu0 }
 0x33a   : > { %v3600_v44 = vmax.f32 %v5795_v32, 0.0  ;;  %v5796_v54 = vadd.f32 %v8187_v40, %v1806_v41  ;;  %v5030_v1 = vpop.f32.mrb[37].mxu1  ;;  %v5612_v19 = vpop.f32.mrb[39].mxu0 }
 0x33c   : > { %3664 = vst.msk [vmem:[%s8207_s8 + $0x88] sm:$0xff] %vm3646_vm3, %v3600_v44  ;;  %v5797_v27 = vadd.f32 %v5796_v54, %v3315_v46 }
 0x33d   : > { %v1813_v35 = vpop.f32.mrb[38].mxu1  ;;  %v3327_v49 = vpop.f32.mrb[40].mxu0 }
 0x33e   : > { %v3601_v6 = vmax.f32 %v5797_v27, 0.0  ;;  %v5798_v48 = vadd.f32 %v8187_v40, %v1813_v35  ;;  %v5033_v56 = vpop.f32.mrb[39].mxu1  ;;  %v5615_v5 = vpop.f32.mrb[41].mxu0 }
 0x340   : > { %3665 = vst.msk [vmem:[%s8207_s8 + $0x90] sm:$0xff] %vm3646_vm3, %v3601_v6  ;;  %v5799_v21 = vadd.f32 %v5798_v48, %v3321_v10 }
 0x341   : > { %v1820_v43 = vpop.f32.mrb[40].mxu1  ;;  %v3333_v13 = vpop.f32.mrb[42].mxu0 }
 0x342   : > { %v3602_v39 = vmax.f32 %v5799_v21, 0.0  ;;  %v5800_v12 = vadd.f32 %v8187_v40, %v1820_v43  ;;  %v5036_v38 = vpop.f32.mrb[41].mxu1  ;;  %v5618_v29 = vpop.f32.mrb[43].mxu0 }
 0x344   : > { %3666 = vst.msk [vmem:[%s8207_s8 + $0x98] sm:$0xff] %vm3646_vm3, %v3602_v39  ;;  %v5801_v55 = vadd.f32 %v5800_v12, %v3327_v49 }
 0x345   : > { %v1827_v62 = vpop.f32.mrb[42].mxu1  ;;  %v3339_v47 = vpop.f32.mrb[44].mxu0 }
 0x346   : > { %v3603_v34 = vmax.f32 %v5801_v55, 0.0  ;;  %v5802_v15 = vadd.f32 %v8187_v40, %v1827_v62  ;;  %v5039_v14 = vpop.f32.mrb[43].mxu1  ;;  %v5621_v25 = vpop.f32.mrb[45].mxu0 }
 0x348   : > { %3667 = vst.msk [vmem:[%s8207_s8 + $0xa0] sm:$0xff] %vm3646_vm3, %v3603_v34  ;;  %v5803_v2 = vadd.f32 %v5802_v15, %v3333_v13 }
 0x349   : > { %v1834_v51 = vpop.f32.mrb[44].mxu1  ;;  %v3345_v61 = vpop.f32.mrb[46].mxu0 }
 0x34a   : > { %v3604_v31 = vmax.f32 %v5803_v2, 0.0  ;;  %v5804_v17 = vadd.f32 %v8187_v40, %v1834_v51  ;;  %v5042_v57 = vpop.f32.mrb[45].mxu1  ;;  %v5624_v3 = vpop.f32.mrb[47].mxu0 }
 0x34c   : > { %3668 = vst.msk [vmem:[%s8207_s8 + $0xa8] sm:$0xff] %vm3646_vm3, %v3604_v31  ;;  %v5805_v59 = vadd.f32 %v5804_v17, %v3339_v47 }
 0x34d   : > { %v1841_v16 = vpop.f32.mrb[46].mxu1  ;;  %v3351_v53 = vpop.f32.mrb[48].mxu0 }
 0x34e   : > { %v3605_v42 = vmax.f32 %v5805_v59, 0.0  ;;  %v5806_v30 = vadd.f32 %v8187_v40, %v1841_v16  ;;  %v5045_v45 = vpop.f32.mrb[47].mxu1  ;;  %v5627_v7 = vpop.f32.mrb[49].mxu0 }
 0x350   : > { %3669 = vst.msk [vmem:[%s8207_s8 + $0xb0] sm:$0xff] %vm3646_vm3, %v3605_v42  ;;  %v5807_v8 = vadd.f32 %v5806_v30, %v3345_v61 }
 0x351   : > { %v1848_v9 = vpop.f32.mrb[48].mxu1  ;;  %v3357_v28 = vpop.f32.mrb[50].mxu0 }
 0x352   : > { %v3606_v50 = vmax.f32 %v5807_v8, 0.0  ;;  %v5808_v33 = vadd.f32 %v8187_v40, %v1848_v9  ;;  %v5048_v0 = vpop.f32.mrb[49].mxu1  ;;  %v5630_v20 = vpop.f32.mrb[51].mxu0 }
 0x354   : > { %3670 = vst.msk [vmem:[%s8207_s8 + $0xb8] sm:$0xff] %vm3646_vm3, %v3606_v50  ;;  %v5809_v4 = vadd.f32 %v5808_v33, %v3351_v53 }
 0x355   : > { %v1855_v52 = vpop.f32.mrb[50].mxu1  ;;  %v3363_v63 = vpop.f32.mrb[52].mxu0 }
 0x356   : > { %v3607_v22 = vmax.f32 %v5809_v4, 0.0  ;;  %v5810_v23 = vadd.f32 %v8187_v40, %v1855_v52  ;;  %v5051_v24 = vpop.f32.mrb[51].mxu1  ;;  %v5633_v26 = vpop.f32.mrb[53].mxu0 }
 0x358   : > { %3671 = vst.msk [vmem:[%s8207_s8 + $0xc0] sm:$0xff] %vm3646_vm3, %v3607_v22  ;;  %v5811_v36 = vadd.f32 %v5810_v23, %v3357_v28 }
 0x359   : > { %v1862_v37 = vpop.f32.mrb[52].mxu1  ;;  %v3369_v46 = vpop.f32.mrb[54].mxu0 }
 0x35a   : > { %v3608_v58 = vmax.f32 %v5811_v36, 0.0  ;;  %v5812_v60 = vadd.f32 %v8187_v40, %v1862_v37  ;;  %v5054_v11 = vpop.f32.mrb[53].mxu1  ;;  %v5636_v18 = vpop.f32.mrb[55].mxu0 }
 0x35c   : > { %3672 = vst.msk [vmem:[%s8207_s8 + $0xc8] sm:$0xff] %vm3646_vm3, %v3608_v58  ;;  %v5813_v32 = vadd.f32 %v5812_v60, %v3363_v63 }
 0x35d   : > { %v1869_v41 = vpop.f32.mrb[54].mxu1  ;;  %v3375_v10 = vpop.f32.mrb[56].mxu0 }
 0x35e   : > { %v3609_v44 = vmax.f32 %v5813_v32, 0.0  ;;  %v5814_v54 = vadd.f32 %v8187_v40, %v1869_v41  ;;  %v5057_v1 = vpop.f32.mrb[55].mxu1  ;;  %v5639_v19 = vpop.f32.mrb[57].mxu0 }
 0x360   : > { %3673 = vst.msk [vmem:[%s8207_s8 + $0xd0] sm:$0xff] %vm3646_vm3, %v3609_v44  ;;  %v5815_v27 = vadd.f32 %v5814_v54, %v3369_v46 }
 0x361   : > { %v1876_v35 = vpop.f32.mrb[56].mxu1  ;;  %v3381_v49 = vpop.f32.mrb[58].mxu0 }
 0x362   : > { %v3610_v6 = vmax.f32 %v5815_v27, 0.0  ;;  %v5816_v48 = vadd.f32 %v8187_v40, %v1876_v35  ;;  %v5060_v56 = vpop.f32.mrb[57].mxu1  ;;  %v5642_v5 = vpop.f32.mrb[59].mxu0 }
 0x364   : > { %3674 = vst.msk [vmem:[%s8207_s8 + $0xd8] sm:$0xff] %vm3646_vm3, %v3610_v6  ;;  %v5817_v21 = vadd.f32 %v5816_v48, %v3375_v10 }
 0x365   : > { %v1883_v43 = vpop.f32.mrb[58].mxu1  ;;  %v3387_v13 = vpop.f32.mrb[60].mxu0 }
 0x366   : > { %v3611_v39 = vmax.f32 %v5817_v21, 0.0  ;;  %v5818_v12 = vadd.f32 %v8187_v40, %v1883_v43  ;;  %v5063_v38 = vpop.f32.mrb[59].mxu1  ;;  %v5645_v29 = vpop.f32.mrb[61].mxu0 }
 0x368   : > { %3675 = vst.msk [vmem:[%s8207_s8 + $0xe0] sm:$0xff] %vm3646_vm3, %v3611_v39  ;;  %v5819_v55 = vadd.f32 %v5818_v12, %v3381_v49 }
 0x369   : > { %v1890_v62 = vpop.f32.mrb[60].mxu1  ;;  %v3393_v47 = vpop.f32.mrb[62].mxu0 }
 0x36a   : > { %v3612_v34 = vmax.f32 %v5819_v55, 0.0  ;;  %v5820_v15 = vadd.f32 %v8187_v40, %v1890_v62  ;;  %v5066_v14 = vpop.f32.mrb[61].mxu1  ;;  %v5648_v25 = vpop.f32.mrb[63].mxu0 }
 0x36c   : > { %3676 = vst.msk [vmem:[%s8207_s8 + $0xe8] sm:$0xff] %vm3646_vm3, %v3612_v34  ;;  %v5821_v2 = vadd.f32 %v5820_v15, %v3387_v13 }
 0x36d   : > { %v1897_v51 = vpop.f32.mrb[62].mxu1  ;;  %v3399_v61 = vpop.f32.mrb[64].mxu0 }
 0x36e   : > { %v3613_v31 = vmax.f32 %v5821_v2, 0.0  ;;  %v5822_v17 = vadd.f32 %v8187_v40, %v1897_v51  ;;  %v5069_v57 = vpop.f32.mrb[63].mxu1  ;;  %v5651_v3 = vpop.f32.mrb[65].mxu0 }
 0x370   : > { %3677 = vst.msk [vmem:[%s8207_s8 + $0xf0] sm:$0xff] %vm3646_vm3, %v3613_v31  ;;  %v5823_v59 = vadd.f32 %v5822_v17, %v3393_v47 }
 0x371   : > { %v1904_v16 = vpop.f32.mrb[64].mxu1  ;;  %v3405_v53 = vpop.f32.mrb[66].mxu0 }
 0x372   : > { %v3614_v42 = vmax.f32 %v5823_v59, 0.0  ;;  %v5824_v30 = vadd.f32 %v8187_v40, %v1904_v16  ;;  %v5072_v45 = vpop.f32.mrb[65].mxu1  ;;  %v5654_v7 = vpop.f32.mrb[67].mxu0 }
 0x374   : > { %3678 = vst.msk [vmem:[%s8207_s8 + $0xf8] sm:$0xff] %vm3646_vm3, %v3614_v42  ;;  %v5825_v8 = vadd.f32 %v5824_v30, %v3399_v61 }
 0x375   : > { %v1911_v9 = vpop.f32.mrb[66].mxu1  ;;  %v3411_v28 = vpop.f32.mrb[68].mxu0 }
 0x376   : > { %v3615_v50 = vmax.f32 %v5825_v8, 0.0  ;;  %v5826_v33 = vadd.f32 %v8187_v40, %v1911_v9  ;;  %v5075_v0 = vpop.f32.mrb[67].mxu1  ;;  %v5657_v20 = vpop.f32.mrb[69].mxu0 }
 0x378   : > { %3679 = vst.msk [vmem:[%s8207_s8 + $0x100] sm:$0xff] %vm3646_vm3, %v3615_v50  ;;  %v5827_v4 = vadd.f32 %v5826_v33, %v3405_v53 }
 0x379   : > { %v1918_v52 = vpop.f32.mrb[68].mxu1  ;;  %v3417_v63 = vpop.f32.mrb[70].mxu0 }
 0x37a   : > { %v3616_v22 = vmax.f32 %v5827_v4, 0.0  ;;  %v5828_v23 = vadd.f32 %v8187_v40, %v1918_v52  ;;  %v5078_v24 = vpop.f32.mrb[69].mxu1  ;;  %v5660_v26 = vpop.f32.mrb[71].mxu0 }
 0x37c   : > { %3680 = vst.msk [vmem:[%s8207_s8 + $0x108] sm:$0xff] %vm3646_vm3, %v3616_v22  ;;  %v5829_v36 = vadd.f32 %v5828_v23, %v3411_v28 }
 0x37d   : > { %v1925_v37 = vpop.f32.mrb[70].mxu1  ;;  %v3423_v46 = vpop.f32.mrb[72].mxu0 }
 0x37e   : > { %v3617_v58 = vmax.f32 %v5829_v36, 0.0  ;;  %v5830_v60 = vadd.f32 %v8187_v40, %v1925_v37  ;;  %v5081_v11 = vpop.f32.mrb[71].mxu1  ;;  %v5663_v18 = vpop.f32.mrb[73].mxu0 }
 0x380   : > { %3681 = vst.msk [vmem:[%s8207_s8 + $0x110] sm:$0xff] %vm3646_vm3, %v3617_v58  ;;  %v5831_v32 = vadd.f32 %v5830_v60, %v3417_v63 }
 0x381   : > { %v1932_v41 = vpop.f32.mrb[72].mxu1  ;;  %v3429_v10 = vpop.f32.mrb[74].mxu0 }
 0x382   : > { %v3618_v44 = vmax.f32 %v5831_v32, 0.0  ;;  %v5832_v54 = vadd.f32 %v8187_v40, %v1932_v41  ;;  %v5084_v1 = vpop.f32.mrb[73].mxu1  ;;  %v5666_v19 = vpop.f32.mrb[75].mxu0 }
 0x384   : > { %3682 = vst.msk [vmem:[%s8207_s8 + $0x118] sm:$0xff] %vm3646_vm3, %v3618_v44  ;;  %v5833_v27 = vadd.f32 %v5832_v54, %v3423_v46 }
 0x385   : > { %v1939_v35 = vpop.f32.mrb[74].mxu1  ;;  %v3435_v49 = vpop.f32.mrb[76].mxu0 }
 0x386   : > { %v3619_v6 = vmax.f32 %v5833_v27, 0.0  ;;  %v5834_v48 = vadd.f32 %v8187_v40, %v1939_v35  ;;  %v5087_v56 = vpop.f32.mrb[75].mxu1  ;;  %v5669_v5 = vpop.f32.mrb[77].mxu0 }
 0x388   : > { %3683 = vst.msk [vmem:[%s8207_s8 + $0x120] sm:$0xff] %vm3646_vm3, %v3619_v6  ;;  %v5835_v21 = vadd.f32 %v5834_v48, %v3429_v10 }
 0x389   : > { %v1946_v43 = vpop.f32.mrb[76].mxu1  ;;  %v3441_v13 = vpop.f32.mrb[78].mxu0 }
 0x38a   : > { %v3620_v39 = vmax.f32 %v5835_v21, 0.0  ;;  %v5836_v12 = vadd.f32 %v8187_v40, %v1946_v43  ;;  %v5090_v38 = vpop.f32.mrb[77].mxu1  ;;  %v5672_v29 = vpop.f32.mrb[79].mxu0 }
 0x38c   : > { %3684 = vst.msk [vmem:[%s8207_s8 + $0x128] sm:$0xff] %vm3646_vm3, %v3620_v39  ;;  %v5837_v55 = vadd.f32 %v5836_v12, %v3435_v49 }
 0x38d   : > { %v1953_v62 = vpop.f32.mrb[78].mxu1  ;;  %v3447_v47 = vpop.f32.mrb[80].mxu0 }
 0x38e   : > { %v3621_v34 = vmax.f32 %v5837_v55, 0.0  ;;  %v5838_v15 = vadd.f32 %v8187_v40, %v1953_v62  ;;  %v5093_v14 = vpop.f32.mrb[79].mxu1  ;;  %v5675_v25 = vpop.f32.mrb[81].mxu0 }
 0x390   : > { %3685 = vst.msk [vmem:[%s8207_s8 + $0x130] sm:$0xff] %vm3646_vm3, %v3621_v34  ;;  %v5839_v2 = vadd.f32 %v5838_v15, %v3441_v13 }
 0x391   : > { %v1960_v51 = vpop.f32.mrb[80].mxu1  ;;  %v3453_v61 = vpop.f32.mrb[82].mxu0 }
 0x392   : > { %v3622_v31 = vmax.f32 %v5839_v2, 0.0  ;;  %v5840_v17 = vadd.f32 %v8187_v40, %v1960_v51  ;;  %v5096_v57 = vpop.f32.mrb[81].mxu1  ;;  %v5678_v3 = vpop.f32.mrb[83].mxu0 }
 0x394   : > { %3686 = vst.msk [vmem:[%s8207_s8 + $0x138] sm:$0xff] %vm3646_vm3, %v3622_v31  ;;  %v5841_v59 = vadd.f32 %v5840_v17, %v3447_v47 }
 0x395   : > { %v1967_v16 = vpop.f32.mrb[82].mxu1  ;;  %v3459_v53 = vpop.f32.mrb[84].mxu0 }
 0x396   : > { %v3623_v42 = vmax.f32 %v5841_v59, 0.0  ;;  %v5842_v30 = vadd.f32 %v8187_v40, %v1967_v16  ;;  %v5099_v45 = vpop.f32.mrb[83].mxu1  ;;  %v5681_v7 = vpop.f32.mrb[85].mxu0 }
 0x398   : > { %3687 = vst.msk [vmem:[%s8207_s8 + $0x140] sm:$0xff] %vm3646_vm3, %v3623_v42  ;;  %v5843_v8 = vadd.f32 %v5842_v30, %v3453_v61 }
 0x399   : > { %v1974_v9 = vpop.f32.mrb[84].mxu1  ;;  %v3465_v28 = vpop.f32.mrb[86].mxu0 }
 0x39a   : > { %v3624_v50 = vmax.f32 %v5843_v8, 0.0  ;;  %v5844_v33 = vadd.f32 %v8187_v40, %v1974_v9  ;;  %v5102_v0 = vpop.f32.mrb[85].mxu1  ;;  %v5684_v20 = vpop.f32.mrb[87].mxu0 }
 0x39c   : > { %3688 = vst.msk [vmem:[%s8207_s8 + $0x148] sm:$0xff] %vm3646_vm3, %v3624_v50  ;;  %v5845_v4 = vadd.f32 %v5844_v33, %v3459_v53 }
 0x39d   : > { %v1981_v52 = vpop.f32.mrb[86].mxu1  ;;  %v3471_v63 = vpop.f32.mrb[88].mxu0 }
 0x39e   : > { %v3625_v22 = vmax.f32 %v5845_v4, 0.0  ;;  %v5846_v23 = vadd.f32 %v8187_v40, %v1981_v52  ;;  %v5105_v24 = vpop.f32.mrb[87].mxu1  ;;  %v5687_v26 = vpop.f32.mrb[89].mxu0 }
 0x3a0   : > { %3689 = vst.msk [vmem:[%s8207_s8 + $0x150] sm:$0xff] %vm3646_vm3, %v3625_v22  ;;  %v5847_v36 = vadd.f32 %v5846_v23, %v3465_v28 }
 0x3a1   : > { %v1988_v37 = vpop.f32.mrb[88].mxu1  ;;  %v3477_v46 = vpop.f32.mrb[90].mxu0 }
 0x3a2   : > { %v3626_v58 = vmax.f32 %v5847_v36, 0.0  ;;  %v5848_v60 = vadd.f32 %v8187_v40, %v1988_v37  ;;  %v5108_v11 = vpop.f32.mrb[89].mxu1  ;;  %v5690_v18 = vpop.f32.mrb[91].mxu0 }
 0x3a4   : > { %3690 = vst.msk [vmem:[%s8207_s8 + $0x158] sm:$0xff] %vm3646_vm3, %v3626_v58  ;;  %v5849_v32 = vadd.f32 %v5848_v60, %v3471_v63 }
 0x3a5   : > { %v1995_v41 = vpop.f32.mrb[90].mxu1  ;;  %v3483_v10 = vpop.f32.mrb[92].mxu0 }
 0x3a6   : > { %v3627_v44 = vmax.f32 %v5849_v32, 0.0  ;;  %v5850_v54 = vadd.f32 %v8187_v40, %v1995_v41  ;;  %v5111_v1 = vpop.f32.mrb[91].mxu1  ;;  %v5693_v19 = vpop.f32.mrb[93].mxu0 }
 0x3a8   : > { %3691 = vst.msk [vmem:[%s8207_s8 + $0x160] sm:$0xff] %vm3646_vm3, %v3627_v44  ;;  %v5851_v27 = vadd.f32 %v5850_v54, %v3477_v46 }
 0x3a9   : > { %v2002_v35 = vpop.f32.mrb[92].mxu1  ;;  %v3489_v49 = vpop.f32.mrb[94].mxu0 }
 0x3aa   : > { %v3628_v6 = vmax.f32 %v5851_v27, 0.0  ;;  %v5852_v48 = vadd.f32 %v8187_v40, %v2002_v35  ;;  %v5114_v56 = vpop.f32.mrb[93].mxu1  ;;  %v5696_v5 = vpop.f32.mrb[95].mxu0 }
 0x3ac   : > { %3692 = vst.msk [vmem:[%s8207_s8 + $0x168] sm:$0xff] %vm3646_vm3, %v3628_v6  ;;  %v5853_v21 = vadd.f32 %v5852_v48, %v3483_v10 }
 0x3ad   : > { %v2009_v43 = vpop.f32.mrb[94].mxu1  ;;  %v3495_v13 = vpop.f32.mrb[96].mxu0 }
 0x3ae   : > { %v3629_v39 = vmax.f32 %v5853_v21, 0.0  ;;  %v5854_v12 = vadd.f32 %v8187_v40, %v2009_v43  ;;  %v5117_v38 = vpop.f32.mrb[95].mxu1  ;;  %v5699_v29 = vpop.f32.mrb[97].mxu0 }
 0x3b0   : > { %3693 = vst.msk [vmem:[%s8207_s8 + $0x170] sm:$0xff] %vm3646_vm3, %v3629_v39  ;;  %v5855_v55 = vadd.f32 %v5854_v12, %v3489_v49 }
 0x3b1   : > { %v2016_v62 = vpop.f32.mrb[96].mxu1  ;;  %v3501_v47 = vpop.f32.mrb[98].mxu0 }
 0x3b2   : > { %v3630_v34 = vmax.f32 %v5855_v55, 0.0  ;;  %v5856_v15 = vadd.f32 %v8187_v40, %v2016_v62  ;;  %v5120_v14 = vpop.f32.mrb[97].mxu1  ;;  %v5702_v25 = vpop.f32.mrb[99].mxu0 }
 0x3b4   : > { %3694 = vst.msk [vmem:[%s8207_s8 + $0x178] sm:$0xff] %vm3646_vm3, %v3630_v34  ;;  %v5857_v2 = vadd.f32 %v5856_v15, %v3495_v13 }
 0x3b5   : > { %v2023_v51 = vpop.f32.mrb[98].mxu1  ;;  %v3507_v61 = vpop.f32.mrb[100].mxu0 }
 0x3b6   : > { %v3631_v31 = vmax.f32 %v5857_v2, 0.0  ;;  %v5858_v17 = vadd.f32 %v8187_v40, %v2023_v51  ;;  %v5123_v57 = vpop.f32.mrb[99].mxu1  ;;  %v5705_v3 = vpop.f32.mrb[101].mxu0 }
 0x3b8   : > { %3695 = vst.msk [vmem:[%s8207_s8 + $0x180] sm:$0xff] %vm3646_vm3, %v3631_v31  ;;  %v5859_v59 = vadd.f32 %v5858_v17, %v3501_v47 }
 0x3b9   : > { %v2030_v16 = vpop.f32.mrb[100].mxu1  ;;  %v3513_v53 = vpop.f32.mrb[102].mxu0 }
 0x3ba   : > { %v3632_v42 = vmax.f32 %v5859_v59, 0.0  ;;  %v5860_v30 = vadd.f32 %v8187_v40, %v2030_v16  ;;  %v5126_v45 = vpop.f32.mrb[101].mxu1  ;;  %v5708_v7 = vpop.f32.mrb[103].mxu0 }
 0x3bc   : > { %3696 = vst.msk [vmem:[%s8207_s8 + $0x188] sm:$0xff] %vm3646_vm3, %v3632_v42  ;;  %v5861_v8 = vadd.f32 %v5860_v30, %v3507_v61  ;;  %v6483_v30 = vld [vmem:[%s8637_s2] ss:$0 sm:$0xff] }
 0x3bd   : > { %v2037_v9 = vpop.f32.mrb[102].mxu1  ;;  %v3519_v28 = vpop.f32.mrb[104].mxu0 }
 0x3be   : > { %v3633_v50 = vmax.f32 %v5861_v8, 0.0  ;;  %v5862_v33 = vadd.f32 %v8187_v40, %v2037_v9  ;;  %v5129_v0 = vpop.f32.mrb[103].mxu1  ;;  %v5711_v20 = vpop.f32.mrb[105].mxu0 }
 0x3c0   : > { %3697 = vst.msk [vmem:[%s8207_s8 + $0x190] sm:$0xff] %vm3646_vm3, %v3633_v50  ;;  %v5863_v4 = vadd.f32 %v5862_v33, %v3513_v53 }
 0x3c1   : > { %v2044_v52 = vpop.f32.mrb[104].mxu1  ;;  %v3525_v63 = vpop.f32.mrb[106].mxu0 }
 0x3c2   : > { %v3634_v22 = vmax.f32 %v5863_v4, 0.0  ;;  %v5864_v23 = vadd.f32 %v8187_v40, %v2044_v52  ;;  %v5132_v24 = vpop.f32.mrb[105].mxu1  ;;  %v5714_v26 = vpop.f32.mrb[107].mxu0 }
 0x3c4   : > { %3698 = vst.msk [vmem:[%s8207_s8 + $0x198] sm:$0xff] %vm3646_vm3, %v3634_v22  ;;  %v5865_v36 = vadd.f32 %v5864_v23, %v3519_v28 }
 0x3c5   : > { %v2051_v37 = vpop.f32.mrb[106].mxu1  ;;  %v3531_v46 = vpop.f32.mrb[108].mxu0 }
 0x3c6   : > { %v3635_v58 = vmax.f32 %v5865_v36, 0.0  ;;  %v5866_v60 = vadd.f32 %v8187_v40, %v2051_v37  ;;  %v5135_v11 = vpop.f32.mrb[107].mxu1  ;;  %v5717_v18 = vpop.f32.mrb[109].mxu0 }
 0x3c8   : > { %3699 = vst.msk [vmem:[%s8207_s8 + $0x1a0] sm:$0xff] %vm3646_vm3, %v3635_v58  ;;  %v5867_v32 = vadd.f32 %v5866_v60, %v3525_v63 }
 0x3c9   : > { %v2058_v41 = vpop.f32.mrb[108].mxu1  ;;  %v3537_v10 = vpop.f32.mrb[110].mxu0 }
 0x3ca   : > { %v3636_v44 = vmax.f32 %v5867_v32, 0.0  ;;  %v5868_v54 = vadd.f32 %v8187_v40, %v2058_v41  ;;  %v5138_v1 = vpop.f32.mrb[109].mxu1  ;;  %v5720_v19 = vpop.f32.mrb[111].mxu0 }
 0x3cc   : > { %3700 = vst.msk [vmem:[%s8207_s8 + $0x1a8] sm:$0xff] %vm3646_vm3, %v3636_v44  ;;  %v5869_v27 = vadd.f32 %v5868_v54, %v3531_v46 }
 0x3cd   : > { %v2065_v35 = vpop.f32.mrb[110].mxu1  ;;  %v3543_v49 = vpop.f32.mrb[112].mxu0 }
 0x3ce   : > { %v3637_v6 = vmax.f32 %v5869_v27, 0.0  ;;  %v5870_v48 = vadd.f32 %v8187_v40, %v2065_v35  ;;  %v5141_v56 = vpop.f32.mrb[111].mxu1  ;;  %v5723_v5 = vpop.f32.mrb[113].mxu0 }
 0x3d0   : > { %3701 = vst.msk [vmem:[%s8207_s8 + $0x1b0] sm:$0xff] %vm3646_vm3, %v3637_v6  ;;  %v5871_v21 = vadd.f32 %v5870_v48, %v3537_v10 }
 0x3d1   : > { %v2072_v43 = vpop.f32.mrb[112].mxu1  ;;  %v3549_v13 = vpop.f32.mrb[114].mxu0 }
 0x3d2   : > { %v3638_v39 = vmax.f32 %v5871_v21, 0.0  ;;  %v5872_v12 = vadd.f32 %v8187_v40, %v2072_v43  ;;  %v5144_v38 = vpop.f32.mrb[113].mxu1  ;;  %v5726_v29 = vpop.f32.mrb[115].mxu0 }
 0x3d4   : > { %3702 = vst.msk [vmem:[%s8207_s8 + $0x1b8] sm:$0xff] %vm3646_vm3, %v3638_v39  ;;  %v5873_v55 = vadd.f32 %v5872_v12, %v3543_v49 }
 0x3d5   : > { %v2079_v62 = vpop.f32.mrb[114].mxu1  ;;  %v3555_v47 = vpop.f32.mrb[116].mxu0 }
 0x3d6   : > { %v3639_v34 = vmax.f32 %v5873_v55, 0.0  ;;  %v5874_v15 = vadd.f32 %v8187_v40, %v2079_v62  ;;  %v5147_v14 = vpop.f32.mrb[115].mxu1  ;;  %v5729_v25 = vpop.f32.mrb[117].mxu0 }
 0x3d8   : > { %3703 = vst.msk [vmem:[%s8207_s8 + $0x1c0] sm:$0xff] %vm3646_vm3, %v3639_v34  ;;  %v5875_v2 = vadd.f32 %v5874_v15, %v3549_v13 }
 0x3d9   : > { %v2086_v51 = vpop.f32.mrb[116].mxu1  ;;  %v3561_v61 = vpop.f32.mrb[118].mxu0 }
 0x3da   : > { %v3640_v31 = vmax.f32 %v5875_v2, 0.0  ;;  %v5876_v17 = vadd.f32 %v8187_v40, %v2086_v51  ;;  %v5150_v57 = vpop.f32.mrb[117].mxu1  ;;  %v5732_v3 = vpop.f32.mrb[119].mxu0 }
 0x3dc   : > { %3704 = vst.msk [vmem:[%s8207_s8 + $0x1c8] sm:$0xff] %vm3646_vm3, %v3640_v31  ;;  %v5877_v59 = vadd.f32 %v5876_v17, %v3555_v47 }
 0x3dd   : > { %v2093_v16 = vpop.f32.mrb[118].mxu1  ;;  %v3567_v53 = vpop.f32.mrb[120].mxu0 }
 0x3de   : > { %v3641_v42 = vmax.f32 %v5877_v59, 0.0  ;;  %v5878_v45 = vadd.f32 %v6483_v30, %v2093_v16  ;;  %v5153_v7 = vpop.f32.mrb[119].mxu1  ;;  %v5735_v8 = vpop.f32.mrb[121].mxu0 }
 0x3e0   : > { %3705 = vst.msk [vmem:[%s8207_s8 + $0x1d0] sm:$0xff] %vm3646_vm3, %v3641_v42  ;;  %v5879_v40 = vadd.f32 %v5878_v45, %v3561_v61 }
 0x3e1   : > { %v2100_v9 = vpop.f32.mrb[120].mxu1  ;;  %v3573_v28 = vpop.f32.mrb[122].mxu0 }
 0x3e2   : > { %v3642_v50 = vmax.f32 %v5879_v40, 0.0  ;;  %v5880_v33 = vadd.f32 %v6483_v30, %v2100_v9  ;;  %v5156_v0 = vpop.f32.mrb[121].mxu1  ;;  %v5738_v20 = vpop.f32.mrb[123].mxu0 }
 0x3e4   : > { %3706 = vst.msk [vmem:[%s8207_s8 + $0x1d8] sm:$0xff] %vm3646_vm3, %v3642_v50  ;;  %v5881_v4 = vadd.f32 %v5880_v33, %v3567_v53 }
 0x3e5   : > { %v2107_v52 = vpop.f32.mrb[122].mxu1  ;;  %v3579_v63 = vpop.f32.mrb[124].mxu0 }
 0x3e6   : > { %v3643_v22 = vmax.f32 %v5881_v4, 0.0  ;;  %v5882_v23 = vadd.f32 %v6483_v30, %v2107_v52  ;;  %v5159_v24 = vpop.f32.mrb[123].mxu1  ;;  %v5741_v26 = vpop.f32.mrb[125].mxu0 }
 0x3e8   : > { %3707 = vst.msk [vmem:[%s8207_s8 + $0x1e0] sm:$0xff] %vm3646_vm3, %v3643_v22  ;;  %v5883_v36 = vadd.f32 %v5882_v23, %v3573_v28 }
 0x3e9   : > { %v2114_v37 = vpop.f32.mrb[124].mxu1 }
 0x3ea   : > { %v3644_v46 = vmax.f32 %v5883_v36, 0.0  ;;  %v5884_v58 = vadd.f32 %v6483_v30, %v2114_v37  ;;  %v5162_v60 = vpop.f32.mrb[125].mxu1  ;;  %3716 = sbr.rel (!%p6624_p4) target bundleno = 1093 (0x445), region = 36 }
 0x3ec   : > { %3708 = vst.msk [vmem:[%s8207_s8 + $0x1e8] sm:$0xff] %vm3646_vm3, %v3644_v46  ;;  %v5885_v11 = vadd.f32 %v5884_v58, %v3579_v63 }
 0x3ee   : > { %v3645_v18 = vmax.f32 %v5885_v11, 0.0 }
 0x3f0   : > { %3709 = vst.msk [vmem:[%s8207_s8 + $0x1f0] sm:$0xff] %vm3646_vm3, %v3645_v18 }
 0x3f1   : > { %s8912_s11 = smov (!%p3719_p8, %s3718_s11), 63 }
 0x3f2   : > { %s4181_s21 = sshll.u32 %s8912_s11, 7 }
 0x3f3   : > { %p4184_p9 = scmp.eq.s32.totalorder %s4181_s21, 0 }
 0x3f4   : > { %6484 = sdivrem.u32 (!%p4184_p9), %s8912_s11, 63 }
 0x3f5   : > { %3727 = sbr.rel (%p4184_p9) target bundleno = 1093 (0x445), region = 40 }
 0x3fd   : > { %s8449_s20 = spop.drf %6484 }
 0x3fe   : > { %p4185_p10 = scmp.le.s32.totalorder %s8449_s20, 0 }
 0x3ff   : > { %s8903_s15 = smov (!%p4185_p10), %s8443_s18  ;;  %s8904_s22 = smov (!%p4185_p10), %s8207_s8 }
 0x400   : > { %4131 = sbr.rel (%p4185_p10) target bundleno = 1064 (0x428), region = 116  ;;  %s8458_s23 = smov (!%p4185_p10), 0  }
 0x401   : > { %s8460_s24 = smov (!%p4185_p10), 0  }
 0x407 LB: >> { %v3915_v32 = vld [vmem:[%s6550_s22] sm:$0xff]  ;;  %v3917_v41 = vld [vmem:[%s6550_s22 + $0x8] sm:$0xff]  ;;  %v3919_v10 = vld [vmem:[%s6550_s22 + $0x10] sm:$0xff]  ;;  %s4041_s25 = sadd.s32 1, %s6554_s23  ;;  %s3909_s24 = sadd.s32 1, %s6558_s24   ;;  %s6558_s24 = sphi %s8460_s24, %s3909_s24   ;;  %s6554_s23 = sphi %s8458_s23, %s8907_s23   ;;  %s6550_s22 = sphi %s8904_s22, %s8906_s22   ;;  %s6546_s15 = sphi %s8903_s15, %s8905_s15  }
 0x408   : >> { %3916 = vst [vmem:[%s6546_s15] sm:$0xff] %v3915_v32  ;;  %3918 = vst [vmem:[%s6546_s15 + $0x8] sm:$0xff] %v3917_v41  ;;  %v3921_v44 = vld [vmem:[%s6550_s22 + $0x18] sm:$0xff]  ;;  %v3923_v54 = vld [vmem:[%s6550_s22 + $0x20] sm:$0xff]  ;;  %p4042_p11 = scmp.ge.s32.totalorder %s4041_s25, %s8449_s20  ;;  %p3908_p12 = scmp.ge.s32.totalorder %s3909_s24, %s8449_s20 }
 0x409   : >> { %3920 = vst [vmem:[%s6546_s15 + $0x10] sm:$0xff] %v3919_v10  ;;  %v3925_v1 = vld [vmem:[%s6550_s22 + $0x28] sm:$0xff]  ;;  %3922 = vst [vmem:[%s6546_s15 + $0x18] sm:$0xff] %v3921_v44  ;;  %v3927_v19 = vld [vmem:[%s6550_s22 + $0x30] sm:$0xff] }
 0x40a   : >> { %3924 = vst [vmem:[%s6546_s15 + $0x20] sm:$0xff] %v3923_v54  ;;  %3926 = vst [vmem:[%s6546_s15 + $0x28] sm:$0xff] %v3925_v1  ;;  %v3929_v27 = vld [vmem:[%s6550_s22 + $0x38] sm:$0xff]  ;;  %v3931_v35 = vld [vmem:[%s6550_s22 + $0x40] sm:$0xff]  ;;  %s8914_s25 = smov (%p4042_p11, %s4041_s25), 0 }
 0x40b   : >> { %3928 = vst [vmem:[%s6546_s15 + $0x30] sm:$0xff] %v3927_v19  ;;  %3930 = vst [vmem:[%s6546_s15 + $0x38] sm:$0xff] %v3929_v27  ;;  %v3933_v49 = vld [vmem:[%s6550_s22 + $0x48] sm:$0xff]  ;;  %v3935_v6 = vld [vmem:[%s6550_s22 + $0x50] sm:$0xff]  ;;  %s4044_s26 = smul.u32 504, %s8914_s25  ;;  %s8907_s23 = smov %s8914_s25 }
 0x40c   : >> { %3932 = vst [vmem:[%s6546_s15 + $0x40] sm:$0xff] %v3931_v35  ;;  %v3937_v48 = vld [vmem:[%s6550_s22 + $0x58] sm:$0xff]  ;;  %3934 = vst [vmem:[%s6546_s15 + $0x48] sm:$0xff] %v3933_v49  ;;  %v3939_v56 = vld [vmem:[%s6550_s22 + $0x60] sm:$0xff] }
 0x40d   : >> { %3936 = vst [vmem:[%s6546_s15 + $0x50] sm:$0xff] %v3935_v6  ;;  %3938 = vst [vmem:[%s6546_s15 + $0x58] sm:$0xff] %v3937_v48  ;;  %v3941_v5 = vld [vmem:[%s6550_s22 + $0x68] sm:$0xff]  ;;  %v3943_v21 = vld [vmem:[%s6550_s22 + $0x70] sm:$0xff]  ;;  %s8522_s27 = scalar_lea.vmem %s8207_s8, %s4044_s26 [#allocation2]   ;;  %s8525_s28 = scalar_lea.vmem %s8443_s18, %s4044_s26  }
 0x40e   : >> { %3940 = vst [vmem:[%s6546_s15 + $0x60] sm:$0xff] %v3939_v56  ;;  %3942 = vst [vmem:[%s6546_s15 + $0x68] sm:$0xff] %v3941_v5  ;;  %v3945_v43 = vld [vmem:[%s6550_s22 + $0x78] sm:$0xff]  ;;  %v3947_v13 = vld [vmem:[%s6550_s22 + $0x80] sm:$0xff] }
 0x40f   : >> { %3944 = vst [vmem:[%s6546_s15 + $0x70] sm:$0xff] %v3943_v21  ;;  %v3949_v39 = vld [vmem:[%s6550_s22 + $0x88] sm:$0xff]  ;;  %3946 = vst [vmem:[%s6546_s15 + $0x78] sm:$0xff] %v3945_v43  ;;  %v3951_v12 = vld [vmem:[%s6550_s22 + $0x90] sm:$0xff] }
 0x410   : >> { %3948 = vst [vmem:[%s6546_s15 + $0x80] sm:$0xff] %v3947_v13  ;;  %3950 = vst [vmem:[%s6546_s15 + $0x88] sm:$0xff] %v3949_v39  ;;  %v3953_v38 = vld [vmem:[%s6550_s22 + $0x98] sm:$0xff]  ;;  %v3955_v29 = vld [vmem:[%s6550_s22 + $0xa0] sm:$0xff] }
 0x411   : >> { %3952 = vst [vmem:[%s6546_s15 + $0x90] sm:$0xff] %v3951_v12  ;;  %3954 = vst [vmem:[%s6546_s15 + $0x98] sm:$0xff] %v3953_v38  ;;  %v3957_v55 = vld [vmem:[%s6550_s22 + $0xa8] sm:$0xff]  ;;  %v3959_v62 = vld [vmem:[%s6550_s22 + $0xb0] sm:$0xff] }
 0x412   : >> { %3956 = vst [vmem:[%s6546_s15 + $0xa0] sm:$0xff] %v3955_v29  ;;  %v3961_v47 = vld [vmem:[%s6550_s22 + $0xb8] sm:$0xff]  ;;  %3958 = vst [vmem:[%s6546_s15 + $0xa8] sm:$0xff] %v3957_v55  ;;  %v3963_v34 = vld [vmem:[%s6550_s22 + $0xc0] sm:$0xff] }
 0x413   : >> { %3960 = vst [vmem:[%s6546_s15 + $0xb0] sm:$0xff] %v3959_v62  ;;  %3962 = vst [vmem:[%s6546_s15 + $0xb8] sm:$0xff] %v3961_v47  ;;  %v3965_v15 = vld [vmem:[%s6550_s22 + $0xc8] sm:$0xff]  ;;  %v3967_v14 = vld [vmem:[%s6550_s22 + $0xd0] sm:$0xff] }
 0x414   : >> { %3964 = vst [vmem:[%s6546_s15 + $0xc0] sm:$0xff] %v3963_v34  ;;  %3966 = vst [vmem:[%s6546_s15 + $0xc8] sm:$0xff] %v3965_v15  ;;  %v3969_v25 = vld [vmem:[%s6550_s22 + $0xd8] sm:$0xff]  ;;  %v3971_v2 = vld [vmem:[%s6550_s22 + $0xe0] sm:$0xff] }
 0x415   : >> { %3968 = vst [vmem:[%s6546_s15 + $0xd0] sm:$0xff] %v3967_v14  ;;  %v3973_v51 = vld [vmem:[%s6550_s22 + $0xe8] sm:$0xff]  ;;  %3970 = vst [vmem:[%s6546_s15 + $0xd8] sm:$0xff] %v3969_v25  ;;  %v3975_v61 = vld [vmem:[%s6550_s22 + $0xf0] sm:$0xff] }
 0x416   : >> { %3972 = vst [vmem:[%s6546_s15 + $0xe0] sm:$0xff] %v3971_v2  ;;  %3974 = vst [vmem:[%s6546_s15 + $0xe8] sm:$0xff] %v3973_v51  ;;  %v3977_v31 = vld [vmem:[%s6550_s22 + $0xf8] sm:$0xff]  ;;  %v3979_v17 = vld [vmem:[%s6550_s22 + $0x100] sm:$0xff] }
 0x417   : >> { %3976 = vst [vmem:[%s6546_s15 + $0xf0] sm:$0xff] %v3975_v61  ;;  %3978 = vst [vmem:[%s6546_s15 + $0xf8] sm:$0xff] %v3977_v31  ;;  %v3981_v57 = vld [vmem:[%s6550_s22 + $0x108] sm:$0xff]  ;;  %v3983_v3 = vld [vmem:[%s6550_s22 + $0x110] sm:$0xff] }
 0x418   : >> { %3980 = vst [vmem:[%s6546_s15 + $0x100] sm:$0xff] %v3979_v17  ;;  %v3985_v59 = vld [vmem:[%s6550_s22 + $0x118] sm:$0xff]  ;;  %3982 = vst [vmem:[%s6546_s15 + $0x108] sm:$0xff] %v3981_v57  ;;  %v3987_v16 = vld [vmem:[%s6550_s22 + $0x120] sm:$0xff] }
 0x419   : >> { %3984 = vst [vmem:[%s6546_s15 + $0x110] sm:$0xff] %v3983_v3  ;;  %3986 = vst [vmem:[%s6546_s15 + $0x118] sm:$0xff] %v3985_v59  ;;  %v3989_v53 = vld [vmem:[%s6550_s22 + $0x128] sm:$0xff]  ;;  %v3991_v42 = vld [vmem:[%s6550_s22 + $0x130] sm:$0xff] }
 0x41a   : >> { %3988 = vst [vmem:[%s6546_s15 + $0x120] sm:$0xff] %v3987_v16  ;;  %3990 = vst [vmem:[%s6546_s15 + $0x128] sm:$0xff] %v3989_v53  ;;  %v3993_v30 = vld [vmem:[%s6550_s22 + $0x138] sm:$0xff]  ;;  %v3995_v45 = vld [vmem:[%s6550_s22 + $0x140] sm:$0xff] }
 0x41b   : >> { %3992 = vst [vmem:[%s6546_s15 + $0x130] sm:$0xff] %v3991_v42  ;;  %v3997_v7 = vld [vmem:[%s6550_s22 + $0x148] sm:$0xff]  ;;  %3994 = vst [vmem:[%s6546_s15 + $0x138] sm:$0xff] %v3993_v30  ;;  %v3999_v8 = vld [vmem:[%s6550_s22 + $0x150] sm:$0xff] }
 0x41c   : >> { %3996 = vst [vmem:[%s6546_s15 + $0x140] sm:$0xff] %v3995_v45  ;;  %3998 = vst [vmem:[%s6546_s15 + $0x148] sm:$0xff] %v3997_v7  ;;  %v4001_v40 = vld [vmem:[%s6550_s22 + $0x158] sm:$0xff]  ;;  %v4003_v9 = vld [vmem:[%s6550_s22 + $0x160] sm:$0xff] }
 0x41d   : >> { %4000 = vst [vmem:[%s6546_s15 + $0x150] sm:$0xff] %v3999_v8  ;;  %4002 = vst [vmem:[%s6546_s15 + $0x158] sm:$0xff] %v4001_v40  ;;  %v4005_v28 = vld [vmem:[%s6550_s22 + $0x168] sm:$0xff]  ;;  %v4007_v50 = vld [vmem:[%s6550_s22 + $0x170] sm:$0xff] }
 0x41e   : >> { %4004 = vst [vmem:[%s6546_s15 + $0x160] sm:$0xff] %v4003_v9  ;;  %v4009_v33 = vld [vmem:[%s6550_s22 + $0x178] sm:$0xff]  ;;  %4006 = vst [vmem:[%s6546_s15 + $0x168] sm:$0xff] %v4005_v28  ;;  %v4011_v0 = vld [vmem:[%s6550_s22 + $0x180] sm:$0xff] }
 0x41f   : >> { %4008 = vst [vmem:[%s6546_s15 + $0x170] sm:$0xff] %v4007_v50  ;;  %4010 = vst [vmem:[%s6546_s15 + $0x178] sm:$0xff] %v4009_v33  ;;  %v4013_v20 = vld [vmem:[%s6550_s22 + $0x188] sm:$0xff]  ;;  %v4015_v4 = vld [vmem:[%s6550_s22 + $0x190] sm:$0xff] }
 0x420   : >> { %4012 = vst [vmem:[%s6546_s15 + $0x180] sm:$0xff] %v4011_v0  ;;  %4014 = vst [vmem:[%s6546_s15 + $0x188] sm:$0xff] %v4013_v20  ;;  %v4017_v52 = vld [vmem:[%s6550_s22 + $0x198] sm:$0xff]  ;;  %v4019_v63 = vld [vmem:[%s6550_s22 + $0x1a0] sm:$0xff] }
 0x421   : >> { %4016 = vst [vmem:[%s6546_s15 + $0x190] sm:$0xff] %v4015_v4  ;;  %v4021_v22 = vld [vmem:[%s6550_s22 + $0x1a8] sm:$0xff]  ;;  %4018 = vst [vmem:[%s6546_s15 + $0x198] sm:$0xff] %v4017_v52  ;;  %v4023_v23 = vld [vmem:[%s6550_s22 + $0x1b0] sm:$0xff]  ;;  %3911 = sbr.rel (!%p3908_p12) target bundleno = 1031 (0x407), region = 122 }
 0x422   : >> { %4020 = vst [vmem:[%s6546_s15 + $0x1a0] sm:$0xff] %v4019_v63  ;;  %4022 = vst [vmem:[%s6546_s15 + $0x1a8] sm:$0xff] %v4021_v22  ;;  %v4025_v24 = vld [vmem:[%s6550_s22 + $0x1b8] sm:$0xff]  ;;  %v4027_v26 = vld [vmem:[%s6550_s22 + $0x1c0] sm:$0xff] }
 0x423   : >> { %4024 = vst [vmem:[%s6546_s15 + $0x1b0] sm:$0xff] %v4023_v23  ;;  %4026 = vst [vmem:[%s6546_s15 + $0x1b8] sm:$0xff] %v4025_v24  ;;  %v4029_v36 = vld [vmem:[%s6550_s22 + $0x1c8] sm:$0xff]  ;;  %v4031_v37 = vld [vmem:[%s6550_s22 + $0x1d0] sm:$0xff] }
 0x424   : >> { %4028 = vst [vmem:[%s6546_s15 + $0x1c0] sm:$0xff] %v4027_v26  ;;  %v4033_v46 = vld [vmem:[%s6550_s22 + $0x1d8] sm:$0xff]  ;;  %4030 = vst [vmem:[%s6546_s15 + $0x1c8] sm:$0xff] %v4029_v36  ;;  %v4035_v58 = vld [vmem:[%s6550_s22 + $0x1e0] sm:$0xff] }
 0x425   : >> { %4032 = vst [vmem:[%s6546_s15 + $0x1d0] sm:$0xff] %v4031_v37  ;;  %4034 = vst [vmem:[%s6546_s15 + $0x1d8] sm:$0xff] %v4033_v46  ;;  %v4037_v60 = vld [vmem:[%s6550_s22 + $0x1e8] sm:$0xff]  ;;  %v4039_v11 = vld [vmem:[%s6550_s22 + $0x1f0] sm:$0xff]  ;;  %s8906_s22 = smov %s8522_s27 }
 0x426   : >> { %4036 = vst [vmem:[%s6546_s15 + $0x1e0] sm:$0xff] %v4035_v58  ;;  %4038 = vst [vmem:[%s6546_s15 + $0x1e8] sm:$0xff] %v4037_v60 }
 0x427   : >> { %4040 = vst [vmem:[%s6546_s15 + $0x1f0] sm:$0xff] %v4039_v11  ;;  %s8905_s15 = smov %s8525_s28 }
 0x428 PF: > { %6486 = sdivrem.u32 %s8912_s11, 63 }
 0x429   : > { %s4186_s29 = smul.u32 504, %s8449_s20 }
 0x42b   : > { %s4052_s30 = scalar_lea.vmem %s8207_s8, %s4186_s29 [#allocation2]   ;;  %s4054_s4 = scalar_lea.vmem %s8443_s18, %s4186_s29  }
 0x431   : > { %s6487_s5 = spop.drf %6486 }
 0x432   : > { %p4188_p13 = scmp.le.s32.totalorder %s6487_s5, 0 }
 0x433   : > { %s6560_s6 = smov (!%p4188_p13), %s4054_s4   ;;  %s6564_s7 = smov (!%p4188_p13), %s4052_s30  }
 0x434   : > { %4145 = sbr.rel (%p4188_p13) target bundleno = 1093 (0x445), region = 127  ;;  %s6568_s9 = smov (!%p4188_p13), 0  }
 0x435   : > { %s6572_s10 = smov (!%p4188_p13), 0  }
 0x43b LB: >> { %v4064_v18 = vld [vmem:[%s6566_s7] sm:$0xff]  ;;  %s4066_s12 = sadd.s32 1, %s6570_s9  ;;  %s4058_s10 = sadd.s32 1, %s6574_s10   ;;  %s6574_s10 = sphi %s6572_s10, %s4058_s10   ;;  %s6570_s9 = sphi %s6568_s9, %s6569_s9   ;;  %s6566_s7 = sphi %s6564_s7, %s4071_s7   ;;  %s6562_s6 = sphi %s6560_s6, %s4072_s6  }
 0x43c   : >> { %4065 = vst [vmem:[%s6562_s6] sm:$0xff] %v4064_v18  ;;  %p4067_p0 = scmp.ge.s32.totalorder %s4066_s12, %s6487_s5  ;;  %p4057_p1 = scmp.ge.s32.totalorder %s4058_s10, %s6487_s5 }
 0x43e   : >> { %s8916_s12 = smov (%p4067_p0, %s4066_s12), 0  ;;  %4060 = sbr.rel (!%p4057_p1) target bundleno = 1083 (0x43b), region = 133 }
 0x43f   : >> { %s4189_s8 = sshll.u32 %s8916_s12, 3  ;;  %s6569_s9 = smov %s8916_s12  }
 0x440   : >> { %s4071_s7 = scalar_lea.vmem %s4052_s30, %s4189_s8 [#allocation2]   ;;  %s4072_s6 = scalar_lea.vmem %s4054_s4, %s4189_s8  }
 0x445 PF: > { %p10_p2 = scmp.ge.s32.totalorder %s6614_s16, 4   ;;  %s8908_s12 = smov %s6538_s13 }
 0x446   : > { %s8909_s13 = smov %s6622_s19  ;;  %s8910_s14 = smov %s6614_s16 }
 0x447   :  { %12 = sbr.rel (!%p10_p2) target bundleno = 2 (0x2), region = 144 }

</bundles_post_ra>
